<compile_context>
chip_gen: v5e
topology: v5e:2x2
jax: 0.10.0
libtpu: 0.0.40
codegen_flags: <defaults>
</compile_context>

<pallas_src>
import math

import jax
import jax.numpy as jnp
from jax.experimental import pallas as pl
from jax.experimental.pallas import tpu as pltpu

MOD_FEATURES = 32       # modulation_features
EMB_DIM = 256           # NumberEmbedder dim (dim // 2 = 128 fourier weights)
HALF = EMB_DIM // 2
NUM_LAYERS = 2          # MLP repeats (shared weights)
MAX_ROW_TILE = 1024     # max time rows (lanes) processed per grid step
MIN_ROW_TILE = 128      # full-lane minimum (unmasked vst, full vregs)


def _round_up(n, m):
    return -(-n // m) * m


def _gelu_exact(x):
    # PyTorch F.gelu / nn.GELU default is the exact erf form.
    return 0.5 * x * (1.0 + jax.lax.erf(x * (1.0 / math.sqrt(2.0))))


def _cfm_time_kernel(t_ref, fw_ref, wx_ref, wsc_ref, bo_ref, wm_ref, bm_ref, o_ref):
    """Feature-major tile of flattened time values -> (F, row_tile) embeddings.

    t_ref  : (1, RT)        flattened time values (lane-dense)
    fw_ref : (HALF, 1)      fourier weights * 2*pi (pre-scaled column)
    wx_ref : (F, 1)         to_out weight column for the raw `x` feature
    wsc_ref: (F, 2*HALF)    to_out weights for [sin | cos], transposed & merged
    bo_ref : (F, 1)         to_out bias (column)
    wm_ref : (F, F)         shared MLP Linear weight, transposed (W^T)
    bm_ref : (F, 1)         shared MLP bias (column)
    o_ref  : (F, RT)        output tile (lane-dense store)
    """
    t = t_ref[...]                                        # (1, RT)
    freqs = fw_ref[...] * t                               # (HALF, RT), 2*pi pre-folded

    # to_out([x, sin, cos])^T == Ws^T @ sin + Wc^T @ cos + wx^T * x + b
    # Two accumulated K=128 matmuls (static ref slices are free) -- no concat buffer.
    h = (jnp.dot(wsc_ref[:, :HALF], jnp.sin(freqs),
                 preferred_element_type=jnp.float32)
         + jnp.dot(wsc_ref[:, HALF:], jnp.cos(freqs),
                   preferred_element_type=jnp.float32)
         + wx_ref[...] * t
         + bo_ref[...])                                   # (F, RT)

    # F.gelu(embedding(time))
    h = _gelu_exact(h)

    # Shared-weight MLP (Repeat with a single module instance), transposed form:
    #   h_new^T = W^T @ h^T + b
    for _ in range(NUM_LAYERS):
        h = _gelu_exact(jnp.dot(wm_ref[...], h,
                                preferred_element_type=jnp.float32) + bm_ref[...])

    o_ref[...] = h


def cfm_time_embedding(time, packed_params):
    """time: float array of any shape. Returns:
       - shape (..., F) in general
       - shape (b, F) if the embedded features would be 3-D (b, n, F), summed over n.
    """
    time = jnp.asarray(time, jnp.float32)
    orig_shape = time.shape
    flat = time.reshape(-1)                               # '... -> (...)'
    T = flat.shape[0]
    F = MOD_FEATURES

    # Adaptive tile:
    #  * tiny inputs -> one full-lane 128-wide step
    #  * larger inputs -> at least 2 steps (so v7x's two TensorCores both get work),
    #    each step up to 1024 lanes to amortize per-step pipeline overhead.
    if T <= MIN_ROW_TILE:
        row_tile = MIN_ROW_TILE
    else:
        row_tile = min(MAX_ROW_TILE, _round_up(pl.cdiv(T, 2), MIN_ROW_TILE))
    T_pad = _round_up(T, row_tile)
    t_row = jnp.pad(flat, (0, T_pad - T)).reshape(1, T_pad)

    fw_col, wx_t, wsc_t, bo_t, wm_t, bm_t = packed_params
    n_steps = T_pad // row_tile

    const = lambda shape: pl.BlockSpec(shape, lambda i: (0, 0))

    cost = pl.CostEstimate(
        flops=int(T_pad * (2 * (2 * HALF) * F            # sin / cos matmuls
                           + NUM_LAYERS * 2 * F * F      # shared MLP matmuls
                           + HALF + 6 * F)),             # freq mults, bias adds, x-term
        transcendentals=int(T_pad * (2 * HALF + (1 + NUM_LAYERS) * F)),
        bytes_accessed=int(4 * (T_pad + T_pad * F
                                + HALF + F + F * 2 * HALF + F + F * F + F)),
    )

    out_t = pl.pallas_call(
        _cfm_time_kernel,
        out_shape=jax.ShapeDtypeStruct((F, T_pad), jnp.float32),
        grid=(n_steps,),
        in_specs=[
            pl.BlockSpec((1, row_tile), lambda i: (0, i)),   # time rows (lane-dense)
            const((HALF, 1)),                                # fourier weights * 2*pi
            const((F, 1)),                                   # wx^T
            const((F, 2 * HALF)),                            # [ws | wc]^T merged
            const((F, 1)),                                   # to_out bias
            const((F, F)),                                   # MLP W^T
            const((F, 1)),                                   # MLP bias
        ],
        out_specs=pl.BlockSpec((F, row_tile), lambda i: (0, i)),
        compiler_params=pltpu.CompilerParams(
            dimension_semantics=("parallel",)),
        cost_estimate=cost,
    )(t_row, fw_col, wx_t, wsc_t, bo_t, wm_t, bm_t)

    out = out_t.T[:T].reshape(*orig_shape, F)
    if out.ndim == 3:                                     # reduce 'b n d -> b d' sum
        out = jnp.sum(out, axis=1)
    return out


def init_params(key):
    """Deterministic synthetic parameters matching the PyTorch module shapes."""
    F = MOD_FEATURES
    k_fw, k_w, k_b, k_wm, k_bm = jax.random.split(key, 5)

    fourier_w = jax.random.normal(k_fw, (HALF,), jnp.float32)            # randn(dim//2)

    # to_out: Linear(dim + 1 = 257, F), stored (in, out) so y = x @ W + b.
    lim_o = 1.0 / math.sqrt(EMB_DIM + 1)
    W_out = jax.random.uniform(k_w, (EMB_DIM + 1, F), jnp.float32, -lim_o, lim_o)
    b_out = jax.random.uniform(k_b, (F,), jnp.float32, -lim_o, lim_o)

    # Shared MLP Linear(F, F), stored (in, out).
    lim_m = 1.0 / math.sqrt(F)
    W_mlp = jax.random.uniform(k_wm, (F, F), jnp.float32, -lim_m, lim_m)
    b_mlp = jax.random.uniform(k_bm, (F,), jnp.float32, -lim_m, lim_m)

    return dict(fourier_w=fourier_w, W_out=W_out, b_out=b_out,
                W_mlp=W_mlp, b_mlp=b_mlp)


def pack_params(p):
    """Pack PyTorch-layout params into the feature-major layout the kernel consumes,
    folding the constant 2*pi into the fourier-weight column."""
    F = MOD_FEATURES
    fw_col = (p["fourier_w"] * (2.0 * math.pi)).reshape(HALF, 1)
    wx_t = p["W_out"][0:1, :].T                              # (F, 1)
    wsc_t = p["W_out"][1:, :].T                              # (F, 2*HALF): [sin | cos]
    bo_t = p["b_out"].reshape(F, 1)
    wm_t = p["W_mlp"].T                                      # (F, F)
    bm_t = p["b_mlp"].reshape(F, 1)
    return (fw_col, wx_t, wsc_t, bo_t, wm_t, bm_t)


def _reference(time, p):
    """Pure-JAX reference of the PyTorch forward (exact erf GELU, shared MLP weights)."""
    time = jnp.asarray(time, jnp.float32)
    shape = time.shape
    x = time.reshape(-1, 1)
    freqs = x * p["fourier_w"].reshape(1, -1) * 2.0 * math.pi
    fouriered = jnp.concatenate([jnp.sin(freqs), jnp.cos(freqs)], axis=-1)
    fouriered = jnp.concatenate([x, fouriered], axis=-1)
    h = fouriered @ p["W_out"] + p["b_out"]
    h = jax.nn.gelu(h, approximate=False)
    for _ in range(NUM_LAYERS):
        h = jax.nn.gelu(h @ p["W_mlp"] + p["b_mlp"], approximate=False)
    h = h.reshape(*shape, MOD_FEATURES)
    if h.ndim == 3:
        h = jnp.sum(h, axis=1)
    return h


if __name__ == "__main__":
    key = jax.random.PRNGKey(0)
    k_p, k_t1, k_t2, k_t3 = jax.random.split(key, 4)
    params = init_params(k_p)
    packed = pack_params(params)

    # Case 1: time of shape (B,) -> (B, F)
    time_1d = jax.random.uniform(k_t1, (2,), jnp.float32)
    out_1d = jax.block_until_ready(cfm_time_embedding(time_1d, packed))
    ref_1d = _reference(time_1d, params)
    assert out_1d.shape == (2, MOD_FEATURES)
    assert jnp.allclose(out_1d, ref_1d, atol=1e-4, rtol=1e-4)

    # Case 2: time of shape (B, N) -> 3-D features -> summed to (B, F)
    time_2d = jax.random.uniform(k_t2, (2, 4), jnp.float32)
    out_2d = jax.block_until_ready(cfm_time_embedding(time_2d, packed))
    ref_2d = _reference(time_2d, params)
    assert out_2d.shape == (2, MOD_FEATURES)
    assert jnp.allclose(out_2d, ref_2d, atol=1e-4, rtol=1e-4)

    # Case 3: larger flattened batch -> exercises the multi-step wide-tile grid.
    time_big = jax.random.uniform(k_t3, (3, 400), jnp.float32)
    out_big = jax.block_until_ready(cfm_time_embedding(time_big, packed))
    ref_big = _reference(time_big, params)
    assert out_big.shape == (3, MOD_FEATURES)
    assert jnp.allclose(out_big, ref_big, atol=1e-4, rtol=1e-4)

    print("KERNEL_OK")
</pallas_src>

<mosaic_0001>
module attributes {stable_mosaic.version = 11 : i64} {
  func.func @_cfm_time_kernel(%arg0: i32, %arg1: memref<1x128xf32, #tpu.memory_space<vmem>>, %arg2: memref<128x1xf32, #tpu.memory_space<vmem>>, %arg3: memref<32x1xf32, #tpu.memory_space<vmem>>, %arg4: memref<32x256xf32, #tpu.memory_space<vmem>>, %arg5: memref<32x1xf32, #tpu.memory_space<vmem>>, %arg6: memref<32x32xf32, #tpu.memory_space<vmem>>, %arg7: memref<32x1xf32, #tpu.memory_space<vmem>>, %arg8: memref<32x128xf32, #tpu.memory_space<vmem>>) attributes {dimension_semantics = [#tpu.dimension_semantics<parallel>], iteration_bounds = array<i64: 1>, scalar_prefetch = 0 : i64, scratch_operands = 0 : i64, tpu.core_type = #tpu.core_type<tc>, window_params = [{transform_indices = @transform_0, window_bounds = array<i64: 1, 128>}, {pipeline_mode = #tpu.pipeline_mode<synchronous>, transform_indices = @transform_1, window_bounds = array<i64: 128, 1>}, {pipeline_mode = #tpu.pipeline_mode<synchronous>, transform_indices = @transform_2, window_bounds = array<i64: 32, 1>}, {pipeline_mode = #tpu.pipeline_mode<synchronous>, transform_indices = @transform_3, window_bounds = array<i64: 32, 256>}, {pipeline_mode = #tpu.pipeline_mode<synchronous>, transform_indices = @transform_4, window_bounds = array<i64: 32, 1>}, {pipeline_mode = #tpu.pipeline_mode<synchronous>, transform_indices = @transform_5, window_bounds = array<i64: 32, 32>}, {pipeline_mode = #tpu.pipeline_mode<synchronous>, transform_indices = @transform_6, window_bounds = array<i64: 32, 1>}, {transform_indices = @transform_7, window_bounds = array<i64: 32, 128>}]} {
    %c0 = arith.constant 0 : index
    %c0_0 = arith.constant 0 : index
    %0 = vector.load %arg1[%c0, %c0_0] : memref<1x128xf32, #tpu.memory_space<vmem>>, vector<1x128xf32>
    %c0_1 = arith.constant 0 : index
    %c0_2 = arith.constant 0 : index
    %1 = vector.load %arg2[%c0_1, %c0_2] : memref<128x1xf32, #tpu.memory_space<vmem>>, vector<128x1xf32>
    %2 = vector.broadcast %1 : vector<128x1xf32> to vector<128x128xf32>
    %3 = vector.broadcast %0 : vector<1x128xf32> to vector<128x128xf32>
    %4 = arith.mulf %2, %3 : vector<128x128xf32>
    %c0_3 = arith.constant 0 : index
    %c0_4 = arith.constant 0 : index
    %5 = vector.load %arg4[%c0_3, %c0_4] : memref<32x256xf32, #tpu.memory_space<vmem>>, vector<32x128xf32>
    %6 = math.sin %4 : vector<128x128xf32>
    %cst = arith.constant dense<0.000000e+00> : vector<32x128xf32>
    %7 = tpu.matmul %5, %6, %cst {dimension_numbers = #tpu.dot_dimension_numbers<[1], [0], [0], [1], [0, 0, 1, 1], [], []>} : vector<32x128xf32>, vector<128x128xf32>, vector<32x128xf32> -> vector<32x128xf32>
    %c0_5 = arith.constant 0 : index
    %c128 = arith.constant 128 : index
    %8 = vector.load %arg4[%c0_5, %c128] : memref<32x256xf32, #tpu.memory_space<vmem>>, vector<32x128xf32>
    %9 = math.cos %4 : vector<128x128xf32>
    %cst_6 = arith.constant dense<0.000000e+00> : vector<32x128xf32>
    %10 = tpu.matmul %8, %9, %cst_6 {dimension_numbers = #tpu.dot_dimension_numbers<[1], [0], [0], [1], [0, 0, 1, 1], [], []>} : vector<32x128xf32>, vector<128x128xf32>, vector<32x128xf32> -> vector<32x128xf32>
    %11 = arith.addf %7, %10 : vector<32x128xf32>
    %c0_7 = arith.constant 0 : index
    %c0_8 = arith.constant 0 : index
    %12 = vector.load %arg3[%c0_7, %c0_8] : memref<32x1xf32, #tpu.memory_space<vmem>>, vector<32x1xf32>
    %13 = vector.broadcast %12 : vector<32x1xf32> to vector<32x128xf32>
    %14 = vector.broadcast %0 : vector<1x128xf32> to vector<32x128xf32>
    %15 = arith.mulf %13, %14 : vector<32x128xf32>
    %16 = arith.addf %11, %15 : vector<32x128xf32>
    %c0_9 = arith.constant 0 : index
    %c0_10 = arith.constant 0 : index
    %17 = vector.load %arg5[%c0_9, %c0_10] : memref<32x1xf32, #tpu.memory_space<vmem>>, vector<32x1xf32>
    %18 = vector.broadcast %17 : vector<32x1xf32> to vector<32x128xf32>
    %19 = arith.addf %16, %18 : vector<32x128xf32>
    %cst_11 = arith.constant 5.000000e-01 : f32
    %20 = vector.broadcast %cst_11 : f32 to vector<32x128xf32>
    %21 = arith.mulf %20, %19 : vector<32x128xf32>
    %cst_12 = arith.constant 0.707106769 : f32
    %22 = vector.broadcast %cst_12 : f32 to vector<32x128xf32>
    %23 = arith.mulf %19, %22 : vector<32x128xf32>
    %24 = math.erf %23 : vector<32x128xf32>
    %cst_13 = arith.constant 1.000000e+00 : f32
    %25 = vector.broadcast %cst_13 : f32 to vector<32x128xf32>
    %26 = arith.addf %25, %24 : vector<32x128xf32>
    %27 = arith.mulf %21, %26 : vector<32x128xf32>
    %c0_14 = arith.constant 0 : index
    %c0_15 = arith.constant 0 : index
    %28 = vector.load %arg6[%c0_14, %c0_15] : memref<32x32xf32, #tpu.memory_space<vmem>>, vector<32x32xf32>
    %cst_16 = arith.constant dense<0.000000e+00> : vector<32x128xf32>
    %29 = tpu.matmul %28, %27, %cst_16 {dimension_numbers = #tpu.dot_dimension_numbers<[1], [0], [0], [1], [0, 0, 1, 1], [], []>} : vector<32x32xf32>, vector<32x128xf32>, vector<32x128xf32> -> vector<32x128xf32>
    %c0_17 = arith.constant 0 : index
    %c0_18 = arith.constant 0 : index
    %30 = vector.load %arg7[%c0_17, %c0_18] : memref<32x1xf32, #tpu.memory_space<vmem>>, vector<32x1xf32>
    %31 = vector.broadcast %30 : vector<32x1xf32> to vector<32x128xf32>
    %32 = arith.addf %29, %31 : vector<32x128xf32>
    %cst_19 = arith.constant 5.000000e-01 : f32
    %33 = vector.broadcast %cst_19 : f32 to vector<32x128xf32>
    %34 = arith.mulf %33, %32 : vector<32x128xf32>
    %cst_20 = arith.constant 0.707106769 : f32
    %35 = vector.broadcast %cst_20 : f32 to vector<32x128xf32>
    %36 = arith.mulf %32, %35 : vector<32x128xf32>
    %37 = math.erf %36 : vector<32x128xf32>
    %cst_21 = arith.constant 1.000000e+00 : f32
    %38 = vector.broadcast %cst_21 : f32 to vector<32x128xf32>
    %39 = arith.addf %38, %37 : vector<32x128xf32>
    %40 = arith.mulf %34, %39 : vector<32x128xf32>
    %c0_22 = arith.constant 0 : index
    %c0_23 = arith.constant 0 : index
    %41 = vector.load %arg6[%c0_22, %c0_23] : memref<32x32xf32, #tpu.memory_space<vmem>>, vector<32x32xf32>
    %cst_24 = arith.constant dense<0.000000e+00> : vector<32x128xf32>
    %42 = tpu.matmul %41, %40, %cst_24 {dimension_numbers = #tpu.dot_dimension_numbers<[1], [0], [0], [1], [0, 0, 1, 1], [], []>} : vector<32x32xf32>, vector<32x128xf32>, vector<32x128xf32> -> vector<32x128xf32>
    %c0_25 = arith.constant 0 : index
    %c0_26 = arith.constant 0 : index
    %43 = vector.load %arg7[%c0_25, %c0_26] : memref<32x1xf32, #tpu.memory_space<vmem>>, vector<32x1xf32>
    %44 = vector.broadcast %43 : vector<32x1xf32> to vector<32x128xf32>
    %45 = arith.addf %42, %44 : vector<32x128xf32>
    %cst_27 = arith.constant 5.000000e-01 : f32
    %46 = vector.broadcast %cst_27 : f32 to vector<32x128xf32>
    %47 = arith.mulf %46, %45 : vector<32x128xf32>
    %cst_28 = arith.constant 0.707106769 : f32
    %48 = vector.broadcast %cst_28 : f32 to vector<32x128xf32>
    %49 = arith.mulf %45, %48 : vector<32x128xf32>
    %50 = math.erf %49 : vector<32x128xf32>
    %cst_29 = arith.constant 1.000000e+00 : f32
    %51 = vector.broadcast %cst_29 : f32 to vector<32x128xf32>
    %52 = arith.addf %51, %50 : vector<32x128xf32>
    %53 = arith.mulf %47, %52 : vector<32x128xf32>
    %c0_30 = arith.constant 0 : index
    %c0_31 = arith.constant 0 : index
    %54 = vector.load %arg8[%c0_30, %c0_31] : memref<32x128xf32, #tpu.memory_space<vmem>>, vector<32x128xf32>
    tpu.vector_store %arg8[%c0_30, %c0_31], %53 {strides = array<i32>} : memref<32x128xf32, #tpu.memory_space<vmem>>, vector<32x128xf32>,
    return
  }
  func.func @transform_0(%arg0: i32) -> (i32, i32) {
    %c0_i32 = arith.constant 0 : i32
    %c0_i32_0 = arith.constant 0 : i32
    return %c0_i32, %arg0 : i32, i32
  }
  func.func @transform_1(%arg0: i32) -> (i32, i32) {
    %c0_i32 = arith.constant 0 : i32
    %c0_i32_0 = arith.constant 0 : i32
    %c0_i32_1 = arith.constant 0 : i32
    return %c0_i32, %c0_i32_0 : i32, i32
  }
  func.func @transform_2(%arg0: i32) -> (i32, i32) {
    %c0_i32 = arith.constant 0 : i32
    %c0_i32_0 = arith.constant 0 : i32
    %c0_i32_1 = arith.constant 0 : i32
    return %c0_i32, %c0_i32_0 : i32, i32
  }
  func.func @transform_3(%arg0: i32) -> (i32, i32) {
    %c0_i32 = arith.constant 0 : i32
    %c0_i32_0 = arith.constant 0 : i32
    %c0_i32_1 = arith.constant 0 : i32
    return %c0_i32, %c0_i32_0 : i32, i32
  }
  func.func @transform_4(%arg0: i32) -> (i32, i32) {
    %c0_i32 = arith.constant 0 : i32
    %c0_i32_0 = arith.constant 0 : i32
    %c0_i32_1 = arith.constant 0 : i32
    return %c0_i32, %c0_i32_0 : i32, i32
  }
  func.func @transform_5(%arg0: i32) -> (i32, i32) {
    %c0_i32 = arith.constant 0 : i32
    %c0_i32_0 = arith.constant 0 : i32
    %c0_i32_1 = arith.constant 0 : i32
    return %c0_i32, %c0_i32_0 : i32, i32
  }
  func.func @transform_6(%arg0: i32) -> (i32, i32) {
    %c0_i32 = arith.constant 0 : i32
    %c0_i32_0 = arith.constant 0 : i32
    %c0_i32_1 = arith.constant 0 : i32
    return %c0_i32, %c0_i32_0 : i32, i32
  }
  func.func @transform_7(%arg0: i32) -> (i32, i32) {
    %c0_i32 = arith.constant 0 : i32
    %c0_i32_0 = arith.constant 0 : i32
    return %c0_i32, %arg0 : i32, i32
  }
}

</mosaic_0001>

<bundles_post_ra>
// kernel: tpu_custom_call.1
= control target key start
LH: loop header
LB: loop body
LE: loop exit
PB: predicated region body
PF: predicated region fallthrough
CT: control target
= control target key end

     0   :  { %v9346_v3 = vmov 0   ;;  %s9338_s0 = inlined_call_operand.vmem [shape: f32[1,128], index: 0, kind: input, shape index: {}]   ;;  %s9339_s1 = inlined_call_operand.vmem [shape: f32[128,1], index: 1, kind: input, shape index: {}]   ;;  %s9340_s2 = inlined_call_operand.vmem [shape: f32[32,1], index: 2, kind: input, shape index: {}]   ;;  %s9341_s3 = inlined_call_operand.vmem [shape: f32[32,256], index: 3, kind: input, shape index: {}]   ;;  %s9342_s4 = inlined_call_operand.vmem [shape: f32[32,1], index: 4, kind: input, shape index: {}]   ;;  %s9343_s5 = inlined_call_operand.vmem [shape: f32[32,32], index: 5, kind: input, shape index: {}]   ;;  %s9344_s6 = inlined_call_operand.vmem [shape: f32[32,1], index: 6, kind: input, shape index: {}]   ;;  %s9345_s7 = inlined_call_operand.hbm [shape: f32[32,128], index: 7, kind: output, shape index: {}]  }
   0x1   :  { %v43_v0 = vld [vmem:[%s9339_s1 + $0x78] sm:$0xff]  ;;  %v41_v1 = vld [vmem:[%s9339_s1 + $0x68] sm:$0xff]  ;;  %5990 = vset.pattern.permute.xlu2 %v9346_v3  ;;  %5989 = vset.pattern.permute.xlu1 %v9346_v3 }
   0x2   :  { %v39_v2 = vld [vmem:[%s9339_s1 + $0x58] sm:$0xff]  ;;  %5988 = vset.pattern.permute.xlu0 %v9346_v3  ;;  %111 = vperm.xlu1 %5989, %v41_v1  }
   0x3   :  { %121 = vperm.xlu0 %5988, %v43_v0   ;;  %101 = vperm.xlu2 %5990, %v39_v2  }
   0x4   :  { %12 = vsyncpa [#allocation3], 0  ;;  %v40_v4 = vld [vmem:[%s9339_s1 + $0x60] sm:$0xff]  ;;  %v42_v5 = vld [vmem:[%s9339_s1 + $0x70] sm:$0xff]  ;;  %s6051_s10 = smov 128   ;;  %s6052_s11 = smov 8  }
   0x5   :  { %v38_v6 = vld [vmem:[%s9339_s1 + $0x50] sm:$0xff]  ;;  %v36_v7 = vld [vmem:[%s9339_s1 + $0x40] sm:$0xff]  ;;  %v37_v8 = vld [vmem:[%s9339_s1 + $0x48] sm:$0xff] }
   0x6   :  { %v35_v9 = vld [vmem:[%s9339_s1 + $0x38] sm:$0xff]  ;;  %v33_v10 = vld [vmem:[%s9339_s1 + $0x28] sm:$0xff]  ;;  %v34_v11 = vld [vmem:[%s9339_s1 + $0x30] sm:$0xff] }
   0x7   :  { %v32_v12 = vld [vmem:[%s9339_s1 + $0x20] sm:$0xff]  ;;  %v30_v13 = vld [vmem:[%s9339_s1 + $0x10] sm:$0xff]  ;;  %v31_v14 = vld [vmem:[%s9339_s1 + $0x18] sm:$0xff] }
   0x8   :  { %v29_v15 = vld [vmem:[%s9339_s1 + $0x8] sm:$0xff]  ;;  %v5156_v16 = vld [vmem:[%s9340_s2 + $0x18] sm:$0xff]  ;;  %v5155_v17 = vld [vmem:[%s9340_s2 + $0x10] sm:$0xff] }
   0x9   :  { %v28_v18 = vld [vmem:[%s9339_s1] sm:$0xff]  ;;  %v5188_v19 = vld [vmem:[%s9342_s4 + $0x18] sm:$0xff]  ;;  %v5154_v21 = vld [vmem:[%s9340_s2 + $0x8] sm:$0xff] }
   0xa   :  { %106 = vperm.xlu1 %5989, %v40_v4   ;;  %v5153_v20 = vld [vmem:[%s9340_s2] sm:$0xff]  ;;  %v5186_v22 = vld [vmem:[%s9342_s4 + $0x8] sm:$0xff]  ;;  %v5187_v24 = vld [vmem:[%s9342_s4 + $0x10] sm:$0xff] }
   0xb   :  { %116 = vperm.xlu0 %5988, %v42_v5   ;;  %96 = vperm.xlu2 %5990, %v38_v6   ;;  %v5185_v23 = vld [vmem:[%s9342_s4] sm:$0xff]  ;;  %v5395_v25 = vld [vmem:[%s9344_s6 + $0x10] sm:$0xff]  ;;  %v5394_v26 = vld [vmem:[%s9344_s6 + $0x8] sm:$0xff] }
   0xc   :  { %v5396_v27 = vld [vmem:[%s9344_s6 + $0x18] sm:$0xff]  ;;  %v5393_v28 = vld [vmem:[%s9344_s6] sm:$0xff]  ;;  %s5850_s6 = sshll.u32 %s9345_s7, 4  ;;  %s5851_s6 = int_to_ptr.hbm [resolvable:$true] %s5850_s6 }
   0xd   :  { %v6183_v31 = vld [vmem:[%s9338_s0] ss:$0 sm:$0xff] }
  0x12   :  { %86 = vperm.xlu1 %5989, %v36_v7  }
  0x13   :  { %91 = vperm.xlu0 %5988, %v37_v8   ;;  %81 = vperm.xlu2 %5990, %v35_v9  }
  0x1a   :  { %71 = vperm.xlu1 %5989, %v33_v10  }
  0x1b   :  { %76 = vperm.xlu0 %5988, %v34_v11   ;;  %66 = vperm.xlu2 %5990, %v32_v12  }
  0x22   :  { %56 = vperm.xlu1 %5989, %v30_v13  }
  0x23   :  { %61 = vperm.xlu0 %5988, %v31_v14   ;;  %51 = vperm.xlu2 %5990, %v29_v15  }
  0x2a   :  { %5174 = vperm.xlu1 %5989, %v5156_v16  }
  0x2b   :  { %5169 = vperm.xlu2 %5990, %v5155_v17   ;;  %46 = vperm.xlu0 %5988, %v28_v18  }
  0x32   :  { %5206 = vperm.xlu1 %5989, %v5188_v19  }
  0x33   :  { %5159 = vperm.xlu2 %5990, %v5153_v20   ;;  %5164 = vperm.xlu0 %5988, %v5154_v21   ;;  %v9348_v21 = vmov 2102212464  }
  0x3a   :  { %5196 = vperm.xlu1 %5989, %v5186_v22  }
  0x3b   :  { %5191 = vperm.xlu2 %5990, %v5185_v23   ;;  %5201 = vperm.xlu0 %5988, %v5187_v24   ;;  %v9372_v24 = vmov 920167782  }
  0x42   :  { %5409 = vperm.xlu1 %5989, %v5395_v25  }
  0x43   :  { %5404 = vperm.xlu2 %5990, %v5394_v26   ;;  %5414 = vperm.xlu0 %5988, %v5396_v27  }
  0x4b   :  { %5399 = vperm.xlu0 %5988, %v5393_v28   ;;  %v9350_v28 = vmov 1326507024  }
  0x5d   :  { %v102_v29 = vpop.permute.xlu2 %101 }
  0x5e   :  { %v6186_v32 = vmul.f32 %v6183_v31, %v102_v29 }
  0x60   :  { %9440 = vst [vmem:[#allocation5_spill] sm:$0xff] %v6186_v32  ;;  %v1855_v35 = vand.u32 2139095040, %v6186_v32  ;;  %v9493_v32 = vmov 2475754826  }
  0x62   :  { %v1856_v38 = vshrl.u32 %v1855_v35, 23 }
  0x64   :  { %v5895_v43 = vadd.s32 4294967169, %v1856_v38 }
  0x65   :  { %v97_v30 = vpop.permute.xlu2 %96 }
  0x66   :  { %v6189_v34 = vmul.f32 %v6183_v31, %v97_v30  ;;  %v1862_v49 = vadd.s32 1, %v5895_v43 }
  0x68   :  { %9441 = vst [vmem:[#allocation6_spill] sm:$0xff] %v6189_v34  ;;  %v1700_v37 = vand.u32 2139095040, %v6189_v34  ;;  %vm1863_vm0 = vcmp.gt.s32.totalorder %v1862_v49, 0 }
  0x69   :  { %v1864_v61 = vsel %vm1863_vm0, %v1862_v49, 0 }
  0x6a   :  { %v1701_v42 = vshrl.u32 %v1700_v37, 23  ;;  %v6215_v2 = vand.u32 31, %v1864_v61  ;;  %v6230_v20 = vshrl.u32 %v1864_v61, 5 }
  0x6c   :  { %v5892_v47 = vadd.s32 4294967169, %v1701_v42  ;;  %9444 = vst [vmem:[#allocation9_spill] sm:$0xff] %v6215_v2  ;;  %v6225_v13 = vsub.s32 32, %v6215_v2  ;;  %v1878_v22 = vshll.u32 %v9348_v21, %v6215_v2  ;;  %v1881_v26 = vshll.u32 %v9372_v24, %v6215_v2 }
  0x6d   :  { %v82_v33 = vpop.permute.xlu2 %81  ;;  %9449 = vst [vmem:[#allocation14_spill] sm:$0xff] %v6230_v20  ;;  %vm1887_vm5 = vcmp.lt.s32.totalorder %v6230_v20, 4 }
  0x6e   :  { %v6193_v36 = vmul.f32 %v6183_v31, %v82_v33  ;;  %v1707_v53 = vadd.s32 1, %v5892_v47  ;;  %9447 = vst [vmem:[#allocation12_spill] sm:$0xff] %v6225_v13  ;;  %v1879_v25 = vshrl.u32 %v9372_v24, %v6225_v13  ;;  %v1882_v29 = vshrl.u32 %v9350_v28, %v6225_v13 }
  0x70   :  { %9442 = vst [vmem:[#allocation7_spill] sm:$0xff] %v6193_v36  ;;  %v1235_v39 = vand.u32 2139095040, %v6193_v36  ;;  %vm1708_vm1 = vcmp.gt.s32.totalorder %v1707_v53, 0  ;;  %v6256_v47 = vor.u32 %v1879_v25, %v1878_v22 }
  0x71   :  { %v1709_v4 = vsel %vm1708_vm1, %v1707_v53, 0 }
  0x72   :  { %v1236_v44 = vshrl.u32 %v1235_v39, 23  ;;  %v6222_v11 = vand.u32 31, %v1709_v4  ;;  %v6246_v37 = vshrl.u32 %v1709_v4, 5  ;;  %9453 = vst [vmem:[#allocation18_spill] sm:$0xff] %v6256_v47 }
  0x74   :  { %v112_v40 = vpop.permute.xlu1 %111  ;;  %v5883_v50 = vadd.s32 4294967169, %v1236_v44  ;;  %9446 = vst [vmem:[#allocation11_spill] sm:$0xff] %v6222_v11  ;;  %v6235_v23 = vsub.s32 32, %v6222_v11  ;;  %v1723_v38 = vshll.u32 %v9348_v21, %v6222_v11  ;;  %v1726_v42 = vshll.u32 %v9372_v24, %v6222_v11 }
  0x75   :  { %v122_v41 = vpop.permute.xlu0 %121  ;;  %v6201_v46 = vmul.f32 %v6183_v31, %v112_v40  ;;  %v67_v48 = vpop.permute.xlu2 %66  ;;  %9452 = vst [vmem:[#allocation17_spill] sm:$0xff] %v6246_v37  ;;  %vm1732_vm7 = vcmp.lt.s32.totalorder %v6246_v37, 4 }
  0x76   :  { %v6198_v45 = vmul.f32 %v6183_v31, %v122_v41  ;;  %v6206_v54 = vmul.f32 %v6183_v31, %v67_v48  ;;  %v1242_v57 = vadd.s32 1, %v5883_v50  ;;  %9450 = vst [vmem:[#allocation15_spill] sm:$0xff] %v6235_v23  ;;  %v1724_v41 = vshrl.u32 %v9372_v24, %v6235_v23 }
  0x77   :  { %v2165_v52 = vand.u32 2139095040, %v6201_v46  ;;  %v1727_v43 = vshrl.u32 %v9350_v28, %v6235_v23 }
  0x78   :  { %v2475_v51 = vand.u32 2139095040, %v6198_v45  ;;  %9443 = vst [vmem:[#allocation8_spill] sm:$0xff] %v6206_v54  ;;  %v770_v62 = vand.u32 2139095040, %v6206_v54  ;;  %vm1243_vm2 = vcmp.gt.s32.totalorder %v1242_v57, 0 }
  0x79   :  { %v2166_v59 = vshrl.u32 %v2165_v52, 23  ;;  %v1244_v9 = vsel %vm1243_vm2, %v1242_v57, 0  ;;  %v1728_v61 = vor.u32 %v1727_v43, %v1726_v42 }
  0x7a   :  { %v2476_v58 = vshrl.u32 %v2475_v51, 23  ;;  %v771_v7 = vshrl.u32 %v770_v62, 23  ;;  %v6227_v16 = vand.u32 31, %v1244_v9 }
  0x7b   :  { %v5901_v5 = vadd.s32 4294967169, %v2166_v59  ;;  %v6269_v59 = vor.u32 %v1724_v41, %v1723_v38 }
  0x7c   :  { %v107_v55 = vpop.permute.xlu1 %106  ;;  %v5907_v0 = vadd.s32 4294967169, %v2476_v58  ;;  %9448 = vst [vmem:[#allocation13_spill] sm:$0xff] %v6227_v16  ;;  %v5874_v17 = vadd.s32 4294967169, %v771_v7  ;;  %v6244_v30 = vsub.s32 32, %v6227_v16  ;;  %v1258_v48 = vshll.u32 %v9348_v21, %v6227_v16 }
  0x7d   :  { %v117_v56 = vpop.permute.xlu0 %116  ;;  %v6209_v60 = vmul.f32 %v6183_v31, %v107_v55  ;;  %v52_v1 = vpop.permute.xlu2 %51  ;;  %v2172_v14 = vadd.s32 1, %v5901_v5  ;;  %v1883_v55 = vor.u32 %v1882_v29, %v1881_v26  ;;  %9455 = vst [vmem:[#allocation20_spill] sm:$0xff] %v6269_v59  ;;  %v1261_v62 = vshll.u32 %v9372_v24, %v6227_v16 }
  0x7e   :  { %v6213_v63 = vmul.f32 %v6183_v31, %v117_v56  ;;  %v6220_v10 = vmul.f32 %v6183_v31, %v52_v1  ;;  %v2482_v12 = vadd.s32 1, %v5907_v0  ;;  %9451 = vst [vmem:[#allocation16_spill] sm:$0xff] %v6244_v30  ;;  %v777_v33 = vadd.s32 1, %v5874_v17 }
  0x7f   :  { %v2010_v6 = vand.u32 2139095040, %v6209_v60  ;;  %vm2173_vm4 = vcmp.gt.s32.totalorder %v2172_v14, 0  ;;  %v1259_v50 = vshrl.u32 %v9372_v24, %v6244_v30  ;;  %v6265_v56 = vshrl.u32 %v1244_v9, 5 }
  0x80   :  { %v2320_v8 = vand.u32 2139095040, %v6213_v63  ;;  %9445 = vst [vmem:[#allocation10_spill] sm:$0xff] %v6220_v10  ;;  %v305_v19 = vand.u32 2139095040, %v6220_v10  ;;  %vm2483_vm3 = vcmp.gt.s32.totalorder %v2482_v12, 0  ;;  %v2174_v44 = vsel %vm2173_vm4, %v2172_v14, 0 }
  0x81   :  { %v2011_v15 = vshrl.u32 %v2010_v6, 23  ;;  %v2484_v39 = vsel %vm2483_vm3, %v2482_v12, 0  ;;  %vm778_vm6 = vcmp.gt.s32.totalorder %v777_v33, 0  ;;  %9454 = vst [vmem:[#allocation19_spill] sm:$0xff] %v6265_v56  ;;  %v6267_v57 = vand.u32 31, %v2174_v44 }
  0x82   :  { %v2321_v18 = vshrl.u32 %v2320_v8, 23  ;;  %v306_v40 = vshrl.u32 %v305_v19, 23  ;;  %v6263_v51 = vand.u32 31, %v2484_v39  ;;  %v1262_v0 = vshrl.u32 %v9350_v28, %v6244_v30 }
  0x83   :  { %v5898_v27 = vadd.s32 4294967169, %v2011_v15  ;;  %v779_v1 = vsel %vm778_vm6, %v777_v33, 0  ;;  %v6282_v5 = vsel %vm1887_vm5, %v6256_v47, 920167782  ;;  %v6284_v6 = vor.u32 %v1259_v50, %v1258_v48 }
  0x84   :  { %v5904_v35 = vadd.s32 4294967169, %v2321_v18  ;;  %v5865_v58 = vadd.s32 4294967169, %v306_v40  ;;  %9457 = vst [vmem:[#allocation22_spill] sm:$0xff] %v6282_v5  ;;  %v6287_v7 = vsub.s32 32, %v6263_v51  ;;  %v6291_v8 = vsel %vm1887_vm5, %v1883_v55, 1326507024  ;;  %v87_v42 = vpop.permute.xlu1 %86 }
  0x85   :  { %v2017_v49 = vadd.s32 1, %v5898_v27  ;;  %v92_v53 = vpop.permute.xlu0 %91  ;;  %9458 = vst [vmem:[#allocation23_spill] sm:$0xff] %v6284_v6  ;;  %vm9436_vm10 = vcmp.lt.s32.totalorder %v6265_v56, 4  ;;  %v6295_v9 = vsub.s32 32, %v6267_v57  ;;  %v6300_v14 = vsel %vm1732_vm7, %v6269_v59, 920167782 }
  0x86   :  { %v2327_v52 = vadd.s32 1, %v5904_v35  ;;  %v6277_v4 = vmul.f32 %v6183_v31, %v92_v53  ;;  %9459 = vst [vmem:[#allocation24_spill] sm:$0xff] %v6291_v8  ;;  %v312_v12 = vadd.s32 1, %v5865_v58  ;;  %v6302_v15 = vand.u32 31, %v779_v1 }
  0x87   :  { %vm2018_vm8 = vcmp.gt.s32.totalorder %v2017_v49, 0  ;;  %9460 = vst [vmem:[#allocation25_spill] sm:$0xff] %v6300_v14  ;;  %v6307_v19 = vsel %vm1732_vm7, %v1728_v61, 1326507024  ;;  %v1263_v22 = vor.u32 %v1262_v0, %v1261_v62  ;;  %v6313_v27 = vsel %vm9436_vm10, %v6284_v6, 920167782 }
  0x88   :  { %9456 = vst [vmem:[#allocation21_spill] sm:$0xff] %v6277_v4  ;;  %vm2328_vm9 = vcmp.gt.s32.totalorder %v2327_v52, 0  ;;  %v2019_v17 = vsel %vm2018_vm8, %v2017_v49, 0  ;;  %v1545_v26 = vand.u32 2139095040, %v6277_v4  ;;  %v6315_v29 = vshrl.u32 %v2484_v39, 5 }
  0x89   :  { %9461 = vst [vmem:[#allocation26_spill] sm:$0xff] %v6302_v15  ;;  %v2329_v25 = vsel %vm2328_vm9, %v2327_v52, 0  ;;  %v2499_v33 = vshrl.u32 %v9372_v24, %v6287_v7  ;;  %v2502_v35 = vshrl.u32 %v9350_v28, %v6287_v7  ;;  %v2188_v38 = vshll.u32 %v9348_v21, %v6267_v57 }
  0x8a   :  { %9462 = vst [vmem:[#allocation27_spill] sm:$0xff] %v6307_v19  ;;  %v2189_v40 = vshrl.u32 %v9372_v24, %v6295_v9  ;;  %v6325_v41 = vand.u32 31, %v2019_v17  ;;  %vm313_vm11 = vcmp.gt.s32.totalorder %v312_v12, 0  ;;  %v2498_v39 = vshll.u32 %v9348_v21, %v6263_v51 }
  0x8b   :  { %9463 = vst [vmem:[#allocation28_spill] sm:$0xff] %v6313_v27  ;;  %v2501_v43 = vshll.u32 %v9372_v24, %v6263_v51  ;;  %v6332_v48 = vsub.s32 32, %v6302_v15  ;;  %v6334_v49 = vand.u32 31, %v2329_v25  ;;  %v6336_v50 = vshrl.u32 %v2174_v44, 5 }
  0x8c   :  { %v2191_v52 = vshll.u32 %v9372_v24, %v6267_v57  ;;  %v6340_v53 = vshrl.u32 %v779_v1, 5  ;;  %v1546_v55 = vshrl.u32 %v1545_v26, 23  ;;  %v6342_v58 = vor.u32 %v2499_v33, %v2498_v39  ;;  %v72_v30 = vpop.permute.xlu1 %71 }
  0x8d   :  { %9464 = vst [vmem:[#allocation29_spill] sm:$0xff] %v6332_v48  ;;  %v2503_v61 = vor.u32 %v2502_v35, %v2501_v43  ;;  %v2192_v62 = vshrl.u32 %v9350_v28, %v6295_v9  ;;  %v314_v0 = vsel %vm313_vm11, %v312_v12, 0  ;;  %v6348_v3 = vsel %vm9436_vm10, %v1263_v22, 1326507024 }
  0x8e   :  { %9465 = vst [vmem:[#allocation30_spill] sm:$0xff] %v6340_v53  ;;  %v6350_v18 = vor.u32 %v2189_v40, %v2188_v38  ;;  %v793_v44 = vshll.u32 %v9348_v21, %v6302_v15  ;;  %v6355_v1 = vsub.s32 32, %v6325_v41  ;;  %v794_v26 = vshrl.u32 %v9372_v24, %v6332_v48  ;;  %v77_v40 = vpop.permute.xlu0 %76 }
  0x8f   :  { %9466 = vst [vmem:[#allocation31_spill] sm:$0xff] %v6348_v3  ;;  %v796_v33 = vshll.u32 %v9372_v24, %v6302_v15  ;;  %v797_v12 = vshrl.u32 %v9350_v28, %v6332_v48  ;;  %v6364_v22 = vsub.s32 32, %v6334_v49  ;;  %vm2507_vm12 = vcmp.lt.s32.totalorder %v6315_v29, 4 }
  0x90   :  { %vm2197_vm13 = vcmp.lt.s32.totalorder %v6336_v50, 4  ;;  %v6368_v35 = vand.u32 31, %v314_v0  ;;  %v5889_v38 = vadd.s32 4294967169, %v1546_v55  ;;  %v6373_v39 = vsel %vm2507_vm12, %v6342_v58, 920167782 }
  0x91   :  { %v6377_v43 = vsel %vm2507_vm12, %v2503_v61, 1326507024  ;;  %v2193_v21 = vor.u32 %v2192_v62, %v2191_v52  ;;  %vm9435_vm14 = vcmp.lt.s32.totalorder %v6340_v53, 4  ;;  %v6383_v28 = vsel %vm2197_vm13, %v6350_v18, 920167782 }
  0x92   :  { %9467 = vst [vmem:[#allocation32_spill] sm:$0xff] %v6368_v35  ;;  %v2034_v55 = vshrl.u32 %v9372_v24, %v6355_v1  ;;  %v9468_v10 = vmov 1326507024   ;;  %v6390_v15 = vmul.f32 %v6183_v31, %v87_v42  ;;  %v6392_v54 = vor.u32 %v794_v26, %v793_v44 }
  0x93   :  { %v2037_v48 = vshrl.u32 %v9468_v10, %v6355_v1  ;;  %v798_v61 = vor.u32 %v797_v12, %v796_v33  ;;  %v2344_v52 = vshrl.u32 %v9372_v24, %v6364_v22  ;;  %v2347_v62 = vshrl.u32 %v9468_v10, %v6364_v22 }
  0x94   :  { %9469 = vst [vmem:[#allocation33_spill] sm:$0xff] %v6390_v15  ;;  %v9471_v27 = vmov 2102212464   ;;  %v2036_v3 = vshll.u32 %v9372_v24, %v6325_v41  ;;  %v6403_v56 = vsub.s32 32, %v6368_v35  ;;  %v1552_v42 = vadd.s32 1, %v5889_v38  ;;  %v57_v53 = vpop.permute.xlu1 %56 }
  0x95   :  { %9470 = vst [vmem:[#allocation34_spill] sm:$0xff] %v6392_v54  ;;  %v2033_v6 = vshll.u32 %v9471_v27, %v6325_v41  ;;  %v6405_v44 = vshrl.u32 %v2329_v25, 5  ;;  %v2343_v26 = vshll.u32 %v9471_v27, %v6334_v49  ;;  %v2346_v33 = vshll.u32 %v9372_v24, %v6334_v49 }
  0x96   :  { %9472 = vst [vmem:[#allocation35_spill] sm:$0xff] %v6403_v56  ;;  %v6411_v12 = vshrl.u32 %v2019_v17, 5  ;;  %v6415_v16 = vsel %vm2197_vm13, %v2193_v21, 1326507024  ;;  %v2038_v4 = vor.u32 %v2037_v48, %v2036_v3  ;;  %v1390_v38 = vand.u32 2139095040, %v6390_v15 }
  0x97   :  { %v6417_v36 = vor.u32 %v2034_v55, %v2033_v6  ;;  %v6423_v25 = vsel %vm9435_vm14, %v6392_v54, 920167782  ;;  %v6425_v14 = vor.u32 %v2344_v52, %v2343_v26  ;;  %v2348_v59 = vor.u32 %v2347_v62, %v2346_v33 }
  0x98   :  { %9473 = vst [vmem:[#allocation36_spill] sm:$0xff] %v6423_v25  ;;  %v6427_v24 = vshrl.u32 %v314_v0, 5  ;;  %v9475_v17 = vmov 920167782   ;;  %vm1553_vm15 = vcmp.gt.s32.totalorder %v1552_v42, 0  ;;  %v6432_v21 = vmul.f32 %v6183_v31, %v77_v40 }
  0x99   :  { %v329_v19 = vshrl.u32 %v9475_v17, %v6403_v56  ;;  %v6435_v3 = vmul.f32 %v6183_v31, %v72_v30  ;;  %v6439_v6 = vsel %vm9435_vm14, %v798_v61, 1326507024  ;;  %vm2352_vm0 = vcmp.lt.s32.totalorder %v6405_v44, 4  ;;  %v62_v61 = vpop.permute.xlu0 %61 }
  0x9a   :  { %9474 = vst [vmem:[#allocation37_spill] sm:$0xff] %v6427_v24  ;;  %vm2042_vm1 = vcmp.lt.s32.totalorder %v6411_v12, 4  ;;  %v6445_v48 = vshrl.u32 %v9468_v10, %v6403_v56  ;;  %v328_v40 = vshll.u32 %v9471_v27, %v6368_v35  ;;  %v1391_v55 = vshrl.u32 %v1390_v38, 23 }
  0x9b   :  { %9476 = vst [vmem:[#allocation38_spill] sm:$0xff] %v6432_v21  ;;  %v6450_v0 = vsel %vm2042_vm1, %v6417_v36, 920167782  ;;  %v6454_v30 = vsel %vm2042_vm1, %v2038_v4, 1326507024  ;;  %v6465_v62 = vshll.u32 %v9475_v17, %v6368_v35  ;;  %vm9434_vm2 = vcmp.lt.s32.totalorder %v6427_v24, 4 }
  0x9c   :  { %9477 = vst [vmem:[#allocation39_spill] sm:$0xff] %v6435_v3  ;;  %v6461_v52 = vsel %vm2352_vm0, %v6425_v14, 920167782  ;;  %v1554_v26 = vsel %vm1553_vm15, %v1552_v42, 0  ;;  %v6470_v4 = vsel %vm2352_vm0, %v2348_v59, 1326507024  ;;  %v6472_v33 = vor.u32 %v329_v19, %v328_v40 }
  0x9d   :  { %9478 = vst [vmem:[#allocation40_spill] sm:$0xff] %v6439_v6  ;;  %v1080_v38 = vand.u32 2139095040, %v6432_v21  ;;  %v925_v56 = vand.u32 2139095040, %v6435_v3  ;;  %v6479_v54 = vmul.f32 %v6183_v31, %v62_v61  ;;  %v9387_v35 = vmov 683565275  }
  0x9e   :  { %9479 = vst [vmem:[#allocation41_spill] sm:$0xff] %v6445_v48  ;;  %v2489_v42 = vshll.u32 %v9387_v35, %v6263_v51  ;;  %v9393_v6 = vmov 2475754826   ;;  %v6485_v19 = vand.u32 31, %v1554_v26  ;;  %v5886_v40 = vadd.s32 4294967169, %v1391_v55 }
  0x9f   :  { %9480 = vst [vmem:[#allocation42_spill] sm:$0xff] %v6465_v62  ;;  %v2490_v59 = vshrl.u32 %v9393_v6, %v6287_v7  ;;  %v9484_v3 = vand.u32 2147483647, %v6198_v45  ;;  %v2492_v25 = vshll.u32 %v9393_v6, %v6263_v51  ;;  %v9399_v62 = vmov 2131351028  }
  0xa0   :  { %9481 = vst [vmem:[#allocation43_spill] sm:$0xff] %v6472_v33  ;;  %v2493_v48 = vshrl.u32 %v9399_v62, %v6287_v7  ;;  %v2495_v35 = vshll.u32 %v9399_v62, %v6263_v51  ;;  %v2496_v15 = vshrl.u32 %v9471_v27, %v6287_v7  ;;  %v6500_v55 = vsel %vm9434_vm2, %v6472_v33, 920167782 }
  0xa1   :  { %9482 = vst [vmem:[#allocation44_spill] sm:$0xff] %v6479_v54  ;;  %v2479_v21 = vand.u32 8388607, %v9484_v3  ;;  %v2491_v61 = vor.u32 %v2490_v59, %v2489_v42  ;;  %v6502_v3 = vshrl.u32 %v1554_v26, 5  ;;  %v1081_v37 = vshrl.u32 %v1080_v38, 23 }
  0xa2   :  { %9483 = vst [vmem:[#allocation45_spill] sm:$0xff] %v6485_v19  ;;  %v926_v6 = vshrl.u32 %v925_v56, 23  ;;  %v615_v42 = vand.u32 2139095040, %v6479_v54  ;;  %v6506_v59 = vmul.f32 %v6183_v31, %v57_v53  ;;  %v2494_v23 = vor.u32 %v2493_v48, %v2492_v25 }
  0xa3   :  { %9485 = vst [vmem:[#allocation46_spill] sm:$0xff] %v6500_v55  ;;  %v2497_v11 = vor.u32 %v2496_v15, %v2495_v35  ;;  %v6509_v51 = vsub.s32 32, %v6485_v19  ;;  %v6513_v62 = vshll.u32 %v9471_v27, %v6485_v19  ;;  %v2480_v33 = vor.u32 8388608, %v2479_v21 }
  0xa4   :  { %9486 = vst [vmem:[#allocation47_spill] sm:$0xff] %v6502_v3  ;;  %vm2504_vm3 = vcmp.lt.s32.totalorder %v6315_v29, 1  ;;  %v6518_v56 = vshll.u32 %v9475_v17, %v6485_v19  ;;  %v6520_v26 = vadd.s32 1, %v5886_v40  ;;  %vm2506_vm4 = vcmp.lt.s32.totalorder %v6315_v29, 3  ;;  %v47_v40 = vpop.permute.xlu0 %46 }
  0xa5   :  { %9487 = vst [vmem:[#allocation48_spill] sm:$0xff] %v6506_v59  ;;  %v2512_v15 = vsel %vm2504_vm3, %v2491_v61, %v2494_v23  ;;  %v5880_v53 = vadd.s32 4294967169, %v1081_v37  ;;  %v6525_v35 = vadd.s32 4294967169, %v926_v6  ;;  %vm2505_vm6 = vcmp.lt.s32.totalorder %v6315_v29, 2 }
  0xa6   :  { %9488 = vst [vmem:[#allocation49_spill] sm:$0xff] %v6509_v51  ;;  %v2514_v25 = vsel %vm2506_vm4, %v2497_v11, %v6373_v39  ;;  %v2509_v21 = vsel %vm2507_vm12, %v2497_v11, 2102212464  ;;  %v2516_v38 = vsel %vm2504_vm3, %v2494_v23, %v2497_v11  ;;  %v2518_v37 = vsel %vm2506_vm4, %v6342_v58, %v6377_v43 }
  0xa7   :  { %v2515_v48 = vsel %vm2505_vm6, %v2512_v15, %v2514_v25  ;;  %v6541_v6 = vshrl.u32 %v615_v42, 23  ;;  %v9489_v55 = vmov 683565275   ;;  %v2519_v24 = vsel %vm2505_vm6, %v2516_v38, %v2518_v37 }
  0xa8   :  { %v2488_v39 = vshrl.u32 %v9489_v55, %v6287_v7  ;;  %v6547_v54 = vshll.u32 %v2480_v33, 8  ;;  %v2523_v15 = vand.u32 65535, %v2519_v24  ;;  %v2524_v25 = vshrl.u32 %v2519_v24, 16 }
  0xa9   :  { %v2545_v19 = vand.u32 65535, %v2515_v48  ;;  %v2546_v11 = vshrl.u32 %v2515_v48, 16  ;;  %v2510_v58 = vsel %vm2506_vm4, %v2494_v23, %v2509_v21  ;;  %v6557_v7 = vshrl.u32 %v9475_v17, %v6509_v51 }
  0xaa   :  { %v2508_v34 = vsel %vm2504_vm3, %v2488_v39, %v2491_v61  ;;  %v2521_v43 = vand.u32 65535, %v6547_v54  ;;  %v2522_v42 = vshrl.u32 %v6547_v54, 16  ;;  %v6561_v33 = vshrl.u32 %v9468_v10, %v6509_v51 }
  0xab   :  { %v6565_v48 = vmul.f32 %v6183_v31, %v47_v40  ;;  %v6567_v61 = vadd.s32 1, %v5880_v53  ;;  %v6572_v37 = vsel %vm2505_vm6, %v2508_v34, %v2510_v58  ;;  %v2334_v51 = vshll.u32 %v9489_v55, %v6334_v49 }
  0xac   :  { %v2526_v23 = vmul.u32 %v2524_v25, %v2521_v43  ;;  %v2527_v21 = vmul.u32 %v2523_v15, %v2522_v42  ;;  %v2548_v39 = vmul.u32 %v2546_v11, %v2521_v43  ;;  %v2549_v5 = vmul.u32 %v2545_v19, %v2522_v42 }
  0xad   :  { %9490 = vst [vmem:[#allocation50_spill] sm:$0xff] %v6565_v48  ;;  %v2525_v10 = vmul.u32 %v2523_v15, %v2521_v43  ;;  %v2528_v24 = vmul.u32 %v2524_v25, %v2522_v42  ;;  %v2547_v31 = vmul.u32 %v2545_v19, %v2521_v43  ;;  %v2550_v48 = vmul.u32 %v2546_v11, %v2522_v42 }
  0xae   :  { %v2529_v47 = vshll.u32 %v2526_v23, 16  ;;  %v2530_v40 = vshrl.u32 %v2526_v23, 16  ;;  %v2531_v53 = vshll.u32 %v2527_v21, 16  ;;  %v2551_v8 = vshll.u32 %v2548_v39, 16 }
  0xaf   :  { %v2553_v38 = vshll.u32 %v2549_v5, 16  ;;  %v9491_v29 = vand.u32 2147483647, %v6213_v63  ;;  %v9492_v58 = vmov 0   ;;  %v2335_v15 = vshrl.u32 %v9493_v32, %v6364_v22 }
  0xb0   :  { %vm2533_vm8 = vc.u32 %v2525_v10, %v2529_v47  ;;  %v2535_v20 = vadd.s32 %v2529_v47, %v2525_v10  ;;  %vm2555_vm9 = vc.u32 %v2547_v31, %v2551_v8  ;;  %v2557_v2 = vadd.s32 %v2551_v8, %v2547_v31 }
  0xb1   :  { %v2324_v34 = vand.u32 8388607, %v9491_v29  ;;  %v2534_v13 = vsel %vm2533_vm8, 1, %v9492_v58  ;;  %v2552_v19 = vshrl.u32 %v2548_v39, 16  ;;  %v2556_v43 = vsel %vm2555_vm9, 1, %v9492_v58 }
  0xb2   :  { %v2536_v25 = vadd.s32 %v2534_v13, %v2528_v24  ;;  %vm2537_vm11 = vc.u32 %v2535_v20, %v2531_v53  ;;  %v2558_v42 = vadd.s32 %v2556_v43, %v2550_v48  ;;  %vm2559_vm12 = vc.u32 %v2557_v2, %v2553_v38 }
  0xb3   :  { %v2538_v11 = vsel %vm2537_vm11, 1, %v9492_v58  ;;  %v2325_v10 = vor.u32 8388608, %v2324_v34  ;;  %vm1398_vm15 = vcmp.gt.s32.totalorder %v6520_v26, 0  ;;  %v2560_v23 = vsel %vm2559_vm12, 1, %v9492_v58 }
  0xb4   :  { %v2540_v47 = vadd.s32 %v2538_v11, %v2536_v25  ;;  %v6585_v29 = vor.u32 %v2335_v15, %v2334_v51  ;;  %v2337_v8 = vshll.u32 %v9493_v32, %v6334_v49  ;;  %v2562_v13 = vadd.s32 %v2560_v23, %v2558_v42 }
  0xb5   :  { %v9494_v20 = vmov 2131351028   ;;  %v2341_v48 = vshrl.u32 %v9471_v27, %v6364_v22  ;;  %v2532_v31 = vshrl.u32 %v2527_v21, 16  ;;  %v2554_v34 = vshrl.u32 %v2549_v5, 16 }
  0xb6   :  { %v2338_v24 = vshrl.u32 %v9494_v20, %v6364_v22  ;;  %v2340_v39 = vshll.u32 %v9494_v20, %v6334_v49  ;;  %v2541_v53 = vadd.s32 %v2540_v47, %v2530_v40  ;;  %v6595_v25 = vadd.s32 %v2557_v2, %v2553_v38 }
  0xb7   :  { %v2563_v51 = vadd.s32 %v2562_v13, %v2552_v19  ;;  %vm2349_vm3 = vcmp.lt.s32.totalorder %v6405_v44, 1  ;;  %vm2350_vm4 = vcmp.lt.s32.totalorder %v6405_v44, 2  ;;  %vm2351_vm6 = vcmp.lt.s32.totalorder %v6405_v44, 3 }
  0xb8   :  { %v2339_v15 = vor.u32 %v2338_v24, %v2337_v8  ;;  %v2342_v43 = vor.u32 %v2341_v48, %v2340_v39  ;;  %v6598_v11 = vadd.s32 %v2541_v53, %v2532_v31  ;;  %v6602_v49 = vshll.u32 %v2325_v10, 8 }
  0xb9   :  { %v2564_v42 = vadd.s32 %v2563_v51, %v2554_v34  ;;  %v2363_v21 = vsel %vm2351_vm6, %v6425_v14, %v6470_v4  ;;  %v6615_v38 = vadd.s32 1, %v6525_v35  ;;  %v6618_v40 = vadd.s32 4294967169, %v6541_v6 }
  0xba   :  { %v2357_v5 = vsel %vm2349_vm3, %v6585_v29, %v2339_v15  ;;  %v2359_v2 = vsel %vm2351_vm6, %v2342_v43, %v6461_v52  ;;  %vm2567_vm8 = vc.u32 %v6598_v11, %v6595_v25  ;;  %v2565_v52 = vmul.u32 %v6547_v54, %v6572_v37 }
  0xbb   :  { %v2360_v19 = vsel %vm2350_vm4, %v2357_v5, %v2359_v2  ;;  %v2568_v10 = vadd.s32 1, %v2564_v42  ;;  %v2361_v47 = vsel %vm2349_vm3, %v2339_v15, %v2342_v43  ;;  %v2366_v14 = vand.u32 65535, %v6602_v49 }
  0xbc   :  { %v2364_v4 = vsel %vm2350_vm4, %v2361_v47, %v2363_v21  ;;  %v2367_v35 = vshrl.u32 %v6602_v49, 16  ;;  %v2390_v6 = vand.u32 65535, %v2360_v19  ;;  %v2391_v23 = vshrl.u32 %v2360_v19, 16 }
  0xbd   :  { %v6634_v8 = vor.u32 %v6557_v7, %v6513_v62  ;;  %v2569_v13 = vsel %vm2567_vm8, %v2568_v10, %v2564_v42  ;;  %v2368_v24 = vand.u32 65535, %v2364_v4  ;;  %v2369_v54 = vshrl.u32 %v2364_v4, 16 }
  0xbe   :  { %v1573_v37 = vor.u32 %v6561_v33, %v6518_v56  ;;  %v2570_v39 = vadd.s32 %v2569_v13, %v2565_v52  ;;  %v2393_v48 = vmul.u32 %v2391_v23, %v2366_v14  ;;  %v2394_v31 = vmul.u32 %v2390_v6, %v2367_v35 }
  0xbf   :  { %9495 = vst [vmem:[#allocation51_spill] sm:$0xff] %v6634_v8  ;;  %v1399_v53 = vsel %vm1398_vm15, %v6520_v26, 0  ;;  %v2333_v34 = vshrl.u32 %v9489_v55, %v6364_v22  ;;  %v2371_v51 = vmul.u32 %v2369_v54, %v2366_v14  ;;  %v2372_v5 = vmul.u32 %v2368_v24, %v2367_v35 }
  0xc0   :  { %v2571_v62 = vadd.s32 536870912, %v2570_v39  ;;  %v2354_v7 = vsel %vm2352_vm0, %v2342_v43, 2102212464  ;;  %v2392_v42 = vmul.u32 %v2390_v6, %v2366_v14  ;;  %v2396_v2 = vshll.u32 %v2393_v48, 16 }
  0xc1   :  { %v2370_v21 = vmul.u32 %v2368_v24, %v2366_v14  ;;  %v2373_v56 = vmul.u32 %v2369_v54, %v2367_v35  ;;  %v2374_v33 = vshll.u32 %v2371_v51, 16  ;;  %v2395_v19 = vmul.u32 %v2391_v23, %v2367_v35 }
  0xc2   :  { %v6645_v52 = vshrl.u32 %v2571_v62, 30  ;;  %v2376_v10 = vshll.u32 %v2372_v5, 16  ;;  %v2398_v47 = vshll.u32 %v2394_v31, 16  ;;  %vm2400_vm9 = vc.u32 %v2392_v42, %v2396_v2 }
  0xc3   :  { %vm1577_vm11 = vcmp.lt.s32.totalorder %v6502_v3, 4  ;;  %vm2378_vm12 = vc.u32 %v2370_v21, %v2374_v33  ;;  %v2380_v22 = vadd.s32 %v2374_v33, %v2370_v21  ;;  %v2401_v26 = vsel %vm2400_vm9, 1, %v9492_v58 }
  0xc4   :  { %v2402_v4 = vadd.s32 %v2396_v2, %v2392_v42  ;;  %v9496_v43 = vand.u32 2139095040, %v6506_v59  ;;  %v2573_v14 = vshll.u32 %v6645_v52, 30  ;;  %v2379_v35 = vsel %vm2378_vm12, 1, %v9492_v58 }
  0xc5   :  { %v2403_v23 = vadd.s32 %v2401_v26, %v2395_v19  ;;  %v2353_v13 = vsel %vm2349_vm3, %v2333_v34, %v6585_v29  ;;  %v2381_v24 = vadd.s32 %v2379_v35, %v2373_v56  ;;  %vm2382_vm0 = vc.u32 %v2380_v22, %v2376_v10 }
  0xc6   :  { %v6651_v6 = vshrl.u32 %v9496_v43, 23  ;;  %vm2404_vm15 = vc.u32 %v2402_v4, %v2398_v47  ;;  %v2574_v54 = vsub.s32 %v2570_v39, %v2573_v14  ;;  %v2355_v62 = vsel %vm2351_vm6, %v2339_v15, %v2354_v7 }
  0xc7   :  { %v2383_v42 = vsel %vm2382_vm0, 1, %v9492_v58  ;;  %v2405_v2 = vsel %vm2404_vm15, 1, %v9492_v58  ;;  %v2375_v21 = vshrl.u32 %v2371_v51, 16  ;;  %v2397_v43 = vshrl.u32 %v2393_v48, 16 }
  0xc8   :  { %v2385_v33 = vadd.s32 %v2383_v42, %v2381_v24  ;;  %v2407_v59 = vadd.s32 %v2405_v2, %v2403_v23  ;;  %v6662_v19 = vshrl.u32 %v1399_v53, 5  ;;  %v6664_v26 = vand.u32 31, %v1399_v53 }
  0xc9   :  { %vm2575_vm3 = vcmp.lt.s32.totalorder %v2574_v54, 0  ;;  %v2576_v29 = vsub.s32 0, %v2574_v54  ;;  %v2377_v34 = vshrl.u32 %v2372_v5, 16  ;;  %v2399_v39 = vshrl.u32 %v2394_v31, 16 }
  0xca   :  { %9497 = vst [vmem:[#allocation52_spill] sm:$0xff] %v6662_v19  ;;  %v2386_v56 = vadd.s32 %v2385_v33, %v2375_v21  ;;  %v2408_v10 = vadd.s32 %v2407_v59, %v2397_v43  ;;  %vm1088_vm6 = vcmp.gt.s32.totalorder %v6567_v61, 0  ;;  %v2356_v7 = vsel %vm2350_vm4, %v2353_v13, %v2355_v62 }
  0xcb   :  { %9498 = vst [vmem:[#allocation53_spill] sm:$0xff] %v6664_v26  ;;  %v2577_v15 = vsel %vm2575_vm3, %v2576_v29, %v2574_v54  ;;  %v9425_v51 = vand.u32 2147483647, %v6201_v46  ;;  %vm933_vm8 = vcmp.gt.s32.totalorder %v6615_v38, 0  ;;  %v6676_v5 = vsel %vm1577_vm11, %v6634_v8, 920167782 }
  0xcc   :  { %v2578_v48 = vclz %v2577_v15  ;;  %v6671_v22 = vadd.s32 %v2386_v56, %v2377_v34  ;;  %v2409_v53 = vadd.s32 %v2408_v10, %v2399_v39  ;;  %9499 = vst [vmem:[#allocation54_spill] sm:$0xff] %v6676_v5  ;;  %v6680_v59 = vsel %vm1577_vm11, %v1573_v37, 1326507024 }
  0xcd   :  { %9500 = vst [vmem:[#allocation55_spill] sm:$0xff] %v6680_v59  ;;  %vm2474_vm9 = vcmp.lt.s32.totalorder %v6198_v45, 0  ;;  %v6683_v44 = vadd.s32 %v2402_v4, %v2398_v47  ;;  %v2566_v31 = vadd.s32 %v6595_v25, %v6598_v11  ;;  %v2596_v35 = vsub.s32 4, %v6645_v52 }
  0xce   :  { %v5908_v14 = vadd.s32 4294967294, %v2578_v48  ;;  %v2410_v23 = vmul.u32 %v6602_v49, %v2356_v7  ;;  %v2413_v13 = vadd.s32 1, %v2409_v53  ;;  %v2169_v37 = vand.u32 8388607, %v9425_v51 }
  0xcf   :  { %vm2412_vm4 = vc.u32 %v6671_v22, %v6683_v44  ;;  %v2179_v24 = vshll.u32 %v9489_v55, %v6267_v57  ;;  %v2180_v47 = vshrl.u32 %v9493_v32, %v6295_v9  ;;  %v2182_v25 = vshll.u32 %v9493_v32, %v6267_v57 }
  0xd0   :  { %vm5909_vm12 = vcmp.lt.s32.totalorder %v5908_v14, 0  ;;  %v2183_v11 = vshrl.u32 %v9494_v20, %v6295_v9  ;;  %v2414_v4 = vsel %vm2412_vm4, %v2413_v13, %v2409_v53  ;;  %v2185_v62 = vshll.u32 %v9494_v20, %v6267_v57 }
  0xd1   :  { %v2581_v49 = vsel %vm5909_vm12, 0, %v5908_v14  ;;  %v2186_v42 = vshrl.u32 %v9471_v27, %v6295_v9  ;;  %v2597_v33 = vsel %vm2474_vm9, %v2596_v35, %v6645_v52  ;;  %v2415_v43 = vadd.s32 %v2414_v4, %v2410_v23 }
  0xd2   :  { %v2582_v2 = vsub.s32 32, %v2581_v49  ;;  %v2586_v21 = vsub.s32 4294967266, %v2581_v49  ;;  %v1089_v29 = vsel %vm1088_vm6, %v6567_v61, 0  ;;  %v9501_v34 = vand.u32 2147483647, %v6198_v45 }
  0xd3   :  { %v6717_v57 = vor.u32 %v2183_v11, %v2182_v25  ;;  %v2187_v39 = vor.u32 %v2186_v42, %v2185_v62  ;;  %v2583_v10 = vshll.u32 %v2574_v54, %v2581_v49  ;;  %v2416_v48 = vadd.s32 536870912, %v2415_v43 }
  0xd4   :  { %vm6713_vm0 = vcmp.le.f32.partialorder %v9501_v34, 0.7853982  ;;  %v2584_v15 = vshrl.u32 %v2566_v31, %v2582_v2  ;;  %v2587_v7 = vadd.s32 127, %v2586_v21  ;;  %v2170_v53 = vor.u32 8388608, %v2169_v37 }
  0xd5   :  { %v2599_v52 = vsel %vm6713_vm0, 0, %v2597_v33  ;;  %v2181_v14 = vor.u32 %v2180_v47, %v2179_v24  ;;  %vm2194_vm15 = vcmp.lt.s32.totalorder %v6336_v50, 1  ;;  %v6722_v23 = vshrl.u32 %v2416_v48, 30 }
  0xd6   :  { %v2585_v61 = vor.u32 %v2584_v15, %v2583_v10  ;;  %v2588_v35 = vshll.u32 %v2587_v7, 23  ;;  %vm2196_vm3 = vcmp.lt.s32.totalorder %v6336_v50, 3  ;;  %v6726_v13 = vsub.s32 32, %v6664_v26 }
  0xd7   :  { %v6731_v54 = vsel %vm933_vm8, %v6615_v38, 0  ;;  %v2206_v31 = vsel %vm2194_vm15, %v6717_v57, %v2187_v39  ;;  %v2208_v37 = vsel %vm2196_vm3, %v6350_v18, %v6415_v16  ;;  %v6742_v24 = vshll.u32 %v9471_v27, %v6664_v26 }
  0xd8   :  { %v2589_v47 = vor.u32 4788187, %v2588_v35  ;;  %v2418_v25 = vshll.u32 %v6722_v23, 30  ;;  %vm2195_vm6 = vcmp.lt.s32.totalorder %v6336_v50, 2  ;;  %v6748_v38 = vshll.u32 %v9475_v17, %v6664_v26 }
  0xd9   :  { %v2616_v11 = vadd.s32 3, %v2599_v52  ;;  %v2209_v49 = vsel %vm2195_vm6, %v2206_v31, %v2208_v37  ;;  %v6752_v4 = vshll.u32 %v2170_v53, 8  ;;  %v2592_v18 = vcvt.s32.f32 %v2585_v61 }
  0xda   :  { %v2590_v16 = vand.u32 2147483647, %v2589_v47  ;;  %v2419_v62 = vsub.s32 %v2415_v43, %v2418_v25  ;;  %v2202_v42 = vsel %vm2194_vm15, %v2181_v14, %v6717_v57  ;;  %v2204_v2 = vsel %vm2196_vm3, %v2187_v39, %v6383_v28 }
  0xdb   :  { %v2211_v21 = vand.u32 65535, %v6752_v4  ;;  %v2213_v33 = vand.u32 65535, %v2209_v49  ;;  %v2214_v34 = vshrl.u32 %v2209_v49, 16  ;;  %v6761_v10 = vshrl.u32 %v1089_v29, 5 }
  0xdc   :  { %v2593_v15 = vmul.f32 %v2592_v18, %v2590_v16  ;;  %vm2420_vm8 = vcmp.lt.s32.totalorder %v2419_v62, 0  ;;  %v2421_v7 = vsub.s32 0, %v2419_v62  ;;  %v6763_v48 = vand.u32 31, %v1089_v29 }
  0xdd   :  { %9504 = vst [vmem:[#allocation56_spill] sm:$0xff] %v6761_v10  ;;  %v6766_v43 = vshrl.u32 %v6731_v54, 5  ;;  %v2212_v53 = vshrl.u32 %v6752_v4, 16  ;;  %v6769_v61 = vmul.u32 %v2214_v34, %v2211_v21  ;;  %v6771_v28 = vand.u32 3, %v2599_v52 }
  0xde   :  { %v2594_v35 = vxor.u32 2147483648, %v2593_v15  ;;  %v2422_v31 = vsel %vm2420_vm8, %v2421_v7, %v2419_v62  ;;  %v2205_v37 = vsel %vm2195_vm6, %v2202_v42, %v2204_v2  ;;  %v6775_v47 = vand.u32 3, %v2616_v11 }
  0xdf   :  { %9505 = vst [vmem:[#allocation57_spill] sm:$0xff] %v6766_v43  ;;  %v2423_v25 = vclz %v2422_v31  ;;  %v2178_v29 = vshrl.u32 %v9489_v55, %v6295_v9  ;;  %v6779_v49 = vmul.u32 %v2213_v33, %v2212_v53  ;;  %v2411_v18 = vadd.s32 %v6683_v44, %v6671_v22 }
  0xe0   :  { %v2595_v16 = vsel %vm2474_vm9, %v2594_v35, %v2593_v15  ;;  %v2215_v52 = vmul.u32 %v2213_v33, %v2211_v21  ;;  %v2219_v7 = vshll.u32 %v6769_v61, 16  ;;  %v2199_v9 = vsel %vm2197_vm13, %v2187_v39, 2102212464 }
  0xe1   :  { %v6789_v11 = vsel %vm6713_vm0, %v6198_v45, %v2595_v16  ;;  %v5905_v42 = vadd.s32 4294967294, %v2423_v25  ;;  %v2235_v2 = vand.u32 65535, %v2205_v37  ;;  %v2218_v15 = vmul.u32 %v2214_v34, %v2212_v53 }
  0xe2   :  { %v2600_v31 = vmul.f32 %v6789_v11, %v6789_v11  ;;  %vm2223_vm9 = vc.u32 %v2215_v52, %v2219_v7  ;;  %v2236_v35 = vshrl.u32 %v2205_v37, 16  ;;  %v2221_v22 = vshll.u32 %v6779_v49, 16 }
  0xe3   :  { %vm5906_vm4 = vcmp.lt.s32.totalorder %v5905_v42, 0  ;;  %v2224_v44 = vsel %vm2223_vm9, 1, %v9492_v58  ;;  %v2225_v33 = vadd.s32 %v2219_v7, %v2215_v52  ;;  %v2198_v25 = vsel %vm2194_vm15, %v2178_v29, %v2181_v14 }
  0xe4   :  { %v2601_v56 = vmul.f32 -0.001358992, %v2600_v31  ;;  %v2608_v16 = vmul.f32 -0.00019511016, %v2600_v31  ;;  %v2426_v51 = vsel %vm5906_vm4, 0, %v5905_v42  ;;  %vm2319_vm13 = vcmp.lt.s32.totalorder %v6213_v63, 0 }
  0xe5   :  { %v2427_v39 = vsub.s32 32, %v2426_v51  ;;  %v2431_v43 = vsub.s32 4294967266, %v2426_v51  ;;  %v2226_v10 = vadd.s32 %v2224_v44, %v2218_v15  ;;  %vm2227_vm12 = vc.u32 %v2225_v33, %v2221_v22 }
  0xe6   :  { %v2602_v34 = vadd.f32 0.041655596, %v2601_v56  ;;  %v2609_v37 = vadd.f32 0.008332121, %v2608_v16  ;;  %v2228_v26 = vsel %vm2227_vm12, 1, %v9492_v58  ;;  %v2238_v5 = vmul.u32 %v2236_v35, %v2211_v21 }
  0xe7   :  { %v2428_v8 = vshll.u32 %v2419_v62, %v2426_v51  ;;  %v2429_v59 = vshrl.u32 %v2411_v18, %v2427_v39  ;;  %v2432_v52 = vadd.s32 127, %v2431_v43  ;;  %v2239_v7 = vmul.u32 %v2235_v2, %v2212_v53 }
  0xe8   :  { %v2603_v3 = vmul.f32 %v2602_v34, %v2600_v31  ;;  %v2610_v42 = vmul.f32 %v2609_v37, %v2600_v31  ;;  %v9506_v19 = vand.u32 2147483647, %v6213_v63  ;;  %v2200_v29 = vsel %vm2196_vm3, %v6717_v57, %v2199_v9 }
  0xe9   :  { %v2241_v15 = vshll.u32 %v2238_v5, 16  ;;  %v2430_v22 = vor.u32 %v2429_v59, %v2428_v8  ;;  %v2433_v44 = vshll.u32 %v2432_v52, 23  ;;  %v2230_v33 = vadd.s32 %v2228_v26, %v2226_v10 }
  0xea   :  { %vm6803_vm0 = vcmp.le.f32.partialorder %v9506_v19, 0.7853982  ;;  %v2237_v51 = vmul.u32 %v2235_v2, %v2211_v21  ;;  %v2604_v62 = vadd.f32 -0.4999988, %v2603_v3  ;;  %v2611_v43 = vadd.f32 -0.16666654, %v2610_v42 }
  0xeb   :  { %vm5090_vm15 = vcmp.eq.s32.totalorder %v6771_v28, 2  ;;  %vm2622_vm8 = vcmp.eq.s32.totalorder %v6775_v47, 2  ;;  %v2441_v19 = vsub.s32 4, %v6722_v23  ;;  %v2220_v18 = vshrl.u32 %v6769_v61, 16 }
  0xec   :  { %vm5087_vm9 = vcmp.eq.s32.totalorder %v6771_v28, 0  ;;  %vm2619_vm4 = vcmp.eq.s32.totalorder %v6775_v47, 0  ;;  %v2434_v57 = vor.u32 4788187, %v2433_v44  ;;  %v2240_v9 = vmul.u32 %v2236_v35, %v2212_v53 }
  0xed   :  { %v2243_v8 = vshll.u32 %v2239_v7, 16  ;;  %vm2245_vm3 = vc.u32 %v2237_v51, %v2241_v15  ;;  %v2605_v26 = vmul.f32 %v2604_v62, %v2600_v31  ;;  %v2612_v59 = vmul.f32 %v2611_v43, %v2600_v31 }
  0xee   :  { %vm5086_vm12 = vcmp.lt.s32.totalorder %v6771_v28, 2  ;;  %vm2618_vm2 = vcmp.lt.s32.totalorder %v6775_v47, 2  ;;  %v2246_v3 = vsel %vm2245_vm3, 1, %v9492_v58  ;;  %v2247_v21 = vadd.s32 %v2241_v15, %v2237_v51 }
  0xef   :  { %vm2615_vm14 = vweird.f32 %v6198_v45  ;;  %v2435_v10 = vand.u32 2147483647, %v2434_v57  ;;  %v2437_v61 = vcvt.s32.f32 %v2430_v22  ;;  %v2231_v2 = vadd.s32 %v2230_v33, %v2220_v18 }
  0xf0   :  { %v2248_v56 = vadd.s32 %v2246_v3, %v2240_v9  ;;  %v2606_v16 = vadd.f32 1.0, %v2605_v26  ;;  %v2613_v39 = vadd.f32 1.0, %v2612_v59  ;;  %v2442_v53 = vsel %vm2319_vm13, %v2441_v19, %v6722_v23 }
  0xf1   :  { %vm2249_vm10 = vc.u32 %v2247_v21, %v2243_v8  ;;  %v2438_v31 = vmul.f32 %v2437_v61, %v2435_v10  ;;  %v2201_v35 = vsel %vm2195_vm6, %v2198_v25, %v2200_v29  ;;  %v2222_v34 = vshrl.u32 %v6779_v49, 16 }
  0xf2   :  { %v2250_v37 = vsel %vm2249_vm10, 1, %v9492_v58  ;;  %v2614_v52 = vmul.f32 %v2613_v39, %v6789_v11  ;;  %v2623_v42 = vxor.u32 2147483648, %v2606_v16  ;;  %v2242_v15 = vshrl.u32 %v2238_v5, 16 }
  0xf3   :  { %v2252_v22 = vadd.s32 %v2250_v37, %v2248_v56  ;;  %v2439_v44 = vxor.u32 2147483648, %v2438_v31  ;;  %v2444_v33 = vsel %vm6803_vm0, 0, %v2442_v53  ;;  %v6830_v51 = vadd.s32 %v2231_v2, %v2222_v34 }
  0xf4   :  { %v2244_v23 = vshrl.u32 %v2239_v7, 16  ;;  %v2620_v62 = vxor.u32 2147483648, %v2614_v52  ;;  %v2255_v50 = vmul.u32 %v6752_v4, %v2201_v35  ;;  %v2007_v49 = vand.u32 2147483647, %v6209_v60 }
  0xf5   :  { %v2253_v43 = vadd.s32 %v2252_v22, %v2242_v15  ;;  %v5092_v25 = vsel %vm5090_vm15, %v2623_v42, %v2614_v52  ;;  %v2624_v5 = vsel %vm2622_vm8, %v2623_v42, %v2614_v52  ;;  %v2440_v11 = vsel %vm2319_vm13, %v2439_v44, %v2438_v31 }
  0xf6   :  { %v6840_v29 = vadd.s32 %v2247_v21, %v2243_v8  ;;  %v5089_v7 = vsel %vm5087_vm9, %v2606_v16, %v2620_v62  ;;  %v2621_v19 = vsel %vm2619_vm4, %v2606_v16, %v2620_v62  ;;  %v2443_v4 = vsel %vm6803_vm0, %v6213_v63, %v2440_v11 }
  0xf7   :  { %v2254_v18 = vadd.s32 %v2253_v43, %v2244_v23  ;;  %v5093_v57 = vsel %vm5086_vm12, %v5089_v7, %v5092_v25  ;;  %v2625_v9 = vsel %vm2618_vm2, %v2621_v19, %v2624_v5  ;;  %v2445_v26 = vmul.f32 %v2443_v4, %v2443_v4 }
  0xf8   :  { %vm2257_vm10 = vc.u32 %v6830_v51, %v6840_v29  ;;  %v5094_v8 = vsel %vm2615_vm14, nan, %v5093_v57  ;;  %v2626_v59 = vsel %vm2615_vm14, nan, %v2625_v9  ;;  %v2014_v14 = vand.u32 8388607, %v2007_v49 }
  0xf9   :  { %v2258_v3 = vadd.s32 1, %v2254_v18  ;;  %5095 = vmatpush.msra.mxu0 %v5094_v8  ;;  %5124 = vmatpush.msra.mxu1 %v2626_v59  ;;  %v2446_v28 = vmul.f32 -0.001358992, %v2445_v26  ;;  %v2453_v21 = vmul.f32 -0.00019511016, %v2445_v26  ;;  %v2027_v47 = vshll.u32 %v9493_v32, %v6325_v41 }
  0xfa   :  { %v2028_v10 = vshrl.u32 %v9494_v20, %v6355_v1  ;;  %v6865_v61 = vand.u32 3, %v2444_v33  ;;  %v2030_v45 = vshll.u32 %v9494_v20, %v6325_v41  ;;  %v2031_v56 = vshrl.u32 %v9471_v27, %v6355_v1 }
  0xfb   :  { %v2259_v2 = vsel %vm2257_vm10, %v2258_v3, %v2254_v18  ;;  %v2447_v16 = vadd.f32 0.041655596, %v2446_v28  ;;  %v2454_v39 = vadd.f32 0.008332121, %v2453_v21  ;;  %v2015_v35 = vor.u32 8388608, %v2014_v14 }
  0xfc   :  { %v2260_v53 = vadd.s32 %v2259_v2, %v2255_v50  ;;  %v6871_v31 = vor.u32 %v2028_v10, %v2027_v47  ;;  %v2025_v34 = vshrl.u32 %v9493_v32, %v6355_v1  ;;  %v6875_v37 = vor.u32 %v2031_v56, %v2030_v45 }
  0xfd   :  { %vm2039_vm14 = vcmp.lt.s32.totalorder %v6411_v12, 1  ;;  %v2448_v52 = vmul.f32 %v2447_v16, %v2445_v26  ;;  %v2455_v42 = vmul.f32 %v2454_v39, %v2445_v26  ;;  %vm2041_vm2 = vcmp.lt.s32.totalorder %v6411_v12, 3 }
  0xfe   :  { %v2261_v15 = vadd.s32 536870912, %v2260_v53  ;;  %v2461_v22 = vadd.s32 3, %v2444_v33  ;;  %v2024_v44 = vshll.u32 %v9489_v55, %v6325_v41  ;;  %v2051_v23 = vsel %vm2039_vm14, %v6871_v31, %v6875_v37 }
  0xff   :  { %v2053_v62 = vsel %vm2041_vm2, %v6417_v36, %v6454_v30  ;;  %v2449_v43 = vadd.f32 -0.4999988, %v2448_v52  ;;  %v2456_v50 = vadd.f32 -0.16666654, %v2455_v42  ;;  %vm2040_vm6 = vcmp.lt.s32.totalorder %v6411_v12, 2 }
 0x100   :  { %v6889_v25 = vshrl.u32 %v2261_v15, 30  ;;  %v6893_v33 = vand.u32 31, %v6731_v54  ;;  %v2026_v41 = vor.u32 %v2025_v34, %v2024_v44  ;;  %v2054_v5 = vsel %vm2040_vm6, %v2051_v23, %v2053_v62 }
 0x101   :  { %v6897_v11 = vshll.u32 %v2015_v35, 8  ;;  %v2450_v7 = vmul.f32 %v2449_v43, %v2445_v26  ;;  %v2457_v19 = vmul.f32 %v2456_v50, %v2445_v26  ;;  %vm4932_vm13 = vcmp.lt.s32.totalorder %v6865_v61, 2 }
 0x102   :  { %vm4933_vm0 = vcmp.eq.s32.totalorder %v6865_v61, 0  ;;  %v2263_v36 = vshll.u32 %v6889_v25, 30  ;;  %vm2460_vm15 = vweird.f32 %v6213_v63  ;;  %vm4936_vm8 = vcmp.eq.s32.totalorder %v6865_v61, 2 }
 0x103   :  { %v2462_v30 = vand.u32 3, %v2461_v22  ;;  %v6905_v54 = vand.u32 65535, %v6897_v11  ;;  %v2059_v18 = vshrl.u32 %v2054_v5, 16  ;;  %v2451_v57 = vadd.f32 1.0, %v2450_v7 }
 0x104   :  { %v2458_v9 = vadd.f32 1.0, %v2457_v19  ;;  %v2264_v8 = vsub.s32 %v2260_v53, %v2263_v36  ;;  %v2023_v26 = vshrl.u32 %v9489_v55, %v6355_v1  ;;  %v2047_v59 = vsel %vm2039_vm14, %v2026_v41, %v6871_v31 }
 0x105   :  { %v2049_v3 = vsel %vm2041_vm2, %v6875_v37, %v6450_v0  ;;  %v2058_v14 = vand.u32 65535, %v2054_v5  ;;  %v6917_v28 = vmul.u32 %v2059_v18, %v6905_v54  ;;  %v2468_v47 = vxor.u32 2147483648, %v2451_v57 }
 0x106   :  { %v2459_v21 = vmul.f32 %v2458_v9, %v2443_v4  ;;  %vm2265_vm9 = vcmp.lt.s32.totalorder %v2264_v8, 0  ;;  %v2266_v10 = vsub.s32 0, %v2264_v8  ;;  %vm2463_vm4 = vcmp.lt.s32.totalorder %v2462_v30, 2 }
 0x107   :  { %vm2464_vm3 = vcmp.eq.s32.totalorder %v2462_v30, 0  ;;  %vm2467_vm12 = vcmp.eq.s32.totalorder %v2462_v30, 2  ;;  %vm2164_vm10 = vcmp.lt.s32.totalorder %v6201_v46, 0  ;;  %v2057_v1 = vshrl.u32 %v6897_v11, 16 }
 0x108   :  { %v2465_v2 = vxor.u32 2147483648, %v2459_v21  ;;  %v2256_v45 = vadd.s32 %v6840_v29, %v6830_v51  ;;  %v2267_v0 = vsel %vm2265_vm9, %v2266_v10, %v2264_v8  ;;  %v2043_v56 = vsel %vm2039_vm14, %v2023_v26, %v2026_v41 }
 0x109   :  { %v2268_v16 = vclz %v2267_v0  ;;  %v2050_v4 = vsel %vm2040_vm6, %v2047_v59, %v2049_v3  ;;  %v6927_v39 = vmul.u32 %v2058_v14, %v2057_v1  ;;  %v2064_v53 = vshll.u32 %v6917_v28, 16 }
 0x10a   :  { %v4935_v35 = vsel %vm4933_vm0, %v2451_v57, %v2465_v2  ;;  %v4938_v34 = vsel %vm4936_vm8, %v2468_v47, %v2459_v21  ;;  %v2466_v52 = vsel %vm2464_vm3, %v2451_v57, %v2465_v2  ;;  %v2469_v51 = vsel %vm2467_vm12, %v2468_v47, %v2459_v21 }
 0x10b   :  { %v4939_v29 = vsel %vm4932_vm13, %v4935_v35, %v4938_v34  ;;  %v2470_v42 = vsel %vm2463_vm4, %v2466_v52, %v2469_v51  ;;  %v5902_v15 = vadd.s32 4294967294, %v2268_v16  ;;  %v2060_v22 = vmul.u32 %v2058_v14, %v6905_v54  ;;  %v9512_v35 = vld [vmem:[#allocation5_spill] sm:$0xff] }
 0x10c   :  { %v4940_v44 = vsel %vm2460_vm15, nan, %v4939_v29  ;;  %v2471_v23 = vsel %vm2460_vm15, nan, %v2470_v42  ;;  %v2286_v62 = vsub.s32 4, %v6889_v25  ;;  %v2044_v43 = vsel %vm2042_vm1, %v6875_v37, 2102212464 }
 0x10d   :  { %5096 = vmatpush.msra.mxu0 %v4940_v44  ;;  %5125 = vmatpush.msra.mxu1 %v2471_v23  ;;  %vm5903_vm14 = vcmp.lt.s32.totalorder %v5902_v15, 0  ;;  %v2063_v61 = vmul.u32 %v2059_v18, %v2057_v1  ;;  %v2066_v50 = vshll.u32 %v6927_v39, 16  ;;  %vm2068_vm13 = vc.u32 %v2060_v22, %v2064_v53 }
 0x10e   :  { %v2271_v41 = vsel %vm5903_vm14, 0, %v5902_v15  ;;  %v2069_v5 = vsel %vm2068_vm13, 1, %v9492_v58  ;;  %v2070_v7 = vadd.s32 %v2064_v53, %v2060_v22  ;;  %v2080_v19 = vand.u32 65535, %v2050_v4 }
 0x10f   :  { %v2272_v63 = vsub.s32 32, %v2271_v41  ;;  %v2276_v36 = vsub.s32 4294967266, %v2271_v41  ;;  %v2045_v30 = vsel %vm2041_vm2, %v6871_v31, %v2044_v43  ;;  %v2071_v57 = vadd.s32 %v2069_v5, %v2063_v61  ;;  %v9514_v61 = vld [vmem:[#allocation12_spill] sm:$0xff] }
 0x110   :  { %v2273_v37 = vshll.u32 %v2264_v8, %v2271_v41  ;;  %v2287_v18 = vsel %vm2164_vm10, %v2286_v62, %v6889_v25  ;;  %vm2072_vm1 = vc.u32 %v2070_v7, %v2066_v50  ;;  %v2081_v9 = vshrl.u32 %v2050_v4, 16  ;;  %v9513_v62 = vld [vmem:[#allocation9_spill] sm:$0xff] }
 0x111   :  { %v2274_v26 = vshrl.u32 %v2256_v45, %v2272_v63  ;;  %v2277_v59 = vadd.s32 127, %v2276_v36  ;;  %v2073_v3 = vsel %vm2072_vm1, 1, %v9492_v58  ;;  %v2084_v14 = vmul.u32 %v2080_v19, %v2057_v1 }
 0x112   :  { %v6957_v21 = vshrl.u32 %v9475_v17, %v6726_v13  ;;  %v9509_v47 = vand.u32 2147483647, %v6201_v46  ;;  %v2075_v8 = vadd.s32 %v2073_v3, %v2071_v57  ;;  %v2083_v25 = vmul.u32 %v2081_v9, %v6905_v54 }
 0x113   :  { %v2275_v10 = vor.u32 %v2274_v26, %v2273_v37  ;;  %v2278_v2 = vshll.u32 %v2277_v59, 23  ;;  %v6972_v0 = vsel %vm2040_vm6, %v2043_v56, %v2045_v30  ;;  %v2065_v16 = vshrl.u32 %v6917_v28, 16  ;;  %v9515_v59 = vld [vmem:[#allocation14_spill] sm:$0xff] }
 0x114   :  { %vm6961_vm2 = vcmp.le.f32.partialorder %v9509_v47, 0.7853982  ;;  %v2082_v4 = vmul.u32 %v2080_v19, %v6905_v54  ;;  %v2086_v53 = vshll.u32 %v2083_v25, 16  ;;  %v9438_v34 = vand.u32 2147483647, %v9512_v35 }
 0x115   :  { %v6968_v45 = vsel %vm6961_vm2, 0, %v2287_v18  ;;  %v2279_v52 = vor.u32 4788187, %v2278_v2  ;;  %v2067_v51 = vshrl.u32 %v6927_v39, 16  ;;  %v2085_v29 = vmul.u32 %v2081_v9, %v2057_v1  ;;  %v9517_v2 = vld [vmem:[#allocation18_spill] sm:$0xff] }
 0x116   :  { %v2088_v42 = vshll.u32 %v2084_v14, 16  ;;  %v2076_v15 = vadd.s32 %v2075_v8, %v2065_v16  ;;  %v2089_v22 = vshrl.u32 %v2084_v14, 16  ;;  %vm2090_vm0 = vc.u32 %v2082_v4, %v2086_v53 }
 0x117   :  { %v2092_v44 = vadd.s32 %v2086_v53, %v2082_v4  ;;  %v2280_v23 = vand.u32 2147483647, %v2279_v52  ;;  %v2282_v12 = vcvt.s32.f32 %v2275_v10  ;;  %v2091_v56 = vsel %vm2090_vm0, 1, %v9492_v58  ;;  %v9516_v10 = vld [vmem:[#allocation24_spill] sm:$0xff] }
 0x118   :  { %v1859_v28 = vand.u32 8388607, %v9438_v34  ;;  %v2093_v54 = vadd.s32 %v2091_v56, %v2085_v29  ;;  %v1869_v43 = vshll.u32 %v9489_v55, %v9513_v62  ;;  %v1870_v1 = vshrl.u32 %v9493_v32, %v9514_v61 }
 0x119   :  { %vm2094_vm6 = vc.u32 %v2092_v44, %v2088_v42  ;;  %v2283_v39 = vmul.f32 %v2282_v12, %v2280_v23  ;;  %v2087_v50 = vshrl.u32 %v2083_v25, 16  ;;  %v1872_v5 = vshll.u32 %v9493_v32, %v9513_v62  ;;  %v9519_v12 = vld [vmem:[#allocation22_spill] sm:$0xff] }
 0x11a   :  { %v2095_v41 = vsel %vm2094_vm6, 1, %v9492_v58  ;;  %v6988_v7 = vadd.s32 %v2076_v15, %v2067_v51  ;;  %v6990_v19 = vadd.s32 %v2092_v44, %v2088_v42  ;;  %v1860_v36 = vor.u32 8388608, %v1859_v28 }
 0x11b   :  { %v2097_v63 = vadd.s32 %v2095_v41, %v2093_v54  ;;  %v2284_v30 = vxor.u32 2147483648, %v2283_v39  ;;  %v1873_v57 = vshrl.u32 %v9494_v20, %v9514_v61  ;;  %v1875_v37 = vshll.u32 %v9494_v20, %v9513_v62 }
 0x11c   :  { %v1876_v18 = vshrl.u32 %v9471_v27, %v9514_v61  ;;  %v6998_v26 = vor.u32 %v1870_v1, %v1869_v43  ;;  %vm1884_vm15 = vcmp.lt.s32.totalorder %v9515_v59, 1  ;;  %vm1886_vm8 = vcmp.lt.s32.totalorder %v9515_v59, 3 }
 0x11d   :  { %v2098_v9 = vadd.s32 %v2097_v63, %v2087_v50  ;;  %v2285_v3 = vsel %vm2164_vm10, %v2284_v30, %v2283_v39  ;;  %v7004_v14 = vor.u32 %v1873_v57, %v1872_v5  ;;  %vm1885_vm9 = vcmp.lt.s32.totalorder %v9515_v59, 2 }
 0x11e   :  { %v1877_v47 = vor.u32 %v1876_v18, %v1875_v37  ;;  %v7010_v8 = vsel %vm6961_vm2, %v6201_v46, %v2285_v3  ;;  %v1898_v16 = vsel %vm1886_vm8, %v9517_v2, %v9516_v10  ;;  %v7016_v4 = vshll.u32 %v1860_v36, 8 }
 0x11f   :  { %v2099_v25 = vadd.s32 %v2098_v9, %v2089_v22  ;;  %v9518_v53 = vmov 1326507024   ;;  %v2290_v51 = vmul.f32 %v7010_v8, %v7010_v8  ;;  %v2306_v29 = vadd.s32 3, %v6968_v45 }
 0x120   :  { %v7020_v52 = vshrl.u32 %v9518_v53, %v6726_v13  ;;  %vm2102_vm4 = vc.u32 %v6988_v7, %v6990_v19  ;;  %v2100_v31 = vmul.u32 %v6897_v11, %v6972_v0  ;;  %v1892_v15 = vsel %vm1884_vm15, %v6998_v26, %v7004_v14 }
 0x121   :  { %v2103_v42 = vadd.s32 1, %v2099_v25  ;;  %v1896_v22 = vsel %vm1884_vm15, %v7004_v14, %v1877_v47  ;;  %v2291_v44 = vmul.f32 -0.001358992, %v2290_v51  ;;  %v2298_v23 = vmul.f32 -0.00019511016, %v2290_v51 }
 0x122   :  { %v1894_v56 = vsel %vm1886_vm8, %v1877_v47, %v9519_v12  ;;  %v1899_v28 = vsel %vm1885_vm9, %v1896_v22, %v1898_v16  ;;  %v1901_v0 = vand.u32 65535, %v7016_v4  ;;  %v7043_v54 = vshrl.u32 %v7016_v4, 16 }
 0x123   :  { %v2104_v11 = vsel %vm2102_vm4, %v2103_v42, %v2099_v25  ;;  %v1903_v62 = vand.u32 65535, %v1899_v28  ;;  %v2292_v43 = vadd.f32 0.041655596, %v2291_v44  ;;  %v2299_v1 = vadd.f32 0.008332121, %v2298_v23 }
 0x124   :  { %v2105_v39 = vadd.s32 %v2104_v11, %v2100_v31  ;;  %v1904_v50 = vshrl.u32 %v1899_v28, 16  ;;  %v4777_v41 = vand.u32 3, %v6968_v45  ;;  %v2307_v5 = vand.u32 3, %v2306_v29 }
 0x125   :  { %v7048_v63 = vsel %vm1885_vm9, %v1892_v15, %v1894_v56  ;;  %v7051_v36 = vmul.u32 %v1903_v62, %v7043_v54  ;;  %v2293_v30 = vmul.f32 %v2292_v43, %v2290_v51  ;;  %v2300_v57 = vmul.f32 %v2299_v1, %v2290_v51 }
 0x126   :  { %v2106_v37 = vadd.s32 536870912, %v2105_v39  ;;  %v7053_v18 = vmul.u32 %v1904_v50, %v1901_v0  ;;  %v7056_v9 = vsub.s32 32, %v6763_v48  ;;  %v7059_v3 = vadd.s32 1, %v6618_v40 }
 0x127   :  { %v7062_v45 = vadd.s32 4294967169, %v6651_v6  ;;  %v1905_v25 = vmul.u32 %v1903_v62, %v1901_v0  ;;  %v2294_v10 = vadd.f32 -0.4999988, %v2293_v30  ;;  %v2301_v2 = vadd.f32 -0.16666654, %v2300_v57 }
 0x128   :  { %v7064_v16 = vshrl.u32 %v2106_v37, 30  ;;  %v1909_v29 = vshll.u32 %v7053_v18, 16  ;;  %vm4779_vm3 = vcmp.eq.s32.totalorder %v4777_v41, 0  ;;  %vm4782_vm12 = vcmp.eq.s32.totalorder %v4777_v41, 2 }
 0x129   :  { %vm2309_vm10 = vcmp.eq.s32.totalorder %v2307_v5, 0  ;;  %v1911_v31 = vshll.u32 %v7051_v36, 16  ;;  %v1926_v42 = vshrl.u32 %v7048_v63, 16  ;;  %v2295_v15 = vmul.f32 %v2294_v10, %v2290_v51 }
 0x12a   :  { %v2302_v40 = vmul.f32 %v2301_v2, %v2290_v51  ;;  %vm4778_vm14 = vcmp.lt.s32.totalorder %v4777_v41, 2  ;;  %vm2308_vm13 = vcmp.lt.s32.totalorder %v2307_v5, 2  ;;  %v2108_v6 = vshll.u32 %v7064_v16, 30 }
 0x12b   :  { %v1868_v22 = vshrl.u32 %v9489_v55, %v9514_v61  ;;  %vm2305_vm1 = vweird.f32 %v6201_v46  ;;  %v1889_v44 = vsel %vm1887_vm5, %v1877_v47, 2102212464  ;;  %v1908_v23 = vmul.u32 %v1904_v50, %v7043_v54 }
 0x12c   :  { %vm1913_vm2 = vc.u32 %v1905_v25, %v1909_v29  ;;  %v1915_v12 = vadd.s32 %v1909_v29, %v1905_v25  ;;  %v2296_v56 = vadd.f32 1.0, %v2295_v15  ;;  %v2303_v28 = vadd.f32 1.0, %v2302_v40 }
 0x12d   :  { %v2109_v11 = vsub.s32 %v2105_v39, %v2108_v6  ;;  %v1925_v51 = vand.u32 65535, %v7048_v63  ;;  %vm2312_vm0 = vcmp.eq.s32.totalorder %v2307_v5, 2  ;;  %v1914_v62 = vsel %vm1913_vm2, 1, %v9492_v58 }
 0x12e   :  { %vm1917_vm6 = vc.u32 %v1915_v12, %v1911_v31  ;;  %v1928_v43 = vmul.u32 %v1926_v42, %v1901_v0  ;;  %v2304_v61 = vmul.f32 %v2303_v28, %v7010_v8  ;;  %v2313_v1 = vxor.u32 2147483648, %v2296_v56 }
 0x12f   :  { %vm2110_vm4 = vcmp.lt.s32.totalorder %v2109_v11, 0  ;;  %v2111_v30 = vsub.s32 0, %v2109_v11  ;;  %v1888_v47 = vsel %vm1884_vm15, %v1868_v22, %v6998_v26  ;;  %v1890_v39 = vsel %vm1886_vm8, %v7004_v14, %v1889_v44 }
 0x130   :  { %v1916_v50 = vadd.s32 %v1914_v62, %v1908_v23  ;;  %v1918_v63 = vsel %vm1917_vm6, 1, %v9492_v58  ;;  %v2310_v57 = vxor.u32 2147483648, %v2304_v61  ;;  %v1927_v25 = vmul.u32 %v1925_v51, %v1901_v0 }
 0x131   :  { %v2112_v37 = vsel %vm2110_vm4, %v2111_v30, %v2109_v11  ;;  %v1929_v10 = vmul.u32 %v1925_v51, %v7043_v54  ;;  %v4784_v8 = vsel %vm4782_vm12, %v2313_v1, %v2304_v61  ;;  %v1910_v29 = vshrl.u32 %v7053_v18, 16 }
 0x132   :  { %v2113_v2 = vclz %v2112_v37  ;;  %v1931_v31 = vshll.u32 %v1928_v43, 16  ;;  %v4781_v26 = vsel %vm4779_vm3, %v2296_v56, %v2310_v57  ;;  %v2311_v15 = vsel %vm2309_vm10, %v2296_v56, %v2310_v57  ;;  %v9520_v57 = vld [vmem:[#allocation6_spill] sm:$0xff] }
 0x133   :  { %v2314_v14 = vsel %vm2312_vm0, %v2313_v1, %v2304_v61  ;;  %v1920_v40 = vadd.s32 %v1918_v63, %v1916_v50  ;;  %v4785_v6 = vsel %vm4778_vm14, %v4781_v26, %v4784_v8  ;;  %v1912_v44 = vshrl.u32 %v7051_v36, 16 }
 0x134   :  { %v2315_v22 = vsel %vm2308_vm13, %v2311_v15, %v2314_v14  ;;  %v5899_v0 = vadd.s32 4294967294, %v2113_v2  ;;  %v4786_v23 = vsel %vm2305_vm1, nan, %v4785_v6  ;;  %v1930_v12 = vmul.u32 %v1926_v42, %v7043_v54 }
 0x135   :  { %v2316_v18 = vsel %vm2305_vm1, nan, %v2315_v22  ;;  %v1933_v28 = vshll.u32 %v1929_v10, 16  ;;  %5097 = vmatpush.msra.mxu0 %v4786_v23  ;;  %v2101_v41 = vadd.s32 %v6990_v19, %v6988_v7  ;;  %v1921_v5 = vadd.s32 %v1920_v40, %v1910_v29  ;;  %v9522_v22 = vld [vmem:[#allocation15_spill] sm:$0xff] }
 0x136   :  { %5126 = vmatpush.msra.mxu1 %v2316_v18  ;;  %vm5900_vm5 = vcmp.lt.s32.totalorder %v5899_v0, 0  ;;  %vm1935_vm15 = vc.u32 %v1927_v25, %v1931_v31  ;;  %v1891_v36 = vsel %vm1885_vm9, %v1888_v47, %v1890_v39  ;;  %v1937_v62 = vadd.s32 %v1931_v31, %v1927_v25 }
 0x137   :  { %v2116_v56 = vsel %vm5900_vm5, 0, %v5899_v0  ;;  %v1936_v51 = vsel %vm1935_vm15, 1, %v9492_v58  ;;  %v1932_v54 = vshrl.u32 %v1928_v43, 16  ;;  %v7105_v42 = vadd.s32 %v1921_v5, %v1912_v44  ;;  %v9523_v5 = vld [vmem:[#allocation17_spill] sm:$0xff] }
 0x138   :  { %v2117_v46 = vsub.s32 32, %v2116_v56  ;;  %v2118_v61 = vshll.u32 %v2109_v11, %v2116_v56  ;;  %v2121_v1 = vsub.s32 4294967266, %v2116_v56  ;;  %v1938_v30 = vadd.s32 %v1936_v51, %v1930_v12 }
 0x139   :  { %vm1939_vm8 = vc.u32 %v1937_v62, %v1933_v28  ;;  %v7107_v50 = vadd.s32 %v1937_v62, %v1933_v28  ;;  %v9437_v59 = vand.u32 2147483647, %v9520_v57  ;;  %v7113_v47 = vshll.u32 %v9471_v27, %v6763_v48 }
 0x13a   :  { %v2119_v7 = vshrl.u32 %v2101_v41, %v2117_v46  ;;  %v2122_v19 = vadd.s32 127, %v2121_v1  ;;  %v1940_v63 = vsel %vm1939_vm8, 1, %v9492_v58  ;;  %v7117_v11 = vshll.u32 %v9475_v17, %v6763_v48  ;;  %v9525_v1 = vld [vmem:[#allocation20_spill] sm:$0xff] }
 0x13b   :  { %v1934_v43 = vshrl.u32 %v1929_v10, 16  ;;  %v1942_v39 = vadd.s32 %v1940_v63, %v1938_v30  ;;  %v7121_v37 = vor.u32 %v6957_v21, %v6742_v24  ;;  %v1704_v2 = vand.u32 8388607, %v9437_v59  ;;  %v9521_v24 = vld [vmem:[#allocation11_spill] sm:$0xff] }
 0x13c   :  { %v2120_v25 = vor.u32 %v2119_v7, %v2118_v61  ;;  %v2123_v8 = vshll.u32 %v2122_v19, 23  ;;  %v2131_v31 = vsub.s32 4, %v7064_v16  ;;  %v1945_v15 = vmul.u32 %v7016_v4, %v1891_v36  ;;  %v9524_v61 = vld [vmem:[#allocation27_spill] sm:$0xff] }
 0x13d   :  { %v1943_v26 = vadd.s32 %v1942_v39, %v1932_v54  ;;  %vm1947_vm9 = vc.u32 %v7105_v42, %v7107_v50  ;;  %v1705_v10 = vor.u32 8388608, %v1704_v2  ;;  %v1717_v21 = vshll.u32 %v9493_v32, %v9521_v24 }
 0x13e   :  { %v2124_v14 = vor.u32 4788187, %v2123_v8  ;;  %v1714_v6 = vshll.u32 %v9489_v55, %v9521_v24  ;;  %v1718_v0 = vshrl.u32 %v9494_v20, %v9522_v22  ;;  %v1720_v44 = vshll.u32 %v9494_v20, %v9521_v24 }
 0x13f   :  { %v1944_v40 = vadd.s32 %v1943_v26, %v1934_v43  ;;  %v2127_v4 = vcvt.s32.f32 %v2120_v25  ;;  %v1715_v18 = vshrl.u32 %v9493_v32, %v9522_v22  ;;  %v1721_v12 = vshrl.u32 %v9471_v27, %v9522_v22 }
 0x140   :  { %v2125_v23 = vand.u32 2147483647, %v2124_v14  ;;  %vm2009_vm3 = vcmp.lt.s32.totalorder %v6209_v60, 0  ;;  %v7144_v41 = vor.u32 %v1718_v0, %v1717_v21  ;;  %vm1731_vm12 = vcmp.lt.s32.totalorder %v9523_v5, 3 }
 0x141   :  { %v1948_v28 = vadd.s32 1, %v1944_v40  ;;  %v7147_v36 = vor.u32 %v1721_v12, %v1720_v44  ;;  %vm1729_vm10 = vcmp.lt.s32.totalorder %v9523_v5, 1  ;;  %v7150_v51 = vshll.u32 %v1705_v10, 8 }
 0x142   :  { %v2128_v56 = vmul.f32 %v2127_v4, %v2125_v23  ;;  %v2132_v62 = vsel %vm2009_vm3, %v2131_v31, %v7064_v16  ;;  %vm1730_vm14 = vcmp.lt.s32.totalorder %v9523_v5, 2  ;;  %v1743_v54 = vsel %vm1731_vm12, %v9525_v1, %v9524_v61 }
 0x143   :  { %v1949_v46 = vsel %vm1947_vm9, %v1948_v28, %v1944_v40  ;;  %v7164_v30 = vsub.s32 32, %v6893_v33  ;;  %v7166_v63 = vor.u32 %v1715_v18, %v1714_v6  ;;  %v7170_v16 = vshll.u32 %v9471_v27, %v6893_v33  ;;  %v9526_v40 = vld [vmem:[#allocation25_spill] sm:$0xff] }
 0x144   :  { %v2129_v7 = vxor.u32 2147483648, %v2128_v56  ;;  %v1950_v19 = vadd.s32 %v1949_v46, %v1945_v15  ;;  %vm2008_vm13 = vcmp.le.f32.partialorder %v2007_v49, 0.7853982  ;;  %v1741_v43 = vsel %vm1729_vm10, %v7144_v41, %v7147_v36 }
 0x145   :  { %v7179_v39 = vand.u32 65535, %v7150_v51  ;;  %v2134_v8 = vsel %vm2008_vm13, 0, %v2132_v62  ;;  %v1744_v31 = vsel %vm1730_vm14, %v1741_v43, %v1743_v54  ;;  %v7189_v49 = vshrl.u32 %v7150_v51, 16 }
 0x146   :  { %v2130_v25 = vsel %vm2009_vm3, %v2129_v7, %v2128_v56  ;;  %v1951_v2 = vadd.s32 536870912, %v1950_v19  ;;  %v1748_v15 = vand.u32 65535, %v1744_v31  ;;  %v1749_v14 = vshrl.u32 %v1744_v31, 16 }
 0x147   :  { %v7186_v26 = vsel %vm2008_vm13, %v6209_v60, %v2130_v25  ;;  %v1737_v21 = vsel %vm1729_vm10, %v7166_v63, %v7144_v41  ;;  %v1739_v6 = vsel %vm1731_vm12, %v7147_v36, %v9526_v40  ;;  %v2151_v0 = vadd.s32 3, %v2134_v8 }
 0x148   :  { %v2135_v10 = vmul.f32 %v7186_v26, %v7186_v26  ;;  %v7193_v24 = vshrl.u32 %v1951_v2, 30  ;;  %v1750_v44 = vmul.u32 %v1748_v15, %v7179_v39  ;;  %v7205_v23 = vmul.u32 %v1749_v14, %v7179_v39 }
 0x149   :  { %v7208_v4 = vmul.u32 %v1748_v15, %v7189_v49  ;;  %v7212_v18 = vshrl.u32 %v9475_v17, %v7056_v9  ;;  %v7215_v62 = vand.u32 3, %v2134_v8  ;;  %v1740_v46 = vsel %vm1730_vm14, %v1737_v21, %v1739_v6 }
 0x14a   :  { %v2136_v12 = vmul.f32 -0.001358992, %v2135_v10  ;;  %v2143_v28 = vmul.f32 -0.00019511016, %v2135_v10  ;;  %v1953_v56 = vshll.u32 %v7193_v24, 30  ;;  %v1754_v61 = vshll.u32 %v7205_v23, 16 }
 0x14b   :  { %v1756_v1 = vshll.u32 %v7208_v4, 16  ;;  %v1753_v25 = vmul.u32 %v1749_v14, %v7189_v49  ;;  %v7226_v2 = vshrl.u32 %v9518_v53, %v7056_v9  ;;  %v7228_v31 = vand.u32 3, %v2151_v0 }
 0x14c   :  { %v2137_v54 = vadd.f32 0.041655596, %v2136_v12  ;;  %v2144_v7 = vadd.f32 0.008332121, %v2143_v28  ;;  %v7221_v43 = vsub.s32 %v1950_v19, %v1953_v56  ;;  %vm1758_vm1 = vc.u32 %v1750_v44, %v1754_v61 }
 0x14d   :  { %v1760_v8 = vadd.s32 %v1754_v61, %v1750_v44  ;;  %vm4628_vm0 = vcmp.eq.s32.totalorder %v7215_v62, 2  ;;  %v1759_v19 = vsel %vm1758_vm1, 1, %v9492_v58  ;;  %v1771_v6 = vshrl.u32 %v1740_v46, 16 }
 0x14e   :  { %v2138_v15 = vmul.f32 %v2137_v54, %v2135_v10  ;;  %v2145_v21 = vmul.f32 %v2144_v7, %v2135_v10  ;;  %vm1955_vm2 = vcmp.lt.s32.totalorder %v7221_v43, 0  ;;  %v1956_v40 = vsub.s32 0, %v7221_v43 }
 0x14f   :  { %vm7234_vm6 = vc.u32 %v1760_v8, %v1756_v1  ;;  %v1761_v44 = vadd.s32 %v1759_v19, %v1753_v25  ;;  %vm4625_vm4 = vcmp.eq.s32.totalorder %v7215_v62, 0  ;;  %vm2154_vm5 = vcmp.eq.s32.totalorder %v7228_v31, 0  ;;  %v9529_v19 = vld [vmem:[#allocation21_spill] sm:$0xff] }
 0x150   :  { %v2139_v12 = vadd.f32 -0.4999988, %v2138_v15  ;;  %v2146_v0 = vadd.f32 -0.16666654, %v2145_v21  ;;  %v1957_v28 = vsel %vm1955_vm2, %v1956_v40, %v7221_v43  ;;  %vm2157_vm15 = vcmp.eq.s32.totalorder %v7228_v31, 2 }
 0x151   :  { %v1946_v56 = vadd.s32 %v7107_v50, %v7105_v42  ;;  %v1958_v61 = vclz %v1957_v28  ;;  %v1770_v1 = vand.u32 65535, %v1740_v46  ;;  %vm4624_vm8 = vcmp.lt.s32.totalorder %v7215_v62, 2 }
 0x152   :  { %v2140_v54 = vmul.f32 %v2139_v12, %v2135_v10  ;;  %v2147_v7 = vmul.f32 %v2146_v0, %v2135_v10  ;;  %vm2153_vm9 = vcmp.lt.s32.totalorder %v7228_v31, 2  ;;  %v1713_v25 = vshrl.u32 %v9489_v55, %v9522_v22  ;;  %v9530_v31 = vld [vmem:[#allocation52_spill] sm:$0xff] }
 0x153   :  { %v1763_v8 = vsel %vm7234_vm6, 1, %v9492_v58  ;;  %vm2150_vm3 = vweird.f32 %v6209_v60  ;;  %v5896_v15 = vadd.s32 4294967294, %v1958_v61  ;;  %v1755_v42 = vshrl.u32 %v7205_v23, 16 }
 0x154   :  { %v1765_v50 = vadd.s32 %v1763_v8, %v1761_v44  ;;  %v1773_v46 = vmul.u32 %v1771_v6, %v7179_v39  ;;  %v2141_v10 = vadd.f32 1.0, %v2140_v54  ;;  %v2148_v21 = vadd.f32 1.0, %v2147_v7 }
 0x155   :  { %v1734_v40 = vsel %vm1732_vm7, %v7147_v36, 2102212464  ;;  %vm5897_vm13 = vcmp.lt.s32.totalorder %v5896_v15, 0  ;;  %v1976_v14 = vsub.s32 4, %v7193_v24  ;;  %v1772_v12 = vmul.u32 %v1770_v1, %v7179_v39 }
 0x156   :  { %v1774_v0 = vmul.u32 %v1770_v1, %v7189_v49  ;;  %v2149_v23 = vmul.f32 %v2148_v21, %v7186_v26  ;;  %v2158_v28 = vxor.u32 2147483648, %v2141_v10  ;;  %v1961_v44 = vsel %vm5897_vm13, 0, %v5896_v15 }
 0x157   :  { %v1776_v61 = vshll.u32 %v1773_v46, 16  ;;  %v1962_v54 = vsub.s32 32, %v1961_v44  ;;  %v1966_v7 = vsub.s32 4294967266, %v1961_v44  ;;  %v1757_v8 = vshrl.u32 %v7208_v4, 16 }
 0x158   :  { %v1766_v59 = vadd.s32 %v1765_v50, %v1755_v42  ;;  %v2155_v36 = vxor.u32 2147483648, %v2149_v23  ;;  %v4630_v29 = vsel %vm4628_vm0, %v2158_v28, %v2149_v23  ;;  %v1963_v34 = vshll.u32 %v7221_v43, %v1961_v44 }
 0x159   :  { %v1775_v39 = vmul.u32 %v1771_v6, %v7189_v49  ;;  %v2159_v1 = vsel %vm2157_vm15, %v2158_v28, %v2149_v23  ;;  %v1964_v26 = vshrl.u32 %v1946_v56, %v1962_v54  ;;  %v1967_v21 = vadd.s32 127, %v1966_v7 }
 0x15a   :  { %v1778_v15 = vshll.u32 %v1774_v0, 16  ;;  %v4627_v22 = vsel %vm4625_vm4, %v2141_v10, %v2155_v36  ;;  %v2156_v4 = vsel %vm2154_vm5, %v2141_v10, %v2155_v36  ;;  %vm1780_vm7 = vc.u32 %v1772_v12, %v1776_v61 }
 0x15b   :  { %v1782_v42 = vadd.s32 %v1776_v61, %v1772_v12  ;;  %v4631_v50 = vsel %vm4624_vm8, %v4627_v22, %v4630_v29  ;;  %v2160_v49 = vsel %vm2153_vm9, %v2156_v4, %v2159_v1  ;;  %v1965_v43 = vor.u32 %v1964_v26, %v1963_v34 }
 0x15c   :  { %v1968_v6 = vshll.u32 %v1967_v21, 23  ;;  %v4632_v56 = vsel %vm2150_vm3, nan, %v4631_v50  ;;  %v2161_v23 = vsel %vm2150_vm3, nan, %v2160_v49  ;;  %v1781_v28 = vsel %vm1780_vm7, 1, %v9492_v58  ;;  %v9535_v21 = vld [vmem:[#allocation45_spill] sm:$0xff] }
 0x15d   :  { %vm1784_vm1 = vc.u32 %v1782_v42, %v1778_v15  ;;  %5098 = vmatpush.msra.mxu0 %v4632_v56  ;;  %5127 = vmatpush.msra.mxu1 %v2161_v23  ;;  %v1777_v12 = vshrl.u32 %v1773_v46, 16  ;;  %v1783_v62 = vadd.s32 %v1781_v28, %v1775_v39  ;;  %vm1422_vm2 = vcmp.lt.s32.totalorder %v9530_v31, 4  ;;  %v9536_v50 = vld [vmem:[#allocation49_spill] sm:$0xff] }
 0x15e   :  { %v1969_v10 = vor.u32 4788187, %v1968_v6  ;;  %v1785_v29 = vsel %vm1784_vm1, 1, %v9492_v58  ;;  %vm1854_vm0 = vcmp.lt.s32.totalorder %v9512_v35, 0  ;;  %v1733_v34 = vsel %vm1729_vm10, %v1713_v25, %v7166_v63 }
 0x15f   :  { %v1735_v60 = vsel %vm1731_vm12, %v7144_v41, %v1734_v40  ;;  %v1779_v22 = vshrl.u32 %v1774_v0, 16  ;;  %v1972_v61 = vcvt.s32.f32 %v1965_v43  ;;  %v1787_v54 = vadd.s32 %v1785_v29, %v1783_v62  ;;  %v9538_v29 = vld [vmem:[#allocation55_spill] sm:$0xff] }
 0x160   :  { %v1970_v44 = vand.u32 2147483647, %v1969_v10  ;;  %v9531_v46 = vand.u32 2147483647, %v9529_v19  ;;  %v9532_v36 = vand.u32 2147483647, %v9512_v35  ;;  %v1977_v63 = vsel %vm1854_vm0, %v1976_v14, %v7193_v24 }
 0x161   :  { %v7302_v25 = vadd.s32 %v1766_v59, %v1757_v8  ;;  %v7304_v41 = vadd.s32 %v1782_v42, %v1778_v15  ;;  %v1736_v0 = vsel %vm1730_vm14, %v1733_v34, %v1735_v60  ;;  %v1788_v1 = vadd.s32 %v1787_v54, %v1777_v12  ;;  %v9537_v10 = vld [vmem:[#allocation47_spill] sm:$0xff] }
 0x162   :  { %v1549_v7 = vand.u32 8388607, %v9531_v46  ;;  %vm7295_vm6 = vcmp.le.f32.partialorder %v9532_v36, 0.7853982  ;;  %v1973_v40 = vmul.f32 %v1972_v61, %v1970_v44  ;;  %v1562_v4 = vshll.u32 %v9493_v32, %v9535_v21  ;;  %v9539_v34 = vld [vmem:[#allocation51_spill] sm:$0xff] }
 0x163   :  { %v1563_v49 = vshrl.u32 %v9494_v20, %v9536_v50  ;;  %v1565_v43 = vshll.u32 %v9494_v20, %v9535_v21  ;;  %v1566_v59 = vshrl.u32 %v9471_v27, %v9536_v50  ;;  %v7318_v24 = vshll.u32 %v9475_v17, %v6893_v33 }
 0x164   :  { %v1550_v26 = vor.u32 8388608, %v1549_v7  ;;  %v1974_v5 = vxor.u32 2147483648, %v1973_v40  ;;  %v1979_v14 = vsel %vm7295_vm6, 0, %v1977_v63  ;;  %v1789_v8 = vadd.s32 %v1788_v1, %v1779_v22 }
 0x165   :  { %vm1792_vm12 = vc.u32 %v7302_v25, %v7304_v41  ;;  %v1560_v15 = vshrl.u32 %v9493_v32, %v9536_v50  ;;  %v7326_v42 = vor.u32 %v1563_v49, %v1562_v4  ;;  %v1567_v6 = vor.u32 %v1566_v59, %v1565_v43 }
 0x166   :  { %v1975_v56 = vsel %vm1854_vm0, %v1974_v5, %v1973_v40  ;;  %v1790_v23 = vmul.u32 %v7150_v51, %v1736_v0  ;;  %v1793_v28 = vadd.s32 1, %v1789_v8  ;;  %vm1576_vm10 = vcmp.lt.s32.totalorder %v9537_v10, 3 }
 0x167   :  { %v7335_v12 = vsel %vm7295_vm6, %v9512_v35, %v1975_v56  ;;  %v1559_v62 = vshll.u32 %v9489_v55, %v9535_v21  ;;  %v1588_v60 = vsel %vm1576_vm10, %v9539_v34, %v9538_v29  ;;  %v7343_v22 = vshll.u32 %v1550_v26, 8 }
 0x168   :  { %v7348_v51 = vsel %vm1422_vm2, %v7121_v37, 920167782  ;;  %v1980_v44 = vmul.f32 %v7335_v12, %v7335_v12  ;;  %v1794_v61 = vsel %vm1792_vm12, %v1793_v28, %v1789_v8  ;;  %vm1574_vm14 = vcmp.lt.s32.totalorder %v9537_v10, 1 }
 0x169   :  { %v1795_v54 = vadd.s32 %v1794_v61, %v1790_v23  ;;  %v1561_v46 = vor.u32 %v1560_v15, %v1559_v62  ;;  %vm1575_vm4 = vcmp.lt.s32.totalorder %v9537_v10, 2  ;;  %v1586_v7 = vsel %vm1574_vm14, %v7326_v42, %v1567_v6  ;;  %v9540_v15 = vld [vmem:[#allocation54_spill] sm:$0xff] }
 0x16a   :  { %v1981_v36 = vmul.f32 -0.001358992, %v1980_v44  ;;  %v1988_v39 = vmul.f32 -0.00019511016, %v1980_v44  ;;  %v1996_v63 = vadd.s32 3, %v1979_v14  ;;  %v1589_v40 = vsel %vm1575_vm4, %v1586_v7, %v1588_v60 }
 0x16b   :  { %v1796_v0 = vadd.s32 536870912, %v1795_v54  ;;  %v7360_v1 = vand.u32 65535, %v7343_v22  ;;  %v1593_v26 = vand.u32 65535, %v1589_v40  ;;  %v1594_v21 = vshrl.u32 %v1589_v40, 16 }
 0x16c   :  { %v1982_v4 = vadd.f32 0.041655596, %v1981_v36  ;;  %v1989_v49 = vadd.f32 0.008332121, %v1988_v39  ;;  %v7362_v43 = vand.u32 3, %v1979_v14  ;;  %v7365_v59 = vshrl.u32 %v7343_v22, 16 }
 0x16d   :  { %v7367_v5 = vshrl.u32 %v1796_v0, 30  ;;  %v1582_v8 = vsel %vm1574_vm14, %v1561_v46, %v7326_v42  ;;  %v1584_v56 = vsel %vm1576_vm10, %v1567_v6, %v9540_v15  ;;  %v7376_v23 = vmul.u32 %v1594_v21, %v7360_v1 }
 0x16e   :  { %v9541_v14 = vor.u32 %v7020_v52, %v6748_v38  ;;  %v1983_v62 = vmul.f32 %v1982_v4, %v1980_v44  ;;  %v1990_v29 = vmul.f32 %v1989_v49, %v1980_v44  ;;  %v7386_v34 = vmul.u32 %v1593_v26, %v7365_v59 }
 0x16f   :  { %v1997_v60 = vand.u32 3, %v1996_v63  ;;  %v1798_v61 = vshll.u32 %v7367_v5, 30  ;;  %v1595_v7 = vmul.u32 %v1593_v26, %v7360_v1  ;;  %v1599_v36 = vshll.u32 %v7376_v23, 16 }
 0x170   :  { %v7383_v28 = vsel %vm1422_vm2, %v9541_v14, 1326507024  ;;  %v1984_v39 = vadd.f32 -0.4999988, %v1983_v62  ;;  %v1991_v40 = vadd.f32 -0.16666654, %v1990_v29  ;;  %v1558_v38 = vshrl.u32 %v9489_v55, %v9536_v50 }
 0x171   :  { %vm4474_vm5 = vcmp.eq.s32.totalorder %v7362_v43, 2  ;;  %v1585_v52 = vsel %vm1575_vm4, %v1582_v8, %v1584_v56  ;;  %vm4471_vm15 = vcmp.eq.s32.totalorder %v7362_v43, 0  ;;  %v7397_v0 = vsub.s32 %v1795_v54, %v1798_v61 }
 0x172   :  { %v1579_v63 = vsel %vm1577_vm11, %v1567_v6, 2102212464  ;;  %vm1603_vm8 = vc.u32 %v1595_v7, %v1599_v36  ;;  %v1605_v26 = vadd.s32 %v1599_v36, %v1595_v7  ;;  %v1985_v4 = vmul.f32 %v1984_v39, %v1980_v44 }
 0x173   :  { %v1992_v49 = vmul.f32 %v1991_v40, %v1980_v44  ;;  %vm4470_vm9 = vcmp.lt.s32.totalorder %v7362_v43, 2  ;;  %v1601_v15 = vshll.u32 %v7386_v34, 16  ;;  %v1604_v50 = vsel %vm1603_vm8, 1, %v9492_v58 }
 0x174   :  { %vm1995_vm3 = vweird.f32 %v9512_v35  ;;  %vm1800_vm13 = vcmp.lt.s32.totalorder %v7397_v0, 0  ;;  %v1801_v54 = vsub.s32 0, %v7397_v0  ;;  %v1598_v8 = vmul.u32 %v1594_v21, %v7365_v59 }
 0x175   :  { %v1616_v56 = vshrl.u32 %v1585_v52, 16  ;;  %v1986_v6 = vadd.f32 1.0, %v1985_v4  ;;  %v1993_v14 = vadd.f32 1.0, %v1992_v49  ;;  %v1578_v44 = vsel %vm1574_vm14, %v1558_v38, %v1561_v46 }
 0x176   :  { %vm1607_vm11 = vc.u32 %v1605_v26, %v1601_v15  ;;  %v1802_v62 = vsel %vm1800_vm13, %v1801_v54, %v7397_v0  ;;  %v1580_v29 = vsel %vm1576_vm10, %v7326_v42, %v1579_v63  ;;  %v1606_v61 = vadd.s32 %v1604_v50, %v1598_v8 }
 0x177   :  { %v1615_v7 = vand.u32 65535, %v1585_v52  ;;  %v1994_v36 = vmul.f32 %v1993_v14, %v7335_v12  ;;  %v2003_v39 = vxor.u32 2147483648, %v1986_v6  ;;  %vm1998_vm7 = vcmp.lt.s32.totalorder %v1997_v60, 2 }
 0x178   :  { %v1803_v21 = vclz %v1802_v62  ;;  %vm1999_vm1 = vcmp.eq.s32.totalorder %v1997_v60, 0  ;;  %vm2002_vm0 = vcmp.eq.s32.totalorder %v1997_v60, 2  ;;  %v1608_v40 = vsel %vm1607_vm11, 1, %v9492_v58 }
 0x179   :  { %v1618_v46 = vmul.u32 %v1616_v56, %v7360_v1  ;;  %v2000_v38 = vxor.u32 2147483648, %v1994_v36  ;;  %v1791_v26 = vadd.s32 %v7304_v41, %v7302_v25  ;;  %v7421_v42 = vsel %vm1575_vm4, %v1578_v44, %v1580_v29 }
 0x17a   :  { %v5893_v4 = vadd.s32 4294967294, %v1803_v21  ;;  %v4476_v12 = vsel %vm4474_vm5, %v2003_v39, %v1994_v36  ;;  %v2004_v52 = vsel %vm2002_vm0, %v2003_v39, %v1994_v36  ;;  %v1610_v63 = vadd.s32 %v1608_v40, %v1606_v61 }
 0x17b   :  { %v1619_v49 = vmul.u32 %v1615_v7, %v7365_v59  ;;  %v4473_v15 = vsel %vm4471_vm15, %v1986_v6, %v2000_v38  ;;  %v2001_v50 = vsel %vm1999_vm1, %v1986_v6, %v2000_v38  ;;  %v1621_v54 = vshll.u32 %v1618_v46, 16 }
 0x17c   :  { %vm5894_vm6 = vcmp.lt.s32.totalorder %v5893_v4, 0  ;;  %v4477_v25 = vsel %vm4470_vm9, %v4473_v15, %v4476_v12  ;;  %v2005_v41 = vsel %vm1998_vm7, %v2001_v50, %v2004_v52  ;;  %v1600_v8 = vshrl.u32 %v7376_v23, 16 }
 0x17d   :  { %v1806_v10 = vsel %vm5894_vm6, 0, %v5893_v4  ;;  %v4478_v14 = vsel %vm1995_vm3, nan, %v4477_v25  ;;  %v2006_v44 = vsel %vm1995_vm3, nan, %v2005_v41  ;;  %v1617_v29 = vmul.u32 %v1615_v7, %v7360_v1  ;;  %v9542_v1 = vld [vmem:[#allocation33_spill] sm:$0xff] }
 0x17e   :  { %v1807_v62 = vsub.s32 32, %v1806_v10  ;;  %5099 = vmatpush.msra.mxu0 %v4478_v14  ;;  %5128 = vmatpush.msra.mxu1 %v2006_v44  ;;  %v1808_v6 = vshll.u32 %v7397_v0, %v1806_v10  ;;  %v1811_v43 = vsub.s32 4294967266, %v1806_v10  ;;  %v1611_v61 = vadd.s32 %v1610_v63, %v1600_v8  ;;  %v9543_v8 = vld [vmem:[#allocation53_spill] sm:$0xff] }
 0x17f   :  { %v1620_v60 = vmul.u32 %v1616_v56, %v7365_v59  ;;  %v1623_v39 = vshll.u32 %v1619_v49, 16  ;;  %vm1625_vm12 = vc.u32 %v1617_v29, %v1621_v54  ;;  %v1627_v23 = vadd.s32 %v1621_v54, %v1617_v29 }
 0x180   :  { %v1809_v36 = vshrl.u32 %v1791_v26, %v1807_v62  ;;  %v7441_v21 = vshrl.u32 %v9475_v17, %v7164_v30  ;;  %v1812_v35 = vadd.s32 127, %v1811_v43  ;;  %v1626_v40 = vsel %vm1625_vm12, 1, %v9492_v58 }
 0x181   :  { %v1387_v7 = vand.u32 2147483647, %v9542_v1  ;;  %v1602_v0 = vshrl.u32 %v7386_v34, 16  ;;  %v1628_v4 = vadd.s32 %v1626_v40, %v1620_v60  ;;  %vm1629_vm10 = vc.u32 %v1627_v23, %v1623_v39 }
 0x182   :  { %v1810_v38 = vor.u32 %v1809_v36, %v1808_v6  ;;  %vm1699_vm14 = vcmp.lt.s32.totalorder %v9520_v57, 0  ;;  %v1813_v59 = vshll.u32 %v1812_v35, 23  ;;  %v1630_v56 = vsel %vm1629_vm10, 1, %v9492_v58 }
 0x183   :  { %v1635_v26 = vmul.u32 %v7343_v22, %v7421_v42  ;;  %v1821_v12 = vsub.s32 4, %v7367_v5  ;;  %v7451_v52 = vadd.s32 %v1611_v61, %v1602_v0  ;;  %v1622_v63 = vshrl.u32 %v1618_v46, 16 }
 0x184   :  { %v1632_v15 = vadd.s32 %v1630_v56, %v1628_v4  ;;  %v1814_v50 = vor.u32 4788187, %v1813_v59  ;;  %v1624_v54 = vshrl.u32 %v1619_v49, 16  ;;  %v7453_v25 = vadd.s32 %v1627_v23, %v1623_v39 }
 0x185   :  { %v1394_v34 = vand.u32 8388607, %v1387_v7  ;;  %v1817_v41 = vcvt.s32.f32 %v1810_v38  ;;  %v1407_v14 = vshll.u32 %v9493_v32, %v9543_v8  ;;  %v1408_v22 = vshrl.u32 %v9494_v20, %v6726_v13 }
 0x186   :  { %v1633_v10 = vadd.s32 %v1632_v15, %v1622_v63  ;;  %v1815_v42 = vand.u32 2147483647, %v1814_v50  ;;  %v1405_v46 = vshrl.u32 %v9493_v32, %v6726_v13  ;;  %v1410_v49 = vshll.u32 %v9494_v20, %v9543_v8 }
 0x187   :  { %v1411_v44 = vshrl.u32 %v9471_v27, %v6726_v13  ;;  %vm1637_vm4 = vc.u32 %v7451_v52, %v7453_v25  ;;  %v1404_v29 = vshll.u32 %v9489_v55, %v9543_v8  ;;  %v7471_v6 = vor.u32 %v1408_v22, %v1407_v14 }
 0x188   :  { %v1634_v62 = vadd.s32 %v1633_v10, %v1624_v54  ;;  %v1818_v43 = vmul.f32 %v1817_v41, %v1815_v42  ;;  %v1395_v61 = vor.u32 8388608, %v1394_v34  ;;  %vm1421_vm5 = vcmp.lt.s32.totalorder %v9530_v31, 3 }
 0x189   :  { %v7473_v60 = vor.u32 %v1411_v44, %v1410_v49  ;;  %v1822_v36 = vsel %vm1699_vm14, %v1821_v12, %v7367_v5  ;;  %vm1419_vm15 = vcmp.lt.s32.totalorder %v9530_v31, 1  ;;  %v1433_v23 = vsel %vm1421_vm5, %v7121_v37, %v7383_v28 }
 0x18a   :  { %v1638_v39 = vadd.s32 1, %v1634_v62  ;;  %v1819_v35 = vxor.u32 2147483648, %v1818_v43  ;;  %v7484_v40 = vor.u32 %v1405_v46, %v1404_v29  ;;  %vm1420_vm8 = vcmp.lt.s32.totalorder %v9530_v31, 2 }
 0x18b   :  { %v1431_v38 = vsel %vm1419_vm15, %v7471_v6, %v7473_v60  ;;  %v7493_v5 = vshrl.u32 %v9518_v53, %v7164_v30  ;;  %v9544_v0 = vand.u32 2147483647, %v9520_v57  ;;  %v7504_v12 = vshll.u32 %v1395_v61, 8 }
 0x18c   :  { %v1639_v37 = vsel %vm1637_vm4, %v1638_v39, %v1634_v62  ;;  %v1434_v28 = vsel %vm1420_vm8, %v1431_v38, %v1433_v23  ;;  %v1820_v4 = vsel %vm1699_vm14, %v1819_v35, %v1818_v43  ;;  %v7508_v63 = vor.u32 %v7212_v18, %v7113_v47 }
 0x18d   :  { %vm1698_vm9 = vcmp.le.f32.partialorder %v9544_v0, 0.7853982  ;;  %v1640_v56 = vadd.s32 %v1639_v37, %v1635_v26  ;;  %v1438_v50 = vand.u32 65535, %v1434_v28  ;;  %v1439_v54 = vshrl.u32 %v1434_v28, 16 }
 0x18e   :  { %v1824_v59 = vsel %vm1698_vm9, 0, %v1822_v36  ;;  %v7511_v15 = vsel %vm1698_vm9, %v9520_v57, %v1820_v4  ;;  %v1427_v26 = vsel %vm1419_vm15, %v7484_v40, %v7471_v6  ;;  %v1429_v47 = vsel %vm1421_vm5, %v7473_v60, %v7348_v51 }
 0x18f   :  { %v1825_v34 = vmul.f32 %v7511_v15, %v7511_v15  ;;  %v1641_v41 = vadd.s32 536870912, %v1640_v56  ;;  %v1108_v18 = vor.u32 %v7226_v2, %v7117_v11  ;;  %v1841_v10 = vadd.s32 3, %v1824_v59 }
 0x190   :  { %v1436_v8 = vand.u32 65535, %v7504_v12  ;;  %v7527_v14 = vshrl.u32 %v7504_v12, 16  ;;  %v7530_v22 = vadd.s32 1, %v7062_v45  ;;  %v7534_v44 = vor.u32 %v7441_v21, %v7170_v16 }
 0x191   :  { %v1826_v42 = vmul.f32 -0.001358992, %v1825_v34  ;;  %v1833_v46 = vmul.f32 -0.00019511016, %v1825_v34  ;;  %v1642_v49 = vshrl.u32 %v1641_v41, 30  ;;  %v1430_v51 = vsel %vm1420_vm8, %v1427_v26, %v1429_v47 }
 0x192   :  { %v7538_v62 = vmul.u32 %v1439_v54, %v1436_v8  ;;  %v7541_v29 = vmul.u32 %v1438_v50, %v7527_v14  ;;  %v7543_v36 = vand.u32 3, %v1824_v59  ;;  %v7547_v23 = vand.u32 3, %v1841_v10 }
 0x193   :  { %v1827_v43 = vadd.f32 0.041655596, %v1826_v42  ;;  %v1834_v61 = vadd.f32 0.008332121, %v1833_v46  ;;  %v1643_v45 = vshll.u32 %v1642_v49, 30  ;;  %v1440_v16 = vmul.u32 %v1438_v50, %v1436_v8 }
 0x194   :  { %v1444_v21 = vshll.u32 %v7538_v62, 16  ;;  %vm1544_vm3 = vcmp.lt.s32.totalorder %v9529_v19, 0  ;;  %v1461_v37 = vshrl.u32 %v1430_v51, 16  ;;  %v1443_v28 = vmul.u32 %v1439_v54, %v7527_v14 }
 0x195   :  { %v1828_v35 = vmul.f32 %v1827_v43, %v1825_v34  ;;  %v1835_v38 = vmul.f32 %v1834_v61, %v1825_v34  ;;  %v7551_v0 = vsub.s32 %v1640_v56, %v1643_v45  ;;  %v1446_v4 = vshll.u32 %v7541_v29, 16 }
 0x196   :  { %vm1448_vm13 = vc.u32 %v1440_v16, %v1444_v21  ;;  %v1450_v59 = vadd.s32 %v1444_v21, %v1440_v16  ;;  %vm4320_vm11 = vcmp.eq.s32.totalorder %v7543_v36, 2  ;;  %vm4317_vm1 = vcmp.eq.s32.totalorder %v7543_v36, 0 }
 0x197   :  { %v1829_v41 = vadd.f32 -0.4999988, %v1828_v35  ;;  %v1836_v26 = vadd.f32 -0.16666654, %v1835_v38  ;;  %vm1645_vm7 = vcmp.lt.s32.totalorder %v7551_v0, 0  ;;  %v1646_v50 = vsub.s32 0, %v7551_v0 }
 0x198   :  { %vm1844_vm0 = vcmp.eq.s32.totalorder %v7547_v23, 0  ;;  %vm1847_vm6 = vcmp.eq.s32.totalorder %v7547_v23, 2  ;;  %v1424_v56 = vsel %vm1422_vm2, %v7473_v60, 2102212464  ;;  %v1449_v54 = vsel %vm1448_vm13, 1, %v9492_v58 }
 0x199   :  { %vm1452_vm12 = vc.u32 %v1450_v59, %v1446_v4  ;;  %v1460_v47 = vand.u32 65535, %v1430_v51  ;;  %v1830_v10 = vmul.f32 %v1829_v41, %v1825_v34  ;;  %v1837_v42 = vmul.f32 %v1836_v26, %v1825_v34  ;;  %v9545_v41 = vld [vmem:[#allocation7_spill] sm:$0xff] }
 0x19a   :  { %vm4316_vm10 = vcmp.lt.s32.totalorder %v7543_v36, 2  ;;  %vm1843_vm14 = vcmp.lt.s32.totalorder %v7547_v23, 2  ;;  %v1647_v46 = vsel %vm1645_vm7, %v1646_v50, %v7551_v0  ;;  %v1451_v43 = vadd.s32 %v1449_v54, %v1443_v28 }
 0x19b   :  { %vm1840_vm4 = vweird.f32 %v9520_v57  ;;  %v1636_v61 = vadd.s32 %v7453_v25, %v7451_v52  ;;  %v1648_v45 = vclz %v1647_v46  ;;  %v1666_v60 = vsub.s32 4, %v1642_v49 }
 0x19c   :  { %v1403_v16 = vshrl.u32 %v9489_v55, %v6726_v13  ;;  %v1831_v51 = vadd.f32 1.0, %v1830_v10  ;;  %v1838_v21 = vadd.f32 1.0, %v1837_v42  ;;  %v1453_v34 = vsel %vm1452_vm12, 1, %v9492_v58 }
 0x19d   :  { %v7574_v35 = vmul.u32 %v1461_v37, %v1436_v8  ;;  %v5890_v38 = vadd.s32 4294967294, %v1648_v45  ;;  %v1425_v52 = vsel %vm1421_vm5, %v7471_v6, %v1424_v56  ;;  %v1455_v25 = vadd.s32 %v1453_v34, %v1451_v43 }
 0x19e   :  { %v1423_v28 = vsel %vm1419_vm15, %v1403_v16, %v7484_v40  ;;  %v1839_v4 = vmul.f32 %v1838_v21, %v7511_v15  ;;  %v1848_v59 = vxor.u32 2147483648, %v1831_v51  ;;  %v1462_v13 = vmul.u32 %v1460_v47, %v1436_v8 }
 0x19f   :  { %v9439_v26 = vand.u32 2147483647, %v9545_v41  ;;  %vm5891_vm2 = vcmp.lt.s32.totalorder %v5890_v38, 0  ;;  %v1667_v50 = vsel %vm1544_vm3, %v1666_v60, %v1642_v49  ;;  %v1445_v54 = vshrl.u32 %v7538_v62, 16 }
 0x1a0   :  { %v1464_v10 = vmul.u32 %v1460_v47, %v7527_v14  ;;  %v1845_v40 = vxor.u32 2147483648, %v1839_v4  ;;  %v1651_v42 = vsel %vm5891_vm2, 0, %v5890_v38  ;;  %v1465_v46 = vmul.u32 %v1461_v37, %v7527_v14 }
 0x1a1   :  { %v1466_v6 = vshll.u32 %v7574_v35, 16  ;;  %v4322_v15 = vsel %vm4320_vm11, %v1848_v59, %v1839_v4  ;;  %v1652_v8 = vsub.s32 32, %v1651_v42  ;;  %v1656_v56 = vsub.s32 4294967266, %v1651_v42 }
 0x1a2   :  { %v1456_v43 = vadd.s32 %v1455_v25, %v1445_v54  ;;  %v4319_v45 = vsel %vm4317_vm1, %v1831_v51, %v1845_v40  ;;  %v1846_v49 = vsel %vm1844_vm0, %v1831_v51, %v1845_v40  ;;  %v1849_v62 = vsel %vm1847_vm6, %v1848_v59, %v1839_v4 }
 0x1a3   :  { %v1653_v47 = vshll.u32 %v7551_v0, %v1651_v42  ;;  %v4323_v14 = vsel %vm4316_vm10, %v4319_v45, %v4322_v15  ;;  %v1850_v37 = vsel %vm1843_vm14, %v1846_v49, %v1849_v62  ;;  %v1654_v60 = vshrl.u32 %v1636_v61, %v1652_v8  ;;  %v9549_v8 = vld [vmem:[#allocation13_spill] sm:$0xff]  ;;  %v9550_v62 = vld [vmem:[#allocation16_spill] sm:$0xff] }
 0x1a4   :  { %v1657_v16 = vadd.s32 127, %v1656_v56  ;;  %vm623_vm5 = vcmp.gt.s32.totalorder %v7059_v3, 0  ;;  %v4324_v21 = vsel %vm1840_vm4, nan, %v4323_v14  ;;  %v1851_v51 = vsel %vm1840_vm4, nan, %v1850_v37 }
 0x1a5   :  { %v1468_v34 = vshll.u32 %v1464_v10, 16  ;;  %vm1470_vm15 = vc.u32 %v1462_v13, %v1466_v6  ;;  %5100 = vmatpush.msra.mxu0 %v4324_v21  ;;  %5129 = vmatpush.msra.mxu1 %v1851_v51  ;;  %v1655_v0 = vor.u32 %v1654_v60, %v1653_v47  ;;  %v1472_v23 = vadd.s32 %v1466_v6, %v1462_v13  ;;  %v9551_v21 = vld [vmem:[#allocation19_spill] sm:$0xff]  ;;  %v9552_v51 = vld [vmem:[#allocation56_spill] sm:$0xff] }
 0x1a6   :  { %v1658_v36 = vshll.u32 %v1657_v16, 23  ;;  %v1471_v38 = vsel %vm1470_vm15, 1, %v9492_v58  ;;  %v9546_v61 = vand.u32 2147483647, %v9529_v19  ;;  %v1447_v4 = vshrl.u32 %v7541_v29, 16 }
 0x1a7   :  { %v1473_v59 = vadd.s32 %v1471_v38, %v1465_v46  ;;  %v1239_v57 = vand.u32 8388607, %v9439_v26  ;;  %v1426_v42 = vsel %vm1420_vm8, %v1423_v28, %v1425_v52  ;;  %vm1474_vm13 = vc.u32 %v1472_v23, %v1468_v34 }
 0x1a8   :  { %vm7611_vm9 = vcmp.le.f32.partialorder %v9546_v61, 0.7853982  ;;  %v1659_v54 = vor.u32 4788187, %v1658_v36  ;;  %v7622_v13 = vadd.s32 %v1456_v43, %v1447_v4  ;;  %v1467_v6 = vshrl.u32 %v7574_v35, 16 }
 0x1a9   :  { %v1669_v40 = vsel %vm7611_vm9, 0, %v1667_v50  ;;  %v1475_v15 = vsel %vm1474_vm13, 1, %v9492_v58  ;;  %v1249_v29 = vshll.u32 %v9489_v55, %v9549_v8  ;;  %v1662_v56 = vcvt.s32.f32 %v1655_v0 }
 0x1aa   :  { %v1660_v46 = vand.u32 2147483647, %v1659_v54  ;;  %v1477_v45 = vadd.s32 %v1475_v15, %v1473_v59  ;;  %v1240_v49 = vor.u32 8388608, %v1239_v57  ;;  %v1250_v50 = vshrl.u32 %v9493_v32, %v9550_v62 }
 0x1ab   :  { %v1252_v31 = vshll.u32 %v9493_v32, %v9549_v8  ;;  %v1253_v28 = vshrl.u32 %v9494_v20, %v9550_v62  ;;  %v1255_v35 = vshll.u32 %v9494_v20, %v9549_v8  ;;  %v1469_v43 = vshrl.u32 %v1464_v10, 16  ;;  %v9553_v10 = vld [vmem:[#allocation31_spill] sm:$0xff] }
 0x1ac   :  { %v1663_v52 = vmul.f32 %v1662_v56, %v1660_v46  ;;  %v1478_v47 = vadd.s32 %v1477_v45, %v1467_v6  ;;  %v1256_v14 = vshrl.u32 %v9471_v27, %v9550_v62  ;;  %v7638_v37 = vadd.s32 %v1472_v23, %v1468_v34  ;;  %v9554_v34 = vld [vmem:[#allocation23_spill] sm:$0xff] }
 0x1ad   :  { %v7640_v60 = vor.u32 %v1250_v50, %v1249_v29  ;;  %v7642_v16 = vor.u32 %v1253_v28, %v1252_v31  ;;  %vm1266_vm8 = vcmp.lt.s32.totalorder %v9551_v21, 3  ;;  %vm1112_vm11 = vcmp.lt.s32.totalorder %v9552_v51, 4  ;;  %v9555_v29 = vld [vmem:[#allocation28_spill] sm:$0xff]  ;;  %v9556_v31 = vld [vmem:[#allocation50_spill] sm:$0xff] }
 0x1ae   :  { %v1664_v0 = vxor.u32 2147483648, %v1663_v52  ;;  %v1479_v36 = vadd.s32 %v1478_v47, %v1469_v43  ;;  %v7646_v38 = vor.u32 %v1256_v14, %v1255_v35  ;;  %vm1264_vm7 = vcmp.lt.s32.totalorder %v9551_v21, 1 }
 0x1af   :  { %vm1482_vm1 = vc.u32 %v7622_v13, %v7638_v37  ;;  %vm1265_vm0 = vcmp.lt.s32.totalorder %v9551_v21, 2  ;;  %v1278_v23 = vsel %vm1266_vm8, %v9554_v34, %v9553_v10  ;;  %v7656_v61 = vshll.u32 %v1240_v49, 8 }
 0x1b0   :  { %v624_v4 = vsel %vm623_vm5, %v7059_v3, 0  ;;  %v1665_v59 = vsel %vm1544_vm3, %v1664_v0, %v1663_v52  ;;  %v1480_v57 = vmul.u32 %v7504_v12, %v1426_v42  ;;  %v1483_v54 = vadd.s32 1, %v1479_v36 }
 0x1b1   :  { %v7667_v6 = vsel %vm7611_vm9, %v9529_v19, %v1665_v59  ;;  %v1686_v15 = vadd.s32 3, %v1669_v40  ;;  %v1272_v8 = vsel %vm1264_vm7, %v7640_v60, %v7642_v16  ;;  %v1276_v3 = vsel %vm1264_vm7, %v7642_v16, %v7646_v38 }
 0x1b2   :  { %v1670_v12 = vmul.f32 %v7667_v6, %v7667_v6  ;;  %v1484_v42 = vsel %vm1482_vm1, %v1483_v54, %v1479_v36  ;;  %v1274_v25 = vsel %vm1266_vm8, %v7646_v38, %v9555_v29  ;;  %v1279_v46 = vsel %vm1265_vm0, %v1276_v3, %v1278_v23 }
 0x1b3   :  { %v1485_v56 = vadd.s32 %v1484_v42, %v1480_v57  ;;  %v1281_v45 = vand.u32 65535, %v7656_v61  ;;  %v7687_v49 = vshrl.u32 %v7656_v61, 16  ;;  %v1283_v50 = vand.u32 65535, %v1279_v46 }
 0x1b4   :  { %v1671_v35 = vmul.f32 -0.001358992, %v1670_v12  ;;  %v1678_v52 = vmul.f32 -0.00019511016, %v1670_v12  ;;  %v1284_v43 = vshrl.u32 %v1279_v46, 16  ;;  %v7690_v47 = vand.u32 3, %v1669_v40 }
 0x1b5   :  { %v1486_v14 = vadd.s32 536870912, %v1485_v56  ;;  %v7694_v0 = vsel %vm1265_vm0, %v1272_v8, %v1274_v25  ;;  %v7697_v36 = vmul.u32 %v1283_v50, %v7687_v49  ;;  %v1285_v23 = vmul.u32 %v1283_v50, %v1281_v45 }
 0x1b6   :  { %v1672_v10 = vadd.f32 0.041655596, %v1671_v35  ;;  %v1679_v34 = vadd.f32 0.008332121, %v1678_v52  ;;  %v7699_v59 = vmul.u32 %v1284_v43, %v1281_v45  ;;  %v7704_v57 = vsel %vm1112_vm11, %v7508_v63, 920167782 }
 0x1b7   :  { %v7711_v40 = vsel %vm1112_vm11, %v1108_v18, 1326507024  ;;  %v1687_v54 = vand.u32 3, %v1686_v15  ;;  %v7713_v8 = vshrl.u32 %v1486_v14, 30  ;;  %v1306_v25 = vshrl.u32 %v7694_v0, 16 }
 0x1b8   :  { %v1673_v3 = vmul.f32 %v1672_v10, %v1670_v12  ;;  %v1680_v42 = vmul.f32 %v1679_v34, %v1670_v12  ;;  %v1289_v29 = vshll.u32 %v7699_v59, 16  ;;  %v7717_v46 = vshrl.u32 %v624_v4, 5 }
 0x1b9   :  { %v7719_v50 = vand.u32 31, %v624_v4  ;;  %v1488_v35 = vshll.u32 %v7713_v8, 30  ;;  %v1291_v11 = vshll.u32 %v7697_v36, 16  ;;  %vm4166_vm3 = vcmp.eq.s32.totalorder %v7690_v47, 2 }
 0x1ba   :  { %v1674_v2 = vadd.f32 -0.4999988, %v1673_v3  ;;  %v1681_v18 = vadd.f32 -0.16666654, %v1680_v42  ;;  %vm1293_vm6 = vc.u32 %v1285_v23, %v1289_v29  ;;  %v1295_v15 = vadd.s32 %v1289_v29, %v1285_v23 }
 0x1bb   :  { %vm4163_vm12 = vcmp.eq.s32.totalorder %v7690_v47, 0  ;;  %vm1689_vm10 = vcmp.eq.s32.totalorder %v1687_v54, 0  ;;  %vm1692_vm14 = vcmp.eq.s32.totalorder %v1687_v54, 2  ;;  %v7725_v52 = vsub.s32 %v1485_v56, %v1488_v35 }
 0x1bc   :  { %v1305_v14 = vand.u32 65535, %v7694_v0  ;;  %v1675_v4 = vmul.f32 %v1674_v2, %v1670_v12  ;;  %v1682_v10 = vmul.f32 %v1681_v18, %v1670_v12  ;;  %vm4162_vm4 = vcmp.lt.s32.totalorder %v7690_v47, 2 }
 0x1bd   :  { %vm1688_vm2 = vcmp.lt.s32.totalorder %v1687_v54, 2  ;;  %v1294_v34 = vsel %vm1293_vm6, 1, %v9492_v58  ;;  %v7730_v3 = vmul.u32 %v1306_v25, %v1281_v45  ;;  %vm1685_vm5 = vweird.f32 %v9529_v19 }
 0x1be   :  { %vm1490_vm15 = vcmp.lt.s32.totalorder %v7725_v52, 0  ;;  %v1491_v23 = vsub.s32 0, %v7725_v52  ;;  %v1248_v56 = vshrl.u32 %v9489_v55, %v9550_v62  ;;  %v1288_v0 = vmul.u32 %v1284_v43, %v7687_v49 }
 0x1bf   :  { %v1676_v42 = vadd.f32 1.0, %v1675_v4  ;;  %v1683_v12 = vadd.f32 1.0, %v1682_v10  ;;  %vm9557_vm9 = vcmp.lt.s32.totalorder %v9551_v21, 4  ;;  %vm1297_vm13 = vc.u32 %v1295_v15, %v1291_v11 }
 0x1c0   :  { %v1269_v29 = vsel %vm9557_vm9, %v7646_v38, 2102212464  ;;  %v1492_v35 = vsel %vm1490_vm15, %v1491_v23, %v7725_v52  ;;  %v1296_v2 = vadd.s32 %v1294_v34, %v1288_v0  ;;  %v1307_v18 = vmul.u32 %v1305_v14, %v1281_v45 }
 0x1c1   :  { %v7743_v26 = vmul.u32 %v1305_v14, %v7687_v49  ;;  %v1684_v28 = vmul.f32 %v1683_v12, %v7667_v6  ;;  %v1693_v39 = vxor.u32 2147483648, %v1676_v42  ;;  %v1493_v62 = vclz %v1492_v35 }
 0x1c2   :  { %v1311_v43 = vshll.u32 %v7730_v3, 16  ;;  %v1481_v4 = vadd.s32 %v7638_v37, %v7622_v13  ;;  %v1268_v38 = vsel %vm1264_vm7, %v1248_v56, %v7640_v60  ;;  %v1270_v45 = vsel %vm1266_vm8, %v7642_v16, %v1269_v29 }
 0x1c3   :  { %v1298_v11 = vsel %vm1297_vm13, 1, %v9492_v58  ;;  %v1690_v15 = vxor.u32 2147483648, %v1684_v28  ;;  %v5887_v14 = vadd.s32 4294967294, %v1493_v62  ;;  %v1290_v6 = vshrl.u32 %v7699_v59, 16 }
 0x1c4   :  { %v1292_v10 = vshrl.u32 %v7697_v36, 16  ;;  %v4168_v34 = vsel %vm4166_vm3, %v1693_v39, %v1684_v28  ;;  %v1694_v13 = vsel %vm1692_vm14, %v1693_v39, %v1684_v28  ;;  %v1300_v37 = vadd.s32 %v1298_v11, %v1296_v2 }
 0x1c5   :  { %v1313_v60 = vshll.u32 %v7743_v26, 16  ;;  %v4165_v23 = vsel %vm4163_vm12, %v1676_v42, %v1690_v15  ;;  %v1691_v16 = vsel %vm1689_vm10, %v1676_v42, %v1690_v15  ;;  %vm5888_vm8 = vcmp.lt.s32.totalorder %v5887_v14, 0  ;;  %v9558_v15 = vld [vmem:[#allocation38_spill] sm:$0xff] }
 0x1c6   :  { %vm1315_vm7 = vc.u32 %v1307_v18, %v1311_v43  ;;  %v4169_v59 = vsel %vm4162_vm4, %v4165_v23, %v4168_v34  ;;  %v1695_v36 = vsel %vm1688_vm2, %v1691_v16, %v1694_v13  ;;  %v1496_v56 = vsel %vm5888_vm8, 0, %v5887_v14 }
 0x1c7   :  { %v1301_v0 = vadd.s32 %v1300_v37, %v1290_v6  ;;  %v4170_v39 = vsel %vm1685_vm5, nan, %v4169_v59  ;;  %v1696_v28 = vsel %vm1685_vm5, nan, %v1695_v36  ;;  %v1497_v12 = vsub.s32 32, %v1496_v56  ;;  %v9559_v6 = vld [vmem:[#allocation57_spill] sm:$0xff] }
 0x1c8   :  { %v1310_v29 = vmul.u32 %v1306_v25, %v7687_v49  ;;  %5101 = vmatpush.msra.mxu0 %v4170_v39  ;;  %5130 = vmatpush.msra.mxu1 %v1696_v28  ;;  %v1501_v42 = vsub.s32 4294967266, %v1496_v56  ;;  %v1511_v35 = vsub.s32 4, %v7713_v8  ;;  %v1316_v47 = vsel %vm1315_vm7, 1, %v9492_v58 }
 0x1c9   :  { %v1317_v54 = vadd.s32 %v1311_v43, %v1307_v18  ;;  %v1499_v2 = vshrl.u32 %v1481_v4, %v1497_v12  ;;  %v7775_v62 = vadd.s32 %v1301_v0, %v1292_v10  ;;  %v1077_v14 = vand.u32 2147483647, %v9558_v15 }
 0x1ca   :  { %v1318_v11 = vadd.s32 %v1316_v47, %v1310_v29  ;;  %vm957_vm1 = vcmp.lt.s32.totalorder %v9559_v6, 4  ;;  %vm1389_vm3 = vcmp.lt.s32.totalorder %v9542_v1, 0  ;;  %v1498_v19 = vshll.u32 %v7725_v52, %v1496_v56 }
 0x1cb   :  { %v1502_v49 = vadd.s32 127, %v1501_v42  ;;  %vm1319_vm6 = vc.u32 %v1317_v54, %v1313_v60  ;;  %v1271_v25 = vsel %vm1265_vm0, %v1268_v38, %v1270_v45  ;;  %v7784_v18 = vadd.s32 %v1317_v54, %v1313_v60 }
 0x1cc   :  { %v1320_v34 = vsel %vm1319_vm6, 1, %v9492_v58  ;;  %v1084_v43 = vand.u32 8388607, %v1077_v14  ;;  %v1500_v4 = vor.u32 %v1499_v2, %v1498_v19  ;;  %v1312_v13 = vshrl.u32 %v7730_v3, 16 }
 0x1cd   :  { %v1503_v10 = vshll.u32 %v1502_v49, 23  ;;  %v1322_v37 = vadd.s32 %v1320_v34, %v1318_v11  ;;  %v1512_v52 = vsel %vm1389_vm3, %v1511_v35, %v7713_v8  ;;  %v1314_v23 = vshrl.u32 %v7743_v26, 16 }
 0x1ce   :  { %vm1327_vm0 = vc.u32 %v7775_v62, %v7784_v18  ;;  %v1085_v21 = vor.u32 8388608, %v1084_v43  ;;  %v1094_v60 = vshll.u32 %v9489_v55, %v6763_v48  ;;  %v1095_v16 = vshrl.u32 %v9493_v32, %v7056_v9 }
 0x1cf   :  { %v1504_v38 = vor.u32 4788187, %v1503_v10  ;;  %v1323_v45 = vadd.s32 %v1322_v37, %v1312_v13  ;;  %v1097_v3 = vshll.u32 %v9493_v32, %v6763_v48  ;;  %v1098_v8 = vshrl.u32 %v9494_v20, %v7056_v9 }
 0x1d0   :  { %v1100_v26 = vshll.u32 %v9494_v20, %v6763_v48  ;;  %v1101_v59 = vshrl.u32 %v9471_v27, %v7056_v9  ;;  %v1507_v56 = vcvt.s32.f32 %v1500_v4  ;;  %vm1109_vm12 = vcmp.lt.s32.totalorder %v9552_v51, 1 }
 0x1d1   :  { %v1505_v36 = vand.u32 2147483647, %v1504_v38  ;;  %v1324_v0 = vadd.s32 %v1323_v45, %v1314_v23  ;;  %v7808_v39 = vor.u32 %v1095_v16, %v1094_v60  ;;  %v7810_v28 = vor.u32 %v1098_v8, %v1097_v3 }
 0x1d2   :  { %v7812_v12 = vor.u32 %v1101_v59, %v1100_v26  ;;  %vm1111_vm10 = vcmp.lt.s32.totalorder %v9552_v51, 3  ;;  %v7819_v35 = vshll.u32 %v1085_v21, 8  ;;  %v7824_v47 = vsel %vm957_vm1, %v7534_v44, 920167782 }
 0x1d3   :  { %v1508_v29 = vmul.f32 %v1507_v56, %v1505_v36  ;;  %v1328_v42 = vadd.s32 1, %v1324_v0  ;;  %v1123_v48 = vsel %vm1111_vm10, %v7508_v63, %v7711_v40  ;;  %vm7828_vm14 = vcmp.le.f32.partialorder %v1387_v7, 0.7853982 }
 0x1d4   :  { %v1325_v2 = vmul.u32 %v7656_v61, %v1271_v25  ;;  %v1121_v63 = vsel %vm1109_vm12, %v7810_v28, %v7812_v12  ;;  %v1514_v11 = vsel %vm7828_vm14, 0, %v1512_v52  ;;  %vm1110_vm4 = vcmp.lt.s32.totalorder %v9552_v51, 2 }
 0x1d5   :  { %v1509_v40 = vxor.u32 2147483648, %v1508_v29  ;;  %v1329_v19 = vsel %vm1327_vm0, %v1328_v42, %v1324_v0  ;;  %v1117_v61 = vsel %vm1109_vm12, %v7808_v39, %v7810_v28  ;;  %v1119_v49 = vsel %vm1111_vm10, %v7812_v12, %v7704_v57 }
 0x1d6   :  { %v1330_v7 = vadd.s32 %v1329_v19, %v1325_v2  ;;  %v1124_v25 = vsel %vm1110_vm4, %v1121_v63, %v1123_v48  ;;  %v7856_v43 = vand.u32 65535, %v7819_v35  ;;  %v9562_v13 = vor.u32 %v7493_v5, %v7318_v24 }
 0x1d7   :  { %v1510_v34 = vsel %vm1389_vm3, %v1509_v40, %v1508_v29  ;;  %v1128_v4 = vand.u32 65535, %v1124_v25  ;;  %v1129_v10 = vshrl.u32 %v1124_v25, 16  ;;  %v9563_v57 = vand.u32 2139095040, %v9556_v31 }
 0x1d8   :  { %v7863_v37 = vsel %vm957_vm1, %v9562_v13, 1326507024  ;;  %v7872_v23 = vsel %vm7828_vm14, %v9542_v1, %v1510_v34  ;;  %v1331_v21 = vadd.s32 536870912, %v1330_v7  ;;  %v1120_v24 = vsel %vm1110_vm4, %v1117_v61, %v1119_v49 }
 0x1d9   :  { %v7867_v52 = vshrl.u32 %v9563_v57, 23  ;;  %v1515_v38 = vmul.f32 %v7872_v23, %v7872_v23  ;;  %v1127_v5 = vshrl.u32 %v7819_v35, 16  ;;  %v7880_v45 = vmul.u32 %v1129_v10, %v7856_v43 }
 0x1da   :  { %v7883_v60 = vsub.s32 32, %v7719_v50  ;;  %v1531_v16 = vadd.s32 3, %v1514_v11  ;;  %v7885_v3 = vshrl.u32 %v1331_v21, 30  ;;  %v1130_v8 = vmul.u32 %v1128_v4, %v7856_v43 }
 0x1db   :  { %v1516_v26 = vmul.f32 -0.001358992, %v1515_v38  ;;  %v1523_v59 = vmul.f32 -0.00019511016, %v1515_v38  ;;  %v7888_v36 = vmul.u32 %v1128_v4, %v1127_v5  ;;  %v1134_v56 = vshll.u32 %v7880_v45, 16 }
 0x1dc   :  { %v7893_v0 = vshll.u32 %v9471_v27, %v7719_v50  ;;  %v7895_v29 = vand.u32 3, %v1514_v11  ;;  %v1333_v42 = vshll.u32 %v7885_v3, 30  ;;  %v1151_v48 = vshrl.u32 %v1120_v24, 16 }
 0x1dd   :  { %v1517_v54 = vadd.f32 0.041655596, %v1516_v26  ;;  %v1524_v2 = vadd.f32 0.008332121, %v1523_v59  ;;  %vm1138_vm2 = vc.u32 %v1130_v8, %v1134_v56  ;;  %v1140_v63 = vadd.s32 %v1134_v56, %v1130_v8 }
 0x1de   :  { %v7900_v40 = vshll.u32 %v9475_v17, %v7719_v50  ;;  %v7902_v19 = vand.u32 3, %v1531_v16  ;;  %v7904_v61 = vsub.s32 %v1330_v7, %v1333_v42  ;;  %v1150_v49 = vand.u32 65535, %v1120_v24 }
 0x1df   :  { %v1518_v25 = vmul.f32 %v1517_v54, %v1515_v38  ;;  %v1525_v34 = vmul.f32 %v1524_v2, %v1515_v38  ;;  %v1136_v11 = vshll.u32 %v7888_v36, 16  ;;  %v1139_v4 = vsel %vm1138_vm2, 1, %v9492_v58 }
 0x1e0   :  { %vm4012_vm5 = vcmp.eq.s32.totalorder %v7895_v29, 2  ;;  %vm1335_vm15 = vcmp.lt.s32.totalorder %v7904_v61, 0  ;;  %v1336_v13 = vsub.s32 0, %v7904_v61  ;;  %v1133_v57 = vmul.u32 %v1129_v10, %v1127_v5 }
 0x1e1   :  { %v7912_v21 = vmul.u32 %v1151_v48, %v7856_v43  ;;  %v1519_v16 = vadd.f32 -0.4999988, %v1518_v25  ;;  %v1526_v7 = vadd.f32 -0.16666654, %v1525_v34  ;;  %v1093_v24 = vshrl.u32 %v9489_v55, %v7056_v9 }
 0x1e2   :  { %vm1142_vm9 = vc.u32 %v1140_v63, %v1136_v11  ;;  %vm4009_vm13 = vcmp.eq.s32.totalorder %v7895_v29, 0  ;;  %vm1534_vm8 = vcmp.eq.s32.totalorder %v7902_v19, 0  ;;  %vm1537_vm7 = vcmp.eq.s32.totalorder %v7902_v19, 2 }
 0x1e3   :  { %v1326_v8 = vadd.s32 %v7784_v18, %v7775_v62  ;;  %v1337_v10 = vsel %vm1335_vm15, %v1336_v13, %v7904_v61  ;;  %v1141_v26 = vadd.s32 %v1139_v4, %v1133_v57  ;;  %v1520_v59 = vmul.f32 %v1519_v16, %v1515_v38 }
 0x1e4   :  { %v1527_v56 = vmul.f32 %v1526_v7, %v1515_v38  ;;  %vm4008_vm3 = vcmp.lt.s32.totalorder %v7895_v29, 2  ;;  %vm1533_vm6 = vcmp.lt.s32.totalorder %v7902_v19, 2  ;;  %v1338_v9 = vclz %v1337_v10 }
 0x1e5   :  { %v1113_v42 = vsel %vm1109_vm12, %v1093_v24, %v7808_v39  ;;  %vm1530_vm0 = vweird.f32 %v9542_v1  ;;  %v1114_v62 = vsel %vm1112_vm11, %v7812_v12, 2102212464  ;;  %v1143_v18 = vsel %vm1142_vm9, 1, %v9492_v58 }
 0x1e6   :  { %v1154_v54 = vmul.u32 %v1150_v49, %v1127_v5  ;;  %v1156_v38 = vshll.u32 %v7912_v21, 16  ;;  %v1521_v2 = vadd.f32 1.0, %v1520_v59  ;;  %v1528_v63 = vadd.f32 1.0, %v1527_v56 }
 0x1e7   :  { %v5884_v25 = vadd.s32 4294967294, %v1338_v9  ;;  %v1152_v34 = vmul.u32 %v1150_v49, %v7856_v43  ;;  %v1356_v11 = vsub.s32 4, %v7885_v3  ;;  %v1135_v39 = vshrl.u32 %v7880_v45, 16 }
 0x1e8   :  { %v1145_v4 = vadd.s32 %v1143_v18, %v1141_v26  ;;  %v1155_v13 = vmul.u32 %v1151_v48, %v1127_v5  ;;  %v1529_v57 = vmul.f32 %v1528_v63, %v7872_v23  ;;  %v1538_v16 = vxor.u32 2147483648, %v1521_v2 }
 0x1e9   :  { %vm5885_vm11 = vcmp.lt.s32.totalorder %v5884_v25, 0  ;;  %vm1160_vm12 = vc.u32 %v1152_v34, %v1156_v38  ;;  %v1158_v7 = vshll.u32 %v1154_v54, 16  ;;  %v1162_v10 = vadd.s32 %v1156_v38, %v1152_v34 }
 0x1ea   :  { %v1341_v12 = vsel %vm5885_vm11, 0, %v5884_v25  ;;  %v1161_v24 = vsel %vm1160_vm12, 1, %v9492_v58  ;;  %v1535_v59 = vxor.u32 2147483648, %v1529_v57  ;;  %v4014_v43 = vsel %vm4012_vm5, %v1538_v16, %v1529_v57 }
 0x1eb   :  { %v1342_v49 = vsub.s32 32, %v1341_v12  ;;  %v1146_v56 = vadd.s32 %v1145_v4, %v1135_v39  ;;  %v1539_v45 = vsel %vm1537_vm7, %v1538_v16, %v1529_v57  ;;  %v1343_v5 = vshll.u32 %v7904_v61, %v1341_v12 }
 0x1ec   :  { %v1346_v23 = vsub.s32 4294967266, %v1341_v12  ;;  %v1163_v48 = vadd.s32 %v1161_v24, %v1155_v13  ;;  %v4011_v26 = vsel %vm4009_vm13, %v1521_v2, %v1535_v59  ;;  %v1536_v9 = vsel %vm1534_vm8, %v1521_v2, %v1535_v59 }
 0x1ed   :  { %v1344_v18 = vshrl.u32 %v1326_v8, %v1342_v49  ;;  %vm1164_vm14 = vc.u32 %v1162_v10, %v1158_v7  ;;  %v4015_v38 = vsel %vm4008_vm3, %v4011_v26, %v4014_v43  ;;  %v1540_v63 = vsel %vm1533_vm6, %v1536_v9, %v1539_v45 }
 0x1ee   :  { %v1347_v25 = vadd.s32 127, %v1346_v23  ;;  %v1165_v34 = vsel %vm1164_vm14, 1, %v9492_v58  ;;  %vm468_vm2 = vcmp.gt.s32.totalorder %v7530_v22, 0  ;;  %v4016_v61 = vsel %vm1530_vm0, nan, %v4015_v38 }
 0x1ef   :  { %v1541_v39 = vsel %vm1530_vm0, nan, %v1540_v63  ;;  %v1345_v2 = vor.u32 %v1344_v18, %v1343_v5  ;;  %v1137_v8 = vshrl.u32 %v7888_v36, 16  ;;  %5102 = vmatpush.msra.mxu0 %v4016_v61  ;;  %v1115_v19 = vsel %vm1111_vm10, %v7810_v28, %v1114_v62  ;;  %v9567_v36 = vld [vmem:[#allocation39_spill] sm:$0xff] }
 0x1f0   :  { %5131 = vmatpush.msra.mxu1 %v1541_v39  ;;  %v1348_v29 = vshll.u32 %v1347_v25, 23  ;;  %v1157_v4 = vshrl.u32 %v7912_v21, 16  ;;  %v1167_v13 = vadd.s32 %v1165_v34, %v1163_v48  ;;  %v9564_v57 = vand.u32 2147483647, %v9545_v41 }
 0x1f1   :  { %vm1234_vm15 = vcmp.lt.s32.totalorder %v9545_v41, 0  ;;  %v7969_v1 = vadd.s32 %v1146_v56, %v1137_v8  ;;  %v922_v12 = vand.u32 2147483647, %v9567_v36  ;;  %v1159_v62 = vshrl.u32 %v1154_v54, 16 }
 0x1f2   :  { %vm7964_vm5 = vcmp.le.f32.partialorder %v9564_v57, 0.7853982  ;;  %v1349_v24 = vor.u32 4788187, %v1348_v29  ;;  %v1357_v28 = vsel %vm1234_vm15, %v1356_v11, %v7885_v3  ;;  %v1168_v21 = vadd.s32 %v1167_v13, %v1157_v4 }
 0x1f3   :  { %v1352_v59 = vcvt.s32.f32 %v1345_v2  ;;  %v1116_v43 = vsel %vm1110_vm4, %v1113_v42, %v1115_v19  ;;  %v7977_v49 = vadd.s32 %v1162_v10, %v1158_v7  ;;  %v929_v45 = vand.u32 8388607, %v922_v12 }
 0x1f4   :  { %v1350_v56 = vand.u32 2147483647, %v1349_v24  ;;  %v1169_v5 = vadd.s32 %v1168_v21, %v1159_v62  ;;  %v942_v23 = vshll.u32 %v9493_v32, %v6893_v33  ;;  %v943_v48 = vshrl.u32 %v9494_v20, %v7164_v30 }
 0x1f5   :  { %v1359_v3 = vsel %vm7964_vm5, 0, %v1357_v28  ;;  %vm1172_vm10 = vc.u32 %v7969_v1, %v7977_v49  ;;  %v945_v51 = vshll.u32 %v9494_v20, %v6893_v33  ;;  %v946_v42 = vshrl.u32 %v9471_v27, %v7164_v30 }
 0x1f6   :  { %v1353_v54 = vmul.f32 %v1352_v59, %v1350_v56  ;;  %v1170_v11 = vmul.u32 %v7819_v35, %v1116_v43  ;;  %v1173_v7 = vadd.s32 1, %v1169_v5  ;;  %v7994_v10 = vor.u32 %v943_v48, %v942_v23 }
 0x1f7   :  { %v930_v26 = vor.u32 8388608, %v929_v45  ;;  %v940_v9 = vshrl.u32 %v9493_v32, %v7164_v30  ;;  %v947_v18 = vor.u32 %v946_v42, %v945_v51  ;;  %vm956_vm4 = vcmp.lt.s32.totalorder %v9559_v6, 3 }
 0x1f8   :  { %v1354_v38 = vxor.u32 2147483648, %v1353_v54  ;;  %v1174_v63 = vsel %vm1172_vm10, %v1173_v7, %v1169_v5  ;;  %vm954_vm9 = vcmp.lt.s32.totalorder %v9559_v6, 1  ;;  %v968_v25 = vsel %vm956_vm4, %v7534_v44, %v7863_v37 }
 0x1f9   :  { %v1175_v35 = vadd.s32 %v1174_v63, %v1170_v11  ;;  %v939_v34 = vshll.u32 %v9489_v55, %v6893_v33  ;;  %vm955_vm13 = vcmp.lt.s32.totalorder %v9559_v6, 2  ;;  %v966_v61 = vsel %vm954_vm9, %v7994_v10, %v947_v18 }
 0x1fa   :  { %v639_v39 = vshrl.u32 %v9475_v17, %v7883_v60  ;;  %v469_v2 = vsel %vm468_vm2, %v7530_v22, 0  ;;  %v1355_v44 = vsel %vm1234_vm15, %v1354_v38, %v1353_v54  ;;  %v969_v37 = vsel %vm955_vm13, %v966_v61, %v968_v25 }
 0x1fb   :  { %v8022_v33 = vsel %vm7964_vm5, %v9545_v41, %v1355_v44  ;;  %v1176_v8 = vadd.s32 536870912, %v1175_v35  ;;  %v941_v29 = vor.u32 %v940_v9, %v939_v34  ;;  %v8024_v19 = vshll.u32 %v930_v26, 8 }
 0x1fc   :  { %v8028_v4 = vshrl.u32 %v9518_v53, %v7883_v60  ;;  %v1360_v22 = vmul.f32 %v8022_v33, %v8022_v33  ;;  %v1376_v13 = vadd.s32 3, %v1359_v3  ;;  %v974_v57 = vshrl.u32 %v969_v37, 16 }
 0x1fd   :  { %v8032_v24 = vshrl.u32 %v469_v2, 5  ;;  %v8034_v28 = vand.u32 31, %v469_v2  ;;  %v8036_v16 = vshrl.u32 %v1176_v8, 30  ;;  %v8039_v62 = vand.u32 65535, %v8024_v19 }
 0x1fe   :  { %v8042_v21 = vor.u32 %v639_v39, %v7893_v0  ;;  %v1361_v59 = vmul.f32 -0.001358992, %v1360_v22  ;;  %v1368_v43 = vmul.f32 -0.00019511016, %v1360_v22  ;;  %v973_v45 = vand.u32 65535, %v969_v37 }
 0x1ff   :  { %v1178_v56 = vshll.u32 %v8036_v16, 30  ;;  %v962_v5 = vsel %vm954_vm9, %v941_v29, %v7994_v10  ;;  %v964_v23 = vsel %vm956_vm4, %v947_v18, %v7824_v47  ;;  %v8052_v48 = vmul.u32 %v974_v57, %v8039_v62 }
 0x200   :  { %v1362_v51 = vadd.f32 0.041655596, %v1361_v59  ;;  %v1369_v42 = vadd.f32 0.008332121, %v1368_v43  ;;  %v8054_v0 = vand.u32 3, %v1359_v3  ;;  %v8056_v54 = vand.u32 3, %v1376_v13 }
 0x201   :  { %v643_v11 = vor.u32 %v8028_v4, %v7900_v40  ;;  %v8060_v7 = vsub.s32 %v1175_v35, %v1178_v56  ;;  %v8063_v26 = vshrl.u32 %v8024_v19, 16  ;;  %v979_v9 = vshll.u32 %v8052_v48, 16 }
 0x202   :  { %v1363_v47 = vmul.f32 %v1362_v51, %v1360_v22  ;;  %v1370_v38 = vmul.f32 %v1369_v42, %v1360_v22  ;;  %v965_v63 = vsel %vm955_vm13, %v962_v5, %v964_v23  ;;  %v975_v3 = vmul.u32 %v973_v45, %v8039_v62 }
 0x203   :  { %v8070_v25 = vsub.s32 32, %v8034_v28  ;;  %vm1180_vm8 = vcmp.lt.s32.totalorder %v8060_v7, 0  ;;  %v1181_v35 = vsub.s32 0, %v8060_v7  ;;  %v8075_v34 = vmul.u32 %v973_v45, %v8063_v26 }
 0x204   :  { %v1364_v61 = vadd.f32 -0.4999988, %v1363_v47  ;;  %v1371_v39 = vadd.f32 -0.16666654, %v1370_v38  ;;  %vm3858_vm7 = vcmp.eq.s32.totalorder %v8054_v0, 2  ;;  %vm1382_vm3 = vcmp.eq.s32.totalorder %v8056_v54, 2 }
 0x205   :  { %v1171_v2 = vadd.s32 %v7977_v49, %v7969_v1  ;;  %vm8081_vm6 = vc.u32 %v975_v3, %v979_v9  ;;  %vm3855_vm0 = vcmp.eq.s32.totalorder %v8054_v0, 0  ;;  %vm1379_vm11 = vcmp.eq.s32.totalorder %v8056_v54, 0 }
 0x206   :  { %v1182_v37 = vsel %vm1180_vm8, %v1181_v35, %v8060_v7  ;;  %v938_v8 = vshrl.u32 %v9489_v55, %v7164_v30  ;;  %v959_v13 = vsel %vm957_vm1, %v947_v18, 2102212464  ;;  %v996_v59 = vshrl.u32 %v965_v63, 16 }
 0x207   :  { %v1365_v43 = vmul.f32 %v1364_v61, %v1360_v22  ;;  %v1372_v45 = vmul.f32 %v1371_v39, %v1360_v22  ;;  %vm3854_vm12 = vcmp.lt.s32.totalorder %v8054_v0, 2  ;;  %vm1378_vm14 = vcmp.lt.s32.totalorder %v8056_v54, 2 }
 0x208   :  { %v1183_v1 = vclz %v1182_v37  ;;  %v995_v49 = vand.u32 65535, %v965_v63  ;;  %vm1375_vm2 = vweird.f32 %v9545_v41  ;;  %v978_v56 = vmul.u32 %v974_v57, %v8063_v26 }
 0x209   :  { %v981_v5 = vshll.u32 %v8075_v34, 16  ;;  %v984_v30 = vsel %vm8081_vm6, 1, %v9492_v58  ;;  %v985_v18 = vadd.s32 %v979_v9, %v975_v3  ;;  %v1366_v23 = vadd.f32 1.0, %v1365_v43 }
 0x20a   :  { %v1373_v51 = vadd.f32 1.0, %v1372_v45  ;;  %v5881_v22 = vadd.s32 4294967294, %v1183_v1  ;;  %v958_v42 = vsel %vm954_vm9, %v938_v8, %v941_v29  ;;  %v960_v47 = vsel %vm956_vm4, %v7994_v10, %v959_v13 }
 0x20b   :  { %v986_v38 = vadd.s32 %v984_v30, %v978_v56  ;;  %vm987_vm1 = vc.u32 %v985_v18, %v981_v5  ;;  %v998_v57 = vmul.u32 %v996_v59, %v8039_v62  ;;  %v1383_v35 = vxor.u32 2147483648, %v1366_v23 }
 0x20c   :  { %v1374_v63 = vmul.f32 %v1373_v51, %v8022_v33  ;;  %vm5882_vm5 = vcmp.lt.s32.totalorder %v5881_v22, 0  ;;  %v988_v9 = vsel %vm987_vm1, 1, %v9492_v58  ;;  %vm1079_vm15 = vcmp.lt.s32.totalorder %v9558_v15, 0 }
 0x20d   :  { %v1186_v3 = vsel %vm5882_vm5, 0, %v5881_v22  ;;  %v1201_v61 = vsub.s32 4, %v8036_v16  ;;  %v980_v29 = vshrl.u32 %v8052_v48, 16  ;;  %v997_v39 = vmul.u32 %v995_v49, %v8039_v62 }
 0x20e   :  { %v1380_v10 = vxor.u32 2147483648, %v1374_v63  ;;  %v1187_v44 = vsub.s32 32, %v1186_v3  ;;  %v990_v37 = vadd.s32 %v988_v9, %v986_v38  ;;  %v999_v8 = vmul.u32 %v995_v49, %v8063_v26 }
 0x20f   :  { %v3860_v33 = vsel %vm3858_vm7, %v1383_v35, %v1374_v63  ;;  %v1384_v13 = vsel %vm1382_vm3, %v1383_v35, %v1374_v63  ;;  %v1191_v43 = vsub.s32 4294967266, %v1186_v3  ;;  %v1001_v45 = vshll.u32 %v998_v57, 16 }
 0x210   :  { %v3857_v1 = vsel %vm3855_vm0, %v1366_v23, %v1380_v10  ;;  %v1381_v48 = vsel %vm1379_vm11, %v1366_v23, %v1380_v10  ;;  %v1188_v62 = vshll.u32 %v8060_v7, %v1186_v3  ;;  %v1189_v56 = vshrl.u32 %v1171_v2, %v1187_v44 }
 0x211   :  { %v3861_v49 = vsel %vm3854_vm12, %v3857_v1, %v3860_v33  ;;  %v1385_v5 = vsel %vm1378_vm14, %v1381_v48, %v1384_v13  ;;  %v1192_v30 = vadd.s32 127, %v1191_v43  ;;  %v1000_v18 = vmul.u32 %v996_v59, %v8063_v26  ;;  %v9572_v59 = vld [vmem:[#allocation8_spill] sm:$0xff]  ;;  %v9574_v13 = vld [vmem:[#allocation29_spill] sm:$0xff] }
 0x212   :  { %v3862_v51 = vsel %vm1375_vm2, nan, %v3861_v49  ;;  %v1386_v22 = vsel %vm1375_vm2, nan, %v1385_v5  ;;  %v1190_v38 = vor.u32 %v1189_v56, %v1188_v62  ;;  %v991_v23 = vadd.s32 %v990_v37, %v980_v29  ;;  %v9573_v37 = vld [vmem:[#allocation26_spill] sm:$0xff] }
 0x213   :  { %5103 = vmatpush.msra.mxu0 %v3862_v51  ;;  %5132 = vmatpush.msra.mxu1 %v1386_v22  ;;  %v1193_v7 = vshll.u32 %v1192_v30, 23  ;;  %v1003_v2 = vshll.u32 %v999_v8, 16  ;;  %vm1005_vm10 = vc.u32 %v997_v39, %v1001_v45  ;;  %v1007_v0 = vadd.s32 %v1001_v45, %v997_v39  ;;  %v9575_v56 = vld [vmem:[#allocation30_spill] sm:$0xff] }
 0x214   :  { %vm8133_vm4 = vcmp.le.f32.partialorder %v1077_v14, 0.7853982  ;;  %v961_v26 = vsel %vm955_vm13, %v958_v42, %v960_v47  ;;  %v1006_v41 = vsel %vm1005_vm10, 1, %v9492_v58  ;;  %v767_v63 = vand.u32 2147483647, %v9572_v59 }
 0x215   :  { %v1194_v35 = vor.u32 4788187, %v1193_v7  ;;  %v982_v9 = vshrl.u32 %v8075_v34, 16  ;;  %v1008_v3 = vadd.s32 %v1006_v41, %v1000_v18  ;;  %vm1009_vm9 = vc.u32 %v1007_v0, %v1003_v2 }
 0x216   :  { %vm647_vm8 = vcmp.lt.s32.totalorder %v7717_v46, 4  ;;  %v1202_v14 = vsel %vm1079_vm15, %v1201_v61, %v8036_v16  ;;  %v1002_v29 = vshrl.u32 %v998_v57, 16  ;;  %v1010_v39 = vsel %vm1009_vm9, 1, %v9492_v58 }
 0x217   :  { %v774_v6 = vand.u32 8388607, %v767_v63  ;;  %v1195_v42 = vand.u32 2147483647, %v1194_v35  ;;  %v1197_v47 = vcvt.s32.f32 %v1190_v38  ;;  %v8149_v10 = vadd.s32 %v991_v23, %v982_v9 }
 0x218   :  { %v1012_v44 = vadd.s32 %v1010_v39, %v1008_v3  ;;  %v1004_v34 = vshrl.u32 %v999_v8, 16  ;;  %v784_v33 = vshll.u32 %v9489_v55, %v9573_v37  ;;  %v785_v43 = vshrl.u32 %v9493_v32, %v9574_v13 }
 0x219   :  { %v787_v16 = vshll.u32 %v9493_v32, %v9573_v37  ;;  %v1198_v57 = vmul.f32 %v1197_v47, %v1195_v42  ;;  %v788_v45 = vshrl.u32 %v9494_v20, %v9574_v13  ;;  %v790_v1 = vshll.u32 %v9494_v20, %v9573_v37 }
 0x21a   :  { %v1013_v61 = vadd.s32 %v1012_v44, %v1002_v29  ;;  %v8161_v48 = vadd.s32 %v1007_v0, %v1003_v2  ;;  %v775_v8 = vor.u32 8388608, %v774_v6  ;;  %v791_v62 = vshrl.u32 %v9471_v27, %v9574_v13  ;;  %v9576_v2 = vld [vmem:[#allocation40_spill] sm:$0xff]  ;;  %v9577_v0 = vld [vmem:[#allocation34_spill] sm:$0xff] }
 0x21b   :  { %vm799_vm13 = vcmp.lt.s32.totalorder %v9575_v56, 1  ;;  %v1199_v49 = vxor.u32 2147483648, %v1198_v57  ;;  %v8166_v30 = vor.u32 %v788_v45, %v787_v16  ;;  %vm801_vm7 = vcmp.lt.s32.totalorder %v9575_v56, 3 }
 0x21c   :  { %v1014_v5 = vadd.s32 %v1013_v61, %v1004_v34  ;;  %v8171_v18 = vshll.u32 %v9475_v17, %v8034_v28  ;;  %v1204_v51 = vsel %vm8133_vm4, 0, %v1202_v14  ;;  %vm1017_vm3 = vc.u32 %v8149_v10, %v8161_v48 }
 0x21d   :  { %v8177_v22 = vor.u32 %v791_v62, %v790_v1  ;;  %v1200_v38 = vsel %vm1079_vm15, %v1199_v49, %v1198_v57  ;;  %v8181_v7 = vor.u32 %v785_v43, %v784_v33  ;;  %v813_v41 = vsel %vm801_vm7, %v9577_v0, %v9576_v2  ;;  %v9578_v43 = vld [vmem:[#allocation36_spill] sm:$0xff] }
 0x21e   :  { %v1018_v23 = vadd.s32 1, %v1014_v5  ;;  %v8190_v35 = vsel %vm8133_vm4, %v9558_v15, %v1200_v38  ;;  %v1015_v9 = vmul.u32 %v8024_v19, %v961_v26  ;;  %v8197_v14 = vshll.u32 %v775_v8, 8 }
 0x21f   :  { %v811_v3 = vsel %vm799_vm13, %v8166_v30, %v8177_v22  ;;  %v8202_v29 = vsel %vm647_vm8, %v8042_v21, 920167782  ;;  %v1205_v39 = vmul.f32 %v8190_v35, %v8190_v35  ;;  %vm800_vm6 = vcmp.lt.s32.totalorder %v9575_v56, 2 }
 0x220   :  { %v1019_v54 = vsel %vm1017_vm3, %v1018_v23, %v1014_v5  ;;  %v8209_v19 = vshrl.u32 %v9518_v53, %v8070_v25  ;;  %v1221_v26 = vadd.s32 3, %v1204_v51  ;;  %v814_v42 = vsel %vm800_vm6, %v811_v3, %v813_v41 }
 0x221   :  { %v1020_v6 = vadd.s32 %v1019_v54, %v1015_v9  ;;  %v1206_v47 = vmul.f32 -0.001358992, %v1205_v39  ;;  %v1213_v44 = vmul.f32 -0.00019511016, %v1205_v39  ;;  %v807_v34 = vsel %vm799_vm13, %v8181_v7, %v8166_v30 }
 0x222   :  { %v818_v37 = vand.u32 65535, %v814_v42  ;;  %v809_v16 = vsel %vm801_vm7, %v8177_v22, %v9578_v43  ;;  %v8222_v57 = vand.u32 65535, %v8197_v14  ;;  %v819_v61 = vshrl.u32 %v814_v42, 16 }
 0x223   :  { %v1021_v33 = vadd.s32 536870912, %v1020_v6  ;;  %v1207_v45 = vadd.f32 0.041655596, %v1206_v47  ;;  %v1214_v1 = vadd.f32 0.008332121, %v1213_v44  ;;  %v8224_v8 = vand.u32 3, %v1204_v51 }
 0x224   :  { %v8227_v62 = vshrl.u32 %v8197_v14, 16  ;;  %v8234_v49 = vsel %vm647_vm8, %v643_v11, 1326507024  ;;  %v1222_v5 = vand.u32 3, %v1221_v26  ;;  %v8239_v23 = vmul.u32 %v819_v61, %v8222_v57 }
 0x225   :  { %v8236_v38 = vshrl.u32 %v1021_v33, 30  ;;  %v1208_v2 = vmul.f32 %v1207_v45, %v1205_v39  ;;  %v1215_v0 = vmul.f32 %v1214_v1, %v1205_v39  ;;  %v8243_v51 = vsel %vm800_vm6, %v807_v34, %v809_v16 }
 0x226   :  { %v8246_v41 = vmul.u32 %v818_v37, %v8227_v62  ;;  %v8250_v40 = vshrl.u32 %v9475_v17, %v8070_v25  ;;  %v820_v11 = vmul.u32 %v818_v37, %v8222_v57  ;;  %v824_v9 = vshll.u32 %v8239_v23, 16 }
 0x227   :  { %v1023_v4 = vshll.u32 %v8236_v38, 30  ;;  %v488_v3 = vor.u32 %v8209_v19, %v8171_v18  ;;  %v1209_v54 = vadd.f32 -0.4999988, %v1208_v2  ;;  %v1216_v26 = vadd.f32 -0.16666654, %v1215_v0 }
 0x228   :  { %vm3704_vm0 = vcmp.eq.s32.totalorder %v8224_v8, 2  ;;  %vm3701_vm11 = vcmp.eq.s32.totalorder %v8224_v8, 0  ;;  %vm828_vm12 = vc.u32 %v820_v11, %v824_v9  ;;  %v830_v47 = vadd.s32 %v824_v9, %v820_v11 }
 0x229   :  { %v8259_v42 = vsub.s32 %v1020_v6, %v1023_v4  ;;  %v841_v44 = vshrl.u32 %v8243_v51, 16  ;;  %v1210_v34 = vmul.f32 %v1209_v54, %v1205_v39  ;;  %v1217_v33 = vmul.f32 %v1216_v26, %v1205_v39 }
 0x22a   :  { %vm3700_vm14 = vcmp.lt.s32.totalorder %v8224_v8, 2  ;;  %vm1223_vm2 = vcmp.lt.s32.totalorder %v1222_v5, 2  ;;  %v826_v37 = vshll.u32 %v8246_v41, 16  ;;  %vm1220_vm1 = vweird.f32 %v9558_v15 }
 0x22b   :  { %vm1025_vm5 = vcmp.lt.s32.totalorder %v8259_v42, 0  ;;  %v1026_v43 = vsub.s32 0, %v8259_v42  ;;  %v783_v6 = vshrl.u32 %v9489_v55, %v9574_v13  ;;  %v829_v16 = vsel %vm828_vm12, 1, %v9492_v58 }
 0x22c   :  { %v1211_v45 = vadd.f32 1.0, %v1210_v34  ;;  %v1218_v1 = vadd.f32 1.0, %v1217_v33  ;;  %v823_v39 = vmul.u32 %v819_v61, %v8227_v62  ;;  %vm832_vm15 = vc.u32 %v830_v47, %v826_v37 }
 0x22d   :  { %v1027_v2 = vsel %vm1025_vm5, %v1026_v43, %v8259_v42  ;;  %vm9579_vm10 = vcmp.lt.s32.totalorder %v9575_v56, 4  ;;  %v840_v4 = vand.u32 65535, %v8243_v51  ;;  %v843_v11 = vmul.u32 %v841_v44, %v8222_v57 }
 0x22e   :  { %v804_v0 = vsel %vm9579_vm10, %v8177_v22, 2102212464  ;;  %v1219_v9 = vmul.f32 %v1218_v1, %v8190_v35  ;;  %v1228_v13 = vxor.u32 2147483648, %v1211_v45  ;;  %v1028_v54 = vclz %v1027_v2 }
 0x22f   :  { %v831_v26 = vadd.s32 %v829_v16, %v823_v39  ;;  %vm1224_vm4 = vcmp.eq.s32.totalorder %v1222_v5, 0  ;;  %vm1227_vm9 = vcmp.eq.s32.totalorder %v1222_v5, 2  ;;  %v1016_v61 = vadd.s32 %v8161_v48, %v8149_v10 }
 0x230   :  { %v833_v47 = vsel %vm832_vm15, 1, %v9492_v58  ;;  %v1225_v34 = vxor.u32 2147483648, %v1219_v9  ;;  %v5878_v33 = vadd.s32 4294967294, %v1028_v54  ;;  %v803_v22 = vsel %vm799_vm13, %v783_v6, %v8181_v7 }
 0x231   :  { %v805_v35 = vsel %vm801_vm7, %v8166_v30, %v804_v0  ;;  %v3706_v51 = vsel %vm3704_vm0, %v1228_v13, %v1219_v9  ;;  %v1229_v37 = vsel %vm1227_vm9, %v1228_v13, %v1219_v9  ;;  %v844_v43 = vmul.u32 %v840_v4, %v8227_v62 }
 0x232   :  { %v846_v16 = vshll.u32 %v843_v11, 16  ;;  %v3703_v10 = vsel %vm3701_vm11, %v1211_v45, %v1225_v34  ;;  %v1226_v48 = vsel %vm1224_vm4, %v1211_v45, %v1225_v34  ;;  %vm5879_vm3 = vcmp.lt.s32.totalorder %v5878_v33, 0 }
 0x233   :  { %v835_v1 = vadd.s32 %v833_v47, %v831_v26  ;;  %v3707_v7 = vsel %vm3700_vm14, %v3703_v10, %v3706_v51  ;;  %v1230_v6 = vsel %vm1223_vm2, %v1226_v48, %v1229_v37  ;;  %v1031_v39 = vsel %vm5879_vm3, 0, %v5878_v33  ;;  %v9580_v33 = vld [vmem:[#allocation44_spill] sm:$0xff] }
 0x234   :  { %v842_v30 = vmul.u32 %v840_v4, %v8222_v57  ;;  %v3708_v2 = vsel %vm1220_vm1, nan, %v3707_v7  ;;  %v1231_v0 = vsel %vm1220_vm1, nan, %v1230_v6  ;;  %v1032_v9 = vsub.s32 32, %v1031_v39 }
 0x235   :  { %v825_v13 = vshrl.u32 %v8239_v23, 16  ;;  %5104 = vmatpush.msra.mxu0 %v3708_v2  ;;  %5133 = vmatpush.msra.mxu1 %v1231_v0  ;;  %v1036_v45 = vsub.s32 4294967266, %v1031_v39  ;;  %v845_v8 = vmul.u32 %v841_v44, %v8227_v62  ;;  %v848_v54 = vshll.u32 %v844_v43, 16 }
 0x236   :  { %vm850_vm13 = vc.u32 %v842_v30, %v846_v16  ;;  %v1034_v5 = vshrl.u32 %v1016_v61, %v1032_v9  ;;  %v852_v4 = vadd.s32 %v846_v16, %v842_v30  ;;  %vm924_vm7 = vcmp.lt.s32.totalorder %v9567_v36, 0 }
 0x237   :  { %v836_v26 = vadd.s32 %v835_v1, %v825_v13  ;;  %v851_v57 = vsel %vm850_vm13, 1, %v9492_v58  ;;  %v1033_v15 = vshll.u32 %v8259_v42, %v1031_v39  ;;  %v1037_v47 = vadd.s32 127, %v1036_v45 }
 0x238   :  { %v853_v34 = vadd.s32 %v851_v57, %v845_v8  ;;  %v612_v23 = vand.u32 2147483647, %v9580_v33  ;;  %v1046_v51 = vsub.s32 4, %v8236_v38  ;;  %v806_v62 = vsel %vm800_vm6, %v803_v22, %v805_v35 }
 0x239   :  { %v827_v44 = vshrl.u32 %v8246_v41, 16  ;;  %vm854_vm0 = vc.u32 %v852_v4, %v848_v54  ;;  %v1035_v61 = vor.u32 %v1034_v5, %v1033_v15  ;;  %v1038_v37 = vshll.u32 %v1037_v47, 23 }
 0x23a   :  { %v855_v16 = vsel %vm854_vm0, 1, %v9492_v58  ;;  %v619_v10 = vand.u32 8388607, %v612_v23  ;;  %vm8315_vm11 = vcmp.le.f32.partialorder %v922_v12, 0.7853982  ;;  %v847_v56 = vshrl.u32 %v843_v11, 16 }
 0x23b   :  { %v8319_v48 = vadd.s32 %v836_v26, %v827_v44  ;;  %v849_v22 = vshrl.u32 %v844_v43, 16  ;;  %v857_v35 = vadd.s32 %v855_v16, %v853_v34  ;;  %v1039_v41 = vor.u32 4788187, %v1038_v37 }
 0x23c   :  { %v8321_v1 = vadd.s32 %v852_v4, %v848_v54  ;;  %v620_v7 = vor.u32 8388608, %v619_v10  ;;  %v630_v6 = vshrl.u32 %v9493_v32, %v7883_v60  ;;  %v629_v30 = vshll.u32 %v9489_v55, %v7719_v50 }
 0x23d   :  { %v858_v39 = vadd.s32 %v857_v35, %v847_v56  ;;  %v632_v12 = vshll.u32 %v9493_v32, %v7719_v50  ;;  %v633_v2 = vshrl.u32 %v9494_v20, %v7883_v60  ;;  %v1040_v11 = vand.u32 2147483647, %v1039_v41 }
 0x23e   :  { %v1042_v43 = vcvt.s32.f32 %v1035_v61  ;;  %v635_v0 = vshll.u32 %v9494_v20, %v7719_v50  ;;  %v636_v9 = vshrl.u32 %v9471_v27, %v7883_v60  ;;  %v8335_v45 = vor.u32 %v630_v6, %v629_v30 }
 0x23f   :  { %v859_v13 = vadd.s32 %v858_v39, %v849_v22  ;;  %v8337_v8 = vor.u32 %v633_v2, %v632_v12  ;;  %vm646_vm6 = vcmp.lt.s32.totalorder %v7717_v46, 3  ;;  %vm862_vm12 = vc.u32 %v8319_v48, %v8321_v1 }
 0x240   :  { %v1043_v54 = vmul.f32 %v1042_v43, %v1040_v11  ;;  %v8342_v5 = vor.u32 %v636_v9, %v635_v0  ;;  %v658_v50 = vsel %vm646_vm6, %v8042_v21, %v8234_v49  ;;  %v1047_v26 = vsel %vm924_vm7, %v1046_v51, %v8236_v38 }
 0x241   :  { %v863_v57 = vadd.s32 1, %v859_v13  ;;  %vm644_vm14 = vcmp.lt.s32.totalorder %v7717_v46, 1  ;;  %v8352_v4 = vshll.u32 %v620_v7, 8  ;;  %v860_v47 = vmul.u32 %v8197_v14, %v806_v62 }
 0x242   :  { %v1044_v15 = vxor.u32 2147483648, %v1043_v54  ;;  %vm645_vm2 = vcmp.lt.s32.totalorder %v7717_v46, 2  ;;  %v656_v34 = vsel %vm644_vm14, %v8337_v8, %v8342_v5  ;;  %v652_v49 = vsel %vm644_vm14, %v8335_v45, %v8337_v8 }
 0x243   :  { %v864_v21 = vsel %vm862_vm12, %v863_v57, %v859_v13  ;;  %v654_v38 = vsel %vm646_vm6, %v8342_v5, %v8202_v29  ;;  %v659_v14 = vsel %vm645_vm2, %v656_v34, %v658_v50  ;;  %v1049_v62 = vsel %vm8315_vm11, 0, %v1047_v26 }
 0x244   :  { %v1045_v51 = vsel %vm924_vm7, %v1044_v15, %v1043_v54  ;;  %v865_v44 = vadd.s32 %v864_v21, %v860_v47  ;;  %v8375_v61 = vand.u32 65535, %v8352_v4  ;;  %v8383_v29 = vshrl.u32 %v8352_v4, 16 }
 0x245   :  { %v8380_v37 = vsel %vm8315_vm11, %v9567_v36, %v1045_v51  ;;  %v663_v16 = vand.u32 65535, %v659_v14  ;;  %v664_v10 = vshrl.u32 %v659_v14, 16  ;;  %v483_v56 = vshll.u32 %v9471_v27, %v8034_v28 }
 0x246   :  { %v1050_v22 = vmul.f32 %v8380_v37, %v8380_v37  ;;  %v866_v35 = vadd.s32 536870912, %v865_v44  ;;  %v655_v41 = vsel %vm645_vm2, %v652_v49, %v654_v38  ;;  %vm492_vm1 = vcmp.lt.s32.totalorder %v8032_v24, 4 }
 0x247   :  { %v1066_v42 = vadd.s32 3, %v1049_v62  ;;  %v8393_v7 = vmul.u32 %v664_v10, %v8375_v61  ;;  %v8396_v6 = vmul.u32 %v663_v16, %v8383_v29  ;;  %v8399_v39 = vor.u32 %v8250_v40, %v483_v56 }
 0x248   :  { %v1051_v30 = vmul.f32 -0.001358992, %v1050_v22  ;;  %v1058_v12 = vmul.f32 -0.00019511016, %v1050_v22  ;;  %v8401_v2 = vshrl.u32 %v866_v35, 30  ;;  %v665_v43 = vmul.u32 %v663_v16, %v8375_v61 }
 0x249   :  { %v8408_v11 = vsel %vm492_vm1, %v488_v3, 1326507024  ;;  %v669_v0 = vshll.u32 %v8393_v7, 16  ;;  %v686_v9 = vshrl.u32 %v655_v41, 16  ;;  %v8412_v40 = vand.u32 3, %v1049_v62 }
 0x24a   :  { %v1052_v13 = vadd.f32 0.041655596, %v1051_v30  ;;  %v1059_v54 = vadd.f32 0.008332121, %v1058_v12  ;;  %v868_v50 = vshll.u32 %v8401_v2, 30  ;;  %v1067_v26 = vand.u32 3, %v1066_v42 }
 0x24b   :  { %v671_v57 = vshll.u32 %v8396_v6, 16  ;;  %vm673_vm5 = vc.u32 %v665_v43, %v669_v0  ;;  %v675_v18 = vadd.s32 %v669_v0, %v665_v43  ;;  %v685_v47 = vand.u32 65535, %v655_v41 }
 0x24c   :  { %v1053_v19 = vmul.f32 %v1052_v13, %v1050_v22  ;;  %v1060_v15 = vmul.f32 %v1059_v54, %v1050_v22  ;;  %v8416_v3 = vsub.s32 %v865_v44, %v868_v50  ;;  %v668_v34 = vmul.u32 %v664_v10, %v8383_v29 }
 0x24d   :  { %v674_v21 = vsel %vm673_vm5, 1, %v9492_v58  ;;  %vm677_vm15 = vc.u32 %v675_v18, %v671_v57  ;;  %v8421_v49 = vmul.u32 %v686_v9, %v8375_v61  ;;  %vm3547_vm4 = vcmp.eq.s32.totalorder %v8412_v40, 0 }
 0x24e   :  { %v1054_v38 = vadd.f32 -0.4999988, %v1053_v19  ;;  %v1061_v14 = vadd.f32 -0.16666654, %v1060_v15  ;;  %vm870_vm10 = vcmp.lt.s32.totalorder %v8416_v3, 0  ;;  %v871_v51 = vsub.s32 0, %v8416_v3 }
 0x24f   :  { %vm3550_vm9 = vcmp.eq.s32.totalorder %v8412_v40, 2  ;;  %v676_v62 = vadd.s32 %v674_v21, %v668_v34  ;;  %v678_v44 = vsel %vm677_vm15, 1, %v9492_v58  ;;  %vm3546_vm3 = vcmp.lt.s32.totalorder %v8412_v40, 2 }
 0x250   :  { %v1055_v16 = vmul.f32 %v1054_v38, %v1050_v22  ;;  %v1062_v10 = vmul.f32 %v1061_v14, %v1050_v22  ;;  %vm1068_vm13 = vcmp.lt.s32.totalorder %v1067_v26, 2  ;;  %vm1069_vm7 = vcmp.eq.s32.totalorder %v1067_v26, 0 }
 0x251   :  { %v872_v56 = vsel %vm870_vm10, %v871_v51, %v8416_v3  ;;  %vm1065_vm0 = vweird.f32 %v9567_v36  ;;  %v628_v41 = vshrl.u32 %v9489_v55, %v7883_v60  ;;  %v689_v42 = vmul.u32 %v685_v47, %v8383_v29 }
 0x252   :  { %v873_v35 = vclz %v872_v56  ;;  %v691_v30 = vshll.u32 %v8421_v49, 16  ;;  %v1056_v12 = vadd.f32 1.0, %v1055_v16  ;;  %v1063_v43 = vadd.f32 1.0, %v1062_v10 }
 0x253   :  { %vm1072_vm11 = vcmp.eq.s32.totalorder %v1067_v26, 2  ;;  %v680_v22 = vadd.s32 %v678_v44, %v676_v62  ;;  %v861_v0 = vadd.s32 %v8321_v1, %v8319_v48  ;;  %v648_v54 = vsel %vm644_vm14, %v628_v41, %v8335_v45 }
 0x254   :  { %v5875_v13 = vadd.s32 4294967294, %v873_v35  ;;  %v687_v50 = vmul.u32 %v685_v47, %v8375_v61  ;;  %v1064_v60 = vmul.f32 %v1063_v43, %v8380_v37  ;;  %v1073_v57 = vxor.u32 2147483648, %v1056_v12  ;;  %v9583_v43 = vld [vmem:[#allocation48_spill] sm:$0xff] }
 0x255   :  { %v649_v18 = vsel %vm647_vm8, %v8342_v5, 2102212464  ;;  %v670_v19 = vshrl.u32 %v8393_v7, 16  ;;  %v690_v15 = vmul.u32 %v686_v9, %v8383_v29  ;;  %v693_v48 = vshll.u32 %v689_v42, 16 }
 0x256   :  { %vm5876_vm12 = vcmp.lt.s32.totalorder %v5875_v13, 0  ;;  %vm695_vm5 = vc.u32 %v687_v50, %v691_v30  ;;  %v1070_v1 = vxor.u32 2147483648, %v1064_v60  ;;  %v3552_v45 = vsel %vm3550_vm9, %v1073_v57, %v1064_v60 }
 0x257   :  { %v876_v34 = vsel %vm5876_vm12, 0, %v5875_v13  ;;  %v681_v61 = vadd.s32 %v680_v22, %v670_v19  ;;  %v1074_v37 = vsel %vm1072_vm11, %v1073_v57, %v1064_v60  ;;  %v696_v29 = vsel %vm695_vm5, 1, %v9492_v58  ;;  %v9587_v22 = vld [vmem:[#allocation42_spill] sm:$0xff] }
 0x258   :  { %v877_v47 = vsub.s32 32, %v876_v34  ;;  %v878_v21 = vshll.u32 %v8416_v3, %v876_v34  ;;  %v881_v38 = vsub.s32 4294967266, %v876_v34  ;;  %v3549_v5 = vsel %vm3547_vm4, %v1056_v12, %v1070_v1 }
 0x259   :  { %v1071_v7 = vsel %vm1069_vm7, %v1056_v12, %v1070_v1  ;;  %v697_v9 = vadd.s32 %v691_v30, %v687_v50  ;;  %v3553_v14 = vsel %vm3546_vm3, %v3549_v5, %v3552_v45  ;;  %v698_v10 = vadd.s32 %v696_v29, %v690_v15 }
 0x25a   :  { %v1075_v51 = vsel %vm1068_vm13, %v1071_v7, %v1074_v37  ;;  %v879_v62 = vshrl.u32 %v861_v0, %v877_v47  ;;  %v882_v44 = vadd.s32 127, %v881_v38  ;;  %v3554_v16 = vsel %vm1065_vm0, nan, %v3553_v14 }
 0x25b   :  { %v1076_v3 = vsel %vm1065_vm0, nan, %v1075_v51  ;;  %vm699_vm8 = vc.u32 %v697_v9, %v693_v48  ;;  %5105 = vmatpush.msra.mxu0 %v3554_v16  ;;  %v672_v41 = vshrl.u32 %v8396_v6, 16  ;;  %v650_v26 = vsel %vm646_vm6, %v8337_v8, %v649_v18 }
 0x25c   :  { %5134 = vmatpush.msra.mxu1 %v1076_v3  ;;  %v880_v56 = vor.u32 %v879_v62, %v878_v21  ;;  %v883_v35 = vshll.u32 %v882_v44, 23  ;;  %v700_v40 = vsel %vm699_vm8, 1, %v9492_v58  ;;  %v692_v30 = vshrl.u32 %v8421_v49, 16 }
 0x25d   :  { %v702_v12 = vadd.s32 %v700_v40, %v698_v10  ;;  %v457_v36 = vand.u32 2147483647, %v9583_v43  ;;  %vm8471_vm14 = vcmp.le.f32.partialorder %v767_v63, 0.7853982  ;;  %vm769_vm15 = vcmp.lt.s32.totalorder %v9572_v59, 0 }
 0x25e   :  { %v884_v6 = vor.u32 4788187, %v883_v35  ;;  %v8476_v0 = vadd.s32 %v681_v61, %v672_v41  ;;  %v891_v13 = vsub.s32 4, %v8401_v2  ;;  %v694_v50 = vshrl.u32 %v689_v42, 16 }
 0x25f   :  { %v703_v8 = vadd.s32 %v702_v12, %v692_v30  ;;  %v464_v49 = vand.u32 8388607, %v457_v36  ;;  %v887_v57 = vcvt.s32.f32 %v880_v56  ;;  %v651_v63 = vsel %vm645_vm2, %v648_v54, %v650_v26 }
 0x260   :  { %v885_v60 = vand.u32 2147483647, %v884_v6  ;;  %v8483_v18 = vadd.s32 %v697_v9, %v693_v48  ;;  %v477_v1 = vshll.u32 %v9493_v32, %v8034_v28  ;;  %v478_v45 = vshrl.u32 %v9494_v20, %v8070_v25 }
 0x261   :  { %v704_v19 = vadd.s32 %v703_v8, %v694_v50  ;;  %v465_v15 = vor.u32 8388608, %v464_v49  ;;  %v480_v34 = vshll.u32 %v9494_v20, %v8034_v28  ;;  %v481_v46 = vshrl.u32 %v9471_v27, %v8070_v25 }
 0x262   :  { %v888_v42 = vmul.f32 %v887_v57, %v885_v60  ;;  %vm707_vm6 = vc.u32 %v8476_v0, %v8483_v18  ;;  %v892_v54 = vsel %vm769_vm15, %v891_v13, %v8401_v2  ;;  %v475_v61 = vshrl.u32 %v9493_v32, %v8070_v25  ;;  %v9589_v13 = vld [vmem:[#allocation37_spill] sm:$0xff] }
 0x263   :  { %v708_v48 = vadd.s32 1, %v704_v19  ;;  %v8500_v37 = vor.u32 %v478_v45, %v477_v1  ;;  %v705_v21 = vmul.u32 %v8352_v4, %v651_v63  ;;  %v8503_v38 = vor.u32 %v481_v46, %v480_v34 }
 0x264   :  { %v889_v47 = vxor.u32 2147483648, %v888_v42  ;;  %vm491_vm2 = vcmp.lt.s32.totalorder %v8032_v24, 3  ;;  %v474_v7 = vshll.u32 %v9489_v55, %v8034_v28  ;;  %v8512_v29 = vshll.u32 %v465_v15, 8 }
 0x265   :  { %v709_v5 = vsel %vm707_vm6, %v708_v48, %v704_v19  ;;  %v503_v2 = vsel %vm491_vm2, %v8399_v39, %v8408_v11  ;;  %v894_v4 = vsel %vm8471_vm14, 0, %v892_v54  ;;  %vm489_vm10 = vcmp.lt.s32.totalorder %v8032_v24, 1 }
 0x266   :  { %v890_v9 = vsel %vm769_vm15, %v889_v47, %v888_v42  ;;  %v710_v14 = vadd.s32 %v709_v5, %v705_v21  ;;  %v8524_v51 = vor.u32 %v475_v61, %v474_v7  ;;  %vm490_vm4 = vcmp.lt.s32.totalorder %v8032_v24, 2 }
 0x267   :  { %v8522_v28 = vsel %vm8471_vm14, %v9572_v59, %v890_v9  ;;  %v501_v11 = vsel %vm489_vm10, %v8500_v37, %v8503_v38  ;;  %v498_v62 = vsel %vm492_vm1, %v8399_v39, 920167782  ;;  %v8539_v10 = vand.u32 65535, %v8512_v29  ;;  %v9586_v39 = vld [vmem:[#allocation41_spill] sm:$0xff] }
 0x268   :  { %v895_v44 = vmul.f32 %v8522_v28, %v8522_v28  ;;  %v711_v16 = vadd.s32 536870912, %v710_v14  ;;  %v504_v3 = vsel %vm490_vm4, %v501_v11, %v503_v2  ;;  %v8542_v56 = vshrl.u32 %v8512_v29, 16 }
 0x269   :  { %v508_v35 = vand.u32 65535, %v504_v3  ;;  %v509_v41 = vshrl.u32 %v504_v3, 16  ;;  %v911_v30 = vadd.s32 3, %v894_v4  ;;  %v9588_v6 = vor.u32 %v9586_v39, %v9587_v22 }
 0x26a   :  { %v896_v40 = vmul.f32 -0.001358992, %v895_v44  ;;  %v903_v26 = vmul.f32 -0.00019511016, %v895_v44  ;;  %v8544_v12 = vshrl.u32 %v711_v16, 30  ;;  %vm9590_vm9 = vcmp.lt.s32.totalorder %v9589_v13, 4 }
 0x26b   :  { %v8551_v50 = vsel %vm9590_vm9, %v9588_v6, 1326507024  ;;  %v497_v8 = vsel %vm489_vm10, %v8524_v51, %v8500_v37  ;;  %v8558_v49 = vmul.u32 %v509_v41, %v8539_v10  ;;  %v8561_v60 = vmul.u32 %v508_v35, %v8542_v56 }
 0x26c   :  { %v897_v57 = vadd.f32 0.041655596, %v896_v40  ;;  %v904_v63 = vadd.f32 0.008332121, %v903_v26  ;;  %v713_v19 = vshll.u32 %v8544_v12, 30  ;;  %v499_v15 = vsel %vm491_vm2, %v8503_v38, %v498_v62 }
 0x26d   :  { %v8568_v1 = vadd.s32 4294967169, %v7867_v52  ;;  %v3391_v45 = vand.u32 3, %v894_v4  ;;  %v510_v42 = vmul.u32 %v508_v35, %v8539_v10  ;;  %v514_v34 = vshll.u32 %v8558_v49, 16 }
 0x26e   :  { %v898_v46 = vmul.f32 %v897_v57, %v895_v44  ;;  %v905_v54 = vmul.f32 %v904_v63, %v895_v44  ;;  %v912_v48 = vand.u32 3, %v911_v30  ;;  %v8572_v61 = vsub.s32 %v710_v14, %v713_v19 }
 0x26f   :  { %v8576_v47 = vsel %vm490_vm4, %v497_v8, %v499_v15  ;;  %v516_v21 = vshll.u32 %v8561_v60, 16  ;;  %vm518_vm3 = vc.u32 %v510_v42, %v514_v34  ;;  %v520_v5 = vadd.s32 %v514_v34, %v510_v42 }
 0x270   :  { %v899_v52 = vadd.f32 -0.4999988, %v898_v46  ;;  %v906_v7 = vadd.f32 -0.16666654, %v905_v54  ;;  %vm715_vm13 = vcmp.lt.s32.totalorder %v8572_v61, 0  ;;  %v716_v2 = vsub.s32 0, %v8572_v61 }
 0x271   :  { %vm3393_vm7 = vcmp.eq.s32.totalorder %v3391_v45, 0  ;;  %vm3396_vm0 = vcmp.eq.s32.totalorder %v3391_v45, 2  ;;  %v513_v9 = vmul.u32 %v509_v41, %v8542_v56  ;;  %v519_v4 = vsel %vm518_vm3, 1, %v9492_v58 }
 0x272   :  { %vm522_vm11 = vc.u32 %v520_v5, %v516_v21  ;;  %v900_v14 = vmul.f32 %v899_v52, %v895_v44  ;;  %v907_v11 = vmul.f32 %v906_v7, %v895_v44  ;;  %vm3392_vm12 = vcmp.lt.s32.totalorder %v3391_v45, 2 }
 0x273   :  { %v717_v62 = vsel %vm715_vm13, %v716_v2, %v8572_v61  ;;  %v531_v16 = vshrl.u32 %v8576_v47, 16  ;;  %vm910_vm5 = vweird.f32 %v9572_v59  ;;  %vm913_vm8 = vcmp.lt.s32.totalorder %v912_v48, 2 }
 0x274   :  { %v718_v3 = vclz %v717_v62  ;;  %v473_v35 = vshrl.u32 %v9489_v55, %v8070_v25  ;;  %v521_v40 = vadd.s32 %v519_v4, %v513_v9  ;;  %v901_v26 = vadd.f32 1.0, %v900_v14 }
 0x275   :  { %v908_v41 = vadd.f32 1.0, %v907_v11  ;;  %v523_v30 = vsel %vm522_vm11, 1, %v9492_v58  ;;  %v530_v39 = vand.u32 65535, %v8576_v47  ;;  %vm914_vm14 = vcmp.eq.s32.totalorder %v912_v48, 0 }
 0x276   :  { %vm917_vm15 = vcmp.eq.s32.totalorder %v912_v48, 2  ;;  %v706_v44 = vadd.s32 %v8483_v18, %v8476_v0  ;;  %v5872_v22 = vadd.s32 4294967294, %v718_v3  ;;  %v918_v8 = vxor.u32 2147483648, %v901_v26 }
 0x277   :  { %v909_v6 = vmul.f32 %v908_v41, %v8522_v28  ;;  %v493_v25 = vsel %vm489_vm10, %v473_v35, %v8524_v51  ;;  %v533_v57 = vmul.u32 %v531_v16, %v8539_v10  ;;  %v494_v63 = vsel %vm492_vm1, %v8503_v38, 2102212464  ;;  %v9591_v35 = vld [vmem:[#allocation10_spill] sm:$0xff] }
 0x278   :  { %vm5873_vm6 = vcmp.lt.s32.totalorder %v5872_v22, 0  ;;  %v515_v19 = vshrl.u32 %v8558_v49, 16  ;;  %v525_v15 = vadd.s32 %v523_v30, %v521_v40  ;;  %v532_v18 = vmul.u32 %v530_v39, %v8539_v10 }
 0x279   :  { %v915_v42 = vxor.u32 2147483648, %v909_v6  ;;  %v721_v0 = vsel %vm5873_vm6, 0, %v5872_v22  ;;  %v534_v28 = vmul.u32 %v530_v39, %v8542_v56  ;;  %v3398_v34 = vsel %vm3396_vm0, %v918_v8, %v909_v6 }
 0x27a   :  { %v919_v51 = vsel %vm917_vm15, %v918_v8, %v909_v6  ;;  %v722_v46 = vsub.s32 32, %v721_v0  ;;  %v726_v54 = vsub.s32 4294967266, %v721_v0  ;;  %v723_v38 = vshll.u32 %v8572_v61, %v721_v0 }
 0x27b   :  { %v3395_v47 = vsel %vm3393_vm7, %v901_v26, %v915_v42  ;;  %v916_v21 = vsel %vm914_vm14, %v901_v26, %v915_v42  ;;  %v536_v49 = vshll.u32 %v533_v57, 16  ;;  %v495_v4 = vsel %vm491_vm2, %v8500_v37, %v494_v63 }
 0x27c   :  { %v3399_v5 = vsel %vm3392_vm12, %v3395_v47, %v3398_v34  ;;  %v920_v52 = vsel %vm913_vm8, %v916_v21, %v919_v51  ;;  %v724_v10 = vshrl.u32 %v706_v44, %v722_v46  ;;  %v727_v7 = vadd.s32 127, %v726_v54 }
 0x27d   :  { %v3400_v2 = vsel %vm910_vm5, nan, %v3399_v5  ;;  %v921_v9 = vsel %vm910_vm5, nan, %v920_v52  ;;  %v526_v14 = vadd.s32 %v525_v15, %v515_v19  ;;  %v535_v48 = vmul.u32 %v531_v16, %v8542_v56  ;;  %v9593_v15 = vld [vmem:[#allocation35_spill] sm:$0xff] }
 0x27e   :  { %5106 = vmatpush.msra.mxu0 %v3400_v2  ;;  %5135 = vmatpush.msra.mxu1 %v921_v9  ;;  %v725_v61 = vor.u32 %v724_v10, %v723_v38  ;;  %v728_v45 = vshll.u32 %v727_v7, 23  ;;  %vm540_vm1 = vc.u32 %v532_v18, %v536_v49  ;;  %v538_v11 = vshll.u32 %v534_v28, 16  ;;  %v9596_v52 = vld [vmem:[#allocation43_spill] sm:$0xff] }
 0x27f   :  { %v541_v62 = vsel %vm540_vm1, 1, %v9492_v58  ;;  %v542_v3 = vadd.s32 %v536_v49, %v532_v18  ;;  %v302_v40 = vand.u32 2147483647, %v9591_v35  ;;  %v8621_v59 = vadd.s32 1, %v8568_v1 }
 0x280   :  { %v729_v26 = vor.u32 4788187, %v728_v45  ;;  %v517_v37 = vshrl.u32 %v8561_v60, 16  ;;  %v543_v41 = vadd.s32 %v541_v62, %v535_v48  ;;  %vm614_vm2 = vcmp.lt.s32.totalorder %v9580_v33, 0  ;;  %v9592_v60 = vld [vmem:[#allocation32_spill] sm:$0xff] }
 0x281   :  { %v496_v30 = vsel %vm490_vm4, %v493_v25, %v495_v4  ;;  %vm544_vm10 = vc.u32 %v542_v3, %v538_v11  ;;  %v309_v56 = vand.u32 8388607, %v302_v40  ;;  %v732_v39 = vcvt.s32.f32 %v725_v61 }
 0x282   :  { %v730_v16 = vand.u32 2147483647, %v729_v26  ;;  %v8629_v44 = vadd.s32 %v526_v14, %v517_v37  ;;  %v545_v1 = vsel %vm544_vm10, 1, %v9492_v58  ;;  %v537_v22 = vshrl.u32 %v533_v57, 16 }
 0x283   :  { %v539_v6 = vshrl.u32 %v534_v28, 16  ;;  %v547_v8 = vadd.s32 %v545_v1, %v543_v41  ;;  %v319_v63 = vshll.u32 %v9489_v55, %v9592_v60  ;;  %v320_v24 = vshrl.u32 %v9493_v32, %v9593_v15 }
 0x284   :  { %v733_v19 = vmul.f32 %v732_v39, %v730_v16  ;;  %v322_v25 = vshll.u32 %v9493_v32, %v9592_v60  ;;  %v323_v42 = vshrl.u32 %v9494_v20, %v9593_v15  ;;  %v310_v18 = vor.u32 8388608, %v309_v56 }
 0x285   :  { %v548_v0 = vadd.s32 %v547_v8, %v537_v22  ;;  %v325_v57 = vshll.u32 %v9494_v20, %v9592_v60  ;;  %v326_v28 = vshrl.u32 %v9471_v27, %v9593_v15  ;;  %vm158_vm4 = vcmp.gt.s32.totalorder %v8621_v59, 0 }
 0x286   :  { %v734_v34 = vxor.u32 2147483648, %v733_v19  ;;  %v736_v51 = vsub.s32 4, %v8544_v12  ;;  %v8646_v46 = vadd.s32 %v542_v3, %v538_v11  ;;  %v8648_v54 = vor.u32 %v323_v42, %v322_v25  ;;  %v9597_v3 = vld [vmem:[#allocation46_spill] sm:$0xff] }
 0x287   :  { %v549_v47 = vadd.s32 %v548_v0, %v539_v6  ;;  %v8650_v21 = vor.u32 %v320_v24, %v319_v63  ;;  %v8652_v38 = vor.u32 %v326_v28, %v325_v57  ;;  %vm336_vm9 = vcmp.lt.s32.totalorder %v9589_v13, 3 }
 0x288   :  { %vm8657_vm3 = vcmp.le.f32.partialorder %v612_v23, 0.7853982  ;;  %v735_v5 = vsel %vm614_vm2, %v734_v34, %v733_v19  ;;  %vm552_vm13 = vc.u32 %v8629_v44, %v8646_v46  ;;  %v348_v10 = vsel %vm336_vm9, %v9596_v52, %v8551_v50 }
 0x289   :  { %v738_v7 = vsel %vm8657_vm3, %v9580_v33, %v735_v5  ;;  %v553_v2 = vadd.s32 1, %v549_v47  ;;  %vm334_vm7 = vcmp.lt.s32.totalorder %v9589_v13, 1  ;;  %v8673_v23 = vshll.u32 %v310_v18, 8 }
 0x28a   :  { %v740_v9 = vmul.f32 %v738_v7, %v738_v7  ;;  %v550_v4 = vmul.u32 %v8512_v29, %v496_v30  ;;  %vm335_vm0 = vcmp.lt.s32.totalorder %v9589_v13, 2  ;;  %v346_v14 = vsel %vm334_vm7, %v8648_v54, %v8652_v38 }
 0x28b   :  { %v737_v50 = vsel %vm614_vm2, %v736_v51, %v8544_v12  ;;  %v554_v61 = vsel %vm552_vm13, %v553_v2, %v549_v47  ;;  %v342_v45 = vsel %vm334_vm7, %v8650_v21, %v8648_v54  ;;  %v349_v29 = vsel %vm335_vm0, %v346_v14, %v348_v10 }
 0x28c   :  { %v741_v48 = vmul.f32 -0.001358992, %v740_v9  ;;  %v748_v11 = vmul.f32 -0.00019511016, %v740_v9  ;;  %v555_v62 = vadd.s32 %v554_v61, %v550_v4  ;;  %v344_v26 = vsel %vm336_vm9, %v8652_v38, %v9597_v3 }
 0x28d   :  { %v8695_v37 = vand.u32 65535, %v8673_v23  ;;  %v8698_v12 = vshrl.u32 %v8673_v23, 16  ;;  %v353_v41 = vand.u32 65535, %v349_v29  ;;  %v354_v30 = vshrl.u32 %v349_v29, 16 }
 0x28e   :  { %v739_v56 = vsel %vm8657_vm3, 0, %v737_v50  ;;  %v742_v16 = vadd.f32 0.041655596, %v741_v48  ;;  %v749_v39 = vadd.f32 0.008332121, %v748_v11  ;;  %v556_v1 = vadd.s32 536870912, %v555_v62 }
 0x28f   :  { %v8703_v22 = vmul.u32 %v354_v30, %v8695_v37  ;;  %v8706_v6 = vmul.u32 %v353_v41, %v8698_v12  ;;  %v8712_v19 = vsel %vm335_vm0, %v342_v45, %v344_v26  ;;  %v8717_v24 = vsel %vm158_vm4, %v8621_v59, 0 }
 0x290   :  { %v743_v8 = vmul.f32 %v742_v16, %v740_v9  ;;  %v750_v60 = vmul.f32 %v749_v39, %v740_v9  ;;  %v8708_v63 = vshrl.u32 %v556_v1, 30  ;;  %v756_v25 = vadd.s32 3, %v739_v56 }
 0x291   :  { %v355_v42 = vmul.u32 %v353_v41, %v8695_v37  ;;  %v359_v0 = vshll.u32 %v8703_v22, 16  ;;  %v3237_v28 = vand.u32 3, %v739_v56  ;;  %v361_v51 = vshll.u32 %v8706_v6, 16 }
 0x292   :  { %v744_v18 = vadd.f32 -0.4999988, %v743_v8  ;;  %v751_v57 = vadd.f32 -0.16666654, %v750_v60  ;;  %v558_v34 = vshll.u32 %v8708_v63, 30  ;;  %v376_v49 = vshrl.u32 %v8712_v19, 16 }
 0x293   :  { %vm363_vm11 = vc.u32 %v355_v42, %v359_v0  ;;  %v365_v47 = vadd.s32 %v359_v0, %v355_v42  ;;  %v8725_v5 = vand.u32 31, %v8717_v24  ;;  %v757_v2 = vand.u32 3, %v756_v25 }
 0x294   :  { %v745_v59 = vmul.f32 %v744_v18, %v740_v9  ;;  %v752_v52 = vmul.f32 %v751_v57, %v740_v9  ;;  %v559_v10 = vsub.s32 %v555_v62, %v558_v34  ;;  %v358_v4 = vmul.u32 %v354_v30, %v8698_v12 }
 0x295   :  { %v364_v14 = vsel %vm363_vm11, 1, %v9492_v58  ;;  %vm8729_vm12 = vc.u32 %v365_v47, %v361_v51  ;;  %vm755_vm8 = vweird.f32 %v9580_v33  ;;  %vm3238_vm14 = vcmp.lt.s32.totalorder %v3237_v28, 2 }
 0x296   :  { %v746_v61 = vadd.f32 1.0, %v745_v59  ;;  %v753_v45 = vadd.f32 1.0, %v752_v52  ;;  %vm560_vm5 = vcmp.lt.s32.totalorder %v559_v10, 0  ;;  %v561_v29 = vsub.s32 0, %v559_v10 }
 0x297   :  { %v375_v48 = vand.u32 65535, %v8712_v19  ;;  %v378_v9 = vmul.u32 %v376_v49, %v8695_v37  ;;  %v366_v26 = vadd.s32 %v364_v14, %v358_v4  ;;  %vm3239_vm15 = vcmp.eq.s32.totalorder %v3237_v28, 0 }
 0x298   :  { %v754_v11 = vmul.f32 %v753_v45, %v738_v7  ;;  %v763_v62 = vxor.u32 2147483648, %v746_v61  ;;  %v562_v3 = vsel %vm560_vm5, %v561_v29, %v559_v10  ;;  %vm3242_vm6 = vcmp.eq.s32.totalorder %v3237_v28, 2 }
 0x299   :  { %v563_v41 = vclz %v562_v3  ;;  %v368_v30 = vsel %vm8729_vm12, 1, %v9492_v58  ;;  %vm758_vm1 = vcmp.lt.s32.totalorder %v757_v2, 2  ;;  %vm759_vm2 = vcmp.eq.s32.totalorder %v757_v2, 0 }
 0x29a   :  { %v760_v56 = vxor.u32 2147483648, %v754_v11  ;;  %vm762_vm10 = vcmp.eq.s32.totalorder %v757_v2, 2  ;;  %v3244_v16 = vsel %vm3242_vm6, %v763_v62, %v754_v11  ;;  %v379_v1 = vmul.u32 %v375_v48, %v8698_v12 }
 0x29b   :  { %v5869_v39 = vadd.s32 4294967294, %v563_v41  ;;  %v381_v8 = vshll.u32 %v378_v9, 16  ;;  %v764_v19 = vsel %vm762_vm10, %v763_v62, %v754_v11  ;;  %v370_v25 = vadd.s32 %v368_v30, %v366_v26 }
 0x29c   :  { %v3241_v7 = vsel %vm3239_vm15, %v746_v61, %v760_v56  ;;  %v761_v60 = vsel %vm759_vm2, %v746_v61, %v760_v56  ;;  %v377_v18 = vmul.u32 %v375_v48, %v8695_v37  ;;  %v360_v47 = vshrl.u32 %v8703_v22, 16 }
 0x29d   :  { %v3245_v42 = vsel %vm3238_vm14, %v3241_v7, %v3244_v16  ;;  %v765_v0 = vsel %vm758_vm1, %v761_v60, %v764_v19  ;;  %vm5870_vm4 = vcmp.lt.s32.totalorder %v5869_v39, 0  ;;  %v551_v59 = vadd.s32 %v8646_v46, %v8629_v44 }
 0x29e   :  { %v3246_v57 = vsel %vm755_vm8, nan, %v3245_v42  ;;  %v766_v34 = vsel %vm755_vm8, nan, %v765_v0  ;;  %v566_v51 = vsel %vm5870_vm4, 0, %v5869_v39  ;;  %v380_v2 = vmul.u32 %v376_v49, %v8698_v12 }
 0x29f   :  { %5107 = vmatpush.msra.mxu0 %v3246_v57  ;;  %5136 = vmatpush.msra.mxu1 %v766_v34  ;;  %v567_v28 = vsub.s32 32, %v566_v51  ;;  %v571_v52 = vsub.s32 4294967266, %v566_v51  ;;  %v371_v4 = vadd.s32 %v370_v25, %v360_v47  ;;  %v383_v37 = vshll.u32 %v379_v1, 16 }
 0x2a0   :  { %vm385_vm3 = vc.u32 %v377_v18, %v381_v8  ;;  %v387_v14 = vadd.s32 %v381_v8, %v377_v18  ;;  %v568_v50 = vshll.u32 %v559_v10, %v566_v51  ;;  %v318_v22 = vshrl.u32 %v9489_v55, %v9593_v15 }
 0x2a1   :  { %v569_v61 = vshrl.u32 %v551_v59, %v567_v28  ;;  %v572_v33 = vadd.s32 127, %v571_v52  ;;  %v386_v45 = vsel %vm385_vm3, 1, %v9492_v58  ;;  %vm9600_vm13 = vcmp.lt.s32.totalorder %v9589_v13, 4 }
 0x2a2   :  { %v339_v44 = vsel %vm9600_vm13, %v8652_v38, 2102212464  ;;  %v388_v46 = vadd.s32 %v386_v45, %v380_v2  ;;  %vm389_vm11 = vc.u32 %v387_v14, %v383_v37  ;;  %v362_v49 = vshrl.u32 %v8706_v6, 16 }
 0x2a3   :  { %v570_v29 = vor.u32 %v569_v61, %v568_v50  ;;  %v573_v12 = vshll.u32 %v572_v33, 23  ;;  %v390_v48 = vsel %vm389_vm11, 1, %v9492_v58  ;;  %v8759_v10 = vsub.s32 32, %v8725_v5 }
 0x2a4   :  { %v382_v11 = vshrl.u32 %v378_v9, 16  ;;  %v392_v62 = vadd.s32 %v390_v48, %v388_v46  ;;  %v338_v15 = vsel %vm334_vm7, %v318_v22, %v8650_v21  ;;  %v340_v38 = vsel %vm336_vm9, %v8648_v54, %v339_v44 }
 0x2a5   :  { %v574_v3 = vor.u32 4788187, %v573_v12  ;;  %v8767_v26 = vadd.s32 %v371_v4, %v362_v49  ;;  %v581_v6 = vsub.s32 4, %v8708_v63  ;;  %v384_v41 = vshrl.u32 %v379_v1, 16 }
 0x2a6   :  { %v393_v30 = vadd.s32 %v392_v62, %v382_v11  ;;  %v577_v16 = vcvt.s32.f32 %v570_v29  ;;  %v8770_v39 = vadd.s32 %v387_v14, %v383_v37  ;;  %v177_v9 = vshrl.u32 %v9518_v53, %v8759_v10 }
 0x2a7   :  { %v575_v56 = vand.u32 2147483647, %v574_v3  ;;  %v341_v21 = vsel %vm335_vm0, %v338_v15, %v340_v38  ;;  %v8777_v7 = vshrl.u32 %v8717_v24, 5  ;;  %vm459_vm9 = vcmp.lt.s32.totalorder %v9583_v43, 0 }
 0x2a8   :  { %v394_v8 = vadd.s32 %v393_v30, %v384_v41  ;;  %vm397_vm7 = vc.u32 %v8767_v26, %v8770_v39  ;;  %v176_v1 = vshll.u32 %v9475_v17, %v8725_v5  ;;  %v582_v60 = vsel %vm459_vm9, %v581_v6, %v8708_v63 }
 0x2a9   :  { %v578_v54 = vmul.f32 %v577_v16, %v575_v56  ;;  %v147_v53 = vand.u32 2147483647, %v9556_v31  ;;  %v173_v13 = vshll.u32 %v9471_v27, %v8725_v5  ;;  %v395_v24 = vmul.u32 %v8673_v23, %v341_v21 }
 0x2aa   :  { %v398_v19 = vadd.s32 1, %v394_v8  ;;  %v174_v42 = vshrl.u32 %v9475_v17, %v8759_v10  ;;  %v178_v0 = vor.u32 %v177_v9, %v176_v1  ;;  %vm458_vm0 = vcmp.le.f32.partialorder %v457_v36, 0.7853982 }
 0x2ab   :  { %v579_v25 = vxor.u32 2147483648, %v578_v54  ;;  %vm182_vm12 = vcmp.lt.s32.totalorder %v8777_v7, 4  ;;  %v584_v57 = vsel %vm458_vm0, 0, %v582_v60  ;;  %v154_v47 = vand.u32 8388607, %v147_v53 }
 0x2ac   :  { %v399_v18 = vsel %vm397_vm7, %v398_v19, %v394_v8  ;;  %v167_v23 = vshll.u32 %v9493_v32, %v8725_v5  ;;  %v168_v17 = vshrl.u32 %v9494_v20, %v8759_v10  ;;  %v170_v36 = vshll.u32 %v9494_v20, %v8725_v5 }
 0x2ad   :  { %v580_v63 = vsel %vm459_vm9, %v579_v25, %v578_v54  ;;  %v400_v34 = vadd.s32 %v399_v18, %v395_v24  ;;  %v171_v52 = vshrl.u32 %v9471_v27, %v8759_v10  ;;  %v175_v2 = vor.u32 %v174_v42, %v173_v13 }
 0x2ae   :  { %v583_v51 = vsel %vm458_vm0, %v9583_v43, %v580_v63  ;;  %v192_v4 = vsel %vm182_vm12, %v178_v0, 1326507024  ;;  %v8807_v37 = vor.u32 %v168_v17, %v167_v23  ;;  %v601_v45 = vadd.s32 3, %v584_v57 }
 0x2af   :  { %v585_v59 = vmul.f32 %v583_v51, %v583_v51  ;;  %v401_v28 = vadd.s32 536870912, %v400_v34  ;;  %v8811_v33 = vor.u32 %v171_v52, %v170_v36  ;;  %v155_v22 = vor.u32 8388608, %v154_v47 }
 0x2b0   :  { %v165_v20 = vshrl.u32 %v9493_v32, %v8759_v10  ;;  %vm179_vm5 = vcmp.lt.s32.totalorder %v8777_v7, 1  ;;  %vm181_vm8 = vcmp.lt.s32.totalorder %v8777_v7, 3  ;;  %v3083_v29 = vand.u32 3, %v584_v57 }
 0x2b1   :  { %v586_v14 = vmul.f32 -0.001358992, %v585_v59  ;;  %v593_v50 = vmul.f32 -0.00019511016, %v585_v59  ;;  %v8809_v61 = vshrl.u32 %v401_v28, 30  ;;  %v164_v12 = vshll.u32 %v9489_v55, %v8725_v5 }
 0x2b2   :  { %v191_v49 = vsel %vm179_vm5, %v8807_v37, %v8811_v33  ;;  %v193_v32 = vsel %vm181_vm8, %v175_v2, %v192_v4  ;;  %vm180_vm14 = vcmp.lt.s32.totalorder %v8777_v7, 2  ;;  %v602_v3 = vand.u32 3, %v601_v45 }
 0x2b3   :  { %v587_v27 = vadd.f32 0.041655596, %v586_v14  ;;  %v594_v44 = vadd.f32 0.008332121, %v593_v50  ;;  %v403_v46 = vshll.u32 %v8809_v61, 30  ;;  %v8829_v15 = vor.u32 %v165_v20, %v164_v12 }
 0x2b4   :  { %v194_v5 = vsel %vm180_vm14, %v191_v49, %v193_v32  ;;  %v8833_v38 = vshll.u32 %v155_v22, 8  ;;  %v188_v56 = vsel %vm182_vm12, %v175_v2, 920167782  ;;  %vm3085_vm6 = vcmp.eq.s32.totalorder %v3083_v29, 0 }
 0x2b5   :  { %v588_v48 = vmul.f32 %v587_v27, %v585_v59  ;;  %v595_v11 = vmul.f32 %v594_v44, %v585_v59  ;;  %v8826_v62 = vsub.s32 %v400_v34, %v403_v46  ;;  %vm3088_vm1 = vcmp.eq.s32.totalorder %v3083_v29, 2 }
 0x2b6   :  { %v198_v16 = vand.u32 65535, %v194_v5  ;;  %vm3084_vm2 = vcmp.lt.s32.totalorder %v3083_v29, 2  ;;  %v199_v54 = vshrl.u32 %v194_v5, 16  ;;  %vm600_vm10 = vweird.f32 %v9583_v43 }
 0x2b7   :  { %v589_v6 = vadd.f32 -0.4999988, %v588_v48  ;;  %v596_v41 = vadd.f32 -0.16666654, %v595_v11  ;;  %vm405_vm15 = vcmp.lt.s32.totalorder %v8826_v62, 0  ;;  %v406_v30 = vsub.s32 0, %v8826_v62 }
 0x2b8   :  { %vm603_vm4 = vcmp.lt.s32.totalorder %v602_v3, 2  ;;  %v196_v60 = vand.u32 65535, %v8833_v38  ;;  %v197_v19 = vshrl.u32 %v8833_v38, 16  ;;  %v187_v24 = vsel %vm179_vm5, %v8829_v15, %v8807_v37 }
 0x2b9   :  { %v590_v9 = vmul.f32 %v589_v6, %v585_v59  ;;  %v597_v21 = vmul.f32 %v596_v41, %v585_v59  ;;  %v407_v8 = vsel %vm405_vm15, %v406_v30, %v8826_v62  ;;  %v189_v42 = vsel %vm181_vm8, %v8811_v33, %v188_v56 }
 0x2ba   :  { %v408_v1 = vclz %v407_v8  ;;  %vm604_vm3 = vcmp.eq.s32.totalorder %v602_v3, 0  ;;  %vm607_vm13 = vcmp.eq.s32.totalorder %v602_v3, 2  ;;  %v201_v18 = vmul.u32 %v199_v54, %v196_v60 }
 0x2bb   :  { %v591_v13 = vadd.f32 1.0, %v590_v9  ;;  %v598_v25 = vadd.f32 1.0, %v597_v21  ;;  %v396_v34 = vadd.s32 %v8770_v39, %v8767_v26  ;;  %v8852_v47 = vmul.u32 %v198_v16, %v197_v19 }
 0x2bc   :  { %v5866_v0 = vadd.s32 4294967294, %v408_v1  ;;  %v190_v23 = vsel %vm180_vm14, %v187_v24, %v189_v42  ;;  %v200_v17 = vmul.u32 %v198_v16, %v196_v60  ;;  %v204_v59 = vshll.u32 %v201_v18, 16 }
 0x2bd   :  { %v599_v63 = vmul.f32 %v598_v25, %v583_v51  ;;  %v608_v57 = vxor.u32 2147483648, %v591_v13  ;;  %v203_v2 = vmul.u32 %v199_v54, %v197_v19  ;;  %v206_v45 = vshll.u32 %v8852_v47, 16 }
 0x2be   :  { %vm5867_vm11 = vcmp.lt.s32.totalorder %v5866_v0, 0  ;;  %vm208_vm9 = vc.u32 %v200_v17, %v204_v59  ;;  %v210_v32 = vadd.s32 %v204_v59, %v200_v17  ;;  %v220_v29 = vand.u32 65535, %v190_v23 }
 0x2bf   :  { %v605_v28 = vxor.u32 2147483648, %v599_v63  ;;  %v3090_v36 = vsel %vm3088_vm1, %v608_v57, %v599_v63  ;;  %v411_v52 = vsel %vm5867_vm11, 0, %v5866_v0  ;;  %v609_v4 = vsel %vm607_vm13, %v608_v57, %v599_v63 }
 0x2c0   :  { %v412_v14 = vsub.s32 32, %v411_v52  ;;  %v413_v51 = vshll.u32 %v8826_v62, %v411_v52  ;;  %v416_v50 = vsub.s32 4294967266, %v411_v52  ;;  %v209_v49 = vsel %vm208_vm9, 1, %v9492_v58 }
 0x2c1   :  { %v3087_v26 = vsel %vm3085_vm6, %v591_v13, %v605_v28  ;;  %v606_v39 = vsel %vm604_vm3, %v591_v13, %v605_v28  ;;  %v211_v62 = vadd.s32 %v209_v49, %v203_v2  ;;  %vm212_vm7 = vc.u32 %v210_v32, %v206_v45 }
 0x2c2   :  { %v3091_v22 = vsel %vm3084_vm2, %v3087_v26, %v3090_v36  ;;  %v610_v20 = vsel %vm603_vm4, %v606_v39, %v609_v4  ;;  %v414_v27 = vshrl.u32 %v396_v34, %v412_v14  ;;  %v417_v44 = vadd.s32 127, %v416_v50 }
 0x2c3   :  { %v3092_v46 = vsel %vm600_vm10, nan, %v3091_v22  ;;  %v611_v12 = vsel %vm600_vm10, nan, %v610_v20  ;;  %v221_v3 = vshrl.u32 %v190_v23, 16  ;;  %v213_v6 = vsel %vm212_vm7, 1, %v9492_v58 }
 0x2c4   :  { %5108 = vmatpush.msra.mxu0 %v3092_v46  ;;  %5137 = vmatpush.msra.mxu1 %v611_v12  ;;  %v415_v48 = vor.u32 %v414_v27, %v413_v51  ;;  %v418_v11 = vshll.u32 %v417_v44, 23  ;;  %v224_v30 = vmul.u32 %v220_v29, %v197_v19  ;;  %v215_v43 = vadd.s32 %v213_v6, %v211_v62 }
 0x2c5   :  { %v223_v41 = vmul.u32 %v221_v3, %v196_v60  ;;  %v222_v9 = vmul.u32 %v220_v29, %v196_v60  ;;  %vm304_vm0 = vcmp.lt.s32.totalorder %v9591_v35, 0  ;;  %v205_v54 = vshrl.u32 %v201_v18, 16 }
 0x2c6   :  { %v419_v5 = vor.u32 4788187, %v418_v11  ;;  %v422_v16 = vcvt.s32.f32 %v415_v48  ;;  %v225_v1 = vmul.u32 %v221_v3, %v197_v19  ;;  %v228_v13 = vshll.u32 %v224_v30, 16 }
 0x2c7   :  { %v226_v21 = vshll.u32 %v223_v41, 16  ;;  %vm8872_vm6 = vcmp.le.f32.partialorder %v302_v40, 0.7853982  ;;  %v216_v0 = vadd.s32 %v215_v43, %v205_v54  ;;  %v163_v60 = vshrl.u32 %v9489_v55, %v8759_v10 }
 0x2c8   :  { %v420_v56 = vand.u32 2147483647, %v419_v5  ;;  %v184_v19 = vsel %vm182_vm12, %v8811_v33, 2102212464  ;;  %v426_v40 = vsub.s32 4, %v8809_v61  ;;  %v207_v34 = vshrl.u32 %v8852_v47, 16 }
 0x2c9   :  { %vm230_vm15 = vc.u32 %v222_v9, %v226_v21  ;;  %v232_v25 = vadd.s32 %v226_v21, %v222_v9  ;;  %v227_v55 = vshrl.u32 %v223_v41, 16  ;;  %v183_v33 = vsel %vm179_vm5, %v163_v60, %v8829_v15 }
 0x2ca   :  { %v423_v8 = vmul.f32 %v422_v16, %v420_v56  ;;  %v231_v63 = vsel %vm230_vm15, 1, %v9492_v58  ;;  %v185_v28 = vsel %vm181_vm8, %v8807_v37, %v184_v19  ;;  %v217_v36 = vadd.s32 %v216_v0, %v207_v34 }
 0x2cb   :  { %v233_v18 = vadd.s32 %v231_v63, %v225_v1  ;;  %vm234_vm1 = vc.u32 %v232_v25, %v228_v13  ;;  %v229_v52 = vshrl.u32 %v224_v30, 16  ;;  %v236_v14 = vadd.s32 %v232_v25, %v228_v13 }
 0x2cc   :  { %v424_v42 = vxor.u32 2147483648, %v423_v8  ;;  %v235_v23 = vsel %vm234_vm1, 1, %v9492_v58  ;;  %v427_v58 = vsel %vm304_vm0, %v426_v40, %v8809_v61  ;;  %v186_v51 = vsel %vm180_vm14, %v183_v33, %v185_v28 }
 0x2cd   :  { %v237_v10 = vadd.s32 %v235_v23, %v233_v18  ;;  %vm242_vm12 = vc.u32 %v217_v36, %v236_v14  ;;  %v429_v37 = vsel %vm8872_vm6, 0, %v427_v58  ;;  %v240_v20 = vmul.u32 %v8833_v38, %v186_v51 }
 0x2ce   :  { %v425_v57 = vsel %vm304_vm0, %v424_v42, %v423_v8  ;;  %v446_v46 = vadd.s32 3, %v429_v37  ;;  %v2929_v48 = vand.u32 3, %v429_v37  ;;  %vm445_vm13 = vweird.f32 %v9591_v35 }
 0x2cf   :  { %v428_v17 = vsel %vm8872_vm6, %v9591_v35, %v425_v57  ;;  %v238_v47 = vadd.s32 %v237_v10, %v227_v55  ;;  %v241_v63 = vadd.s32 %v236_v14, %v217_v36  ;;  %vm149_vm9 = vcmp.lt.s32.totalorder %v9556_v31, 0 }
 0x2d0   :  { %v430_v59 = vmul.f32 %v428_v17, %v428_v17  ;;  %v447_v29 = vand.u32 3, %v446_v46  ;;  %vm2930_vm5 = vcmp.lt.s32.totalorder %v2929_v48, 2  ;;  %vm2931_vm8 = vcmp.eq.s32.totalorder %v2929_v48, 0 }
 0x2d1   :  { %v239_v50 = vadd.s32 %v238_v47, %v229_v52  ;;  %vm2934_vm14 = vcmp.eq.s32.totalorder %v2929_v48, 2  ;;  %vm148_vm7 = vcmp.le.f32.partialorder %v147_v53, 0.7853982 }
 0x2d2   :  { %v431_v2 = vmul.f32 -0.001358992, %v430_v59  ;;  %v438_v4 = vmul.f32 -0.00019511016, %v430_v59  ;;  %vm452_vm2 = vcmp.eq.s32.totalorder %v447_v29, 2  ;;  %vm448_vm10 = vcmp.lt.s32.totalorder %v447_v29, 2 }
 0x2d3   :  { %v243_v39 = vadd.s32 1, %v239_v50  ;;  %vm449_vm4 = vcmp.eq.s32.totalorder %v447_v29, 0  ;;  %v2627_v29 = vld [vmem:[%s9341_s3 + $0x8] sm:$0xff] }
 0x2d4   :  { %v432_v26 = vadd.f32 0.041655596, %v431_v2  ;;  %v439_v15 = vadd.f32 0.008332121, %v438_v4 }
 0x2d5   :  { %v244_v27 = vsel %vm242_vm12, %v243_v39, %v239_v50 }
 0x2d6   :  { %v433_v45 = vmul.f32 %v432_v26, %v430_v59  ;;  %v440_v22 = vmul.f32 %v439_v15, %v430_v59  ;;  %v245_v12 = vadd.s32 %v244_v27, %v240_v20 }
 0x2d8   :  { %v434_v61 = vadd.f32 -0.4999988, %v433_v45  ;;  %v441_v44 = vadd.f32 -0.16666654, %v440_v22  ;;  %v246_v32 = vadd.s32 536870912, %v245_v12 }
 0x2da   :  { %v435_v49 = vmul.f32 %v434_v61, %v430_v59  ;;  %v442_v7 = vmul.f32 %v441_v44, %v430_v59  ;;  %v247_v3 = vshrl.u32 %v246_v32, 30 }
 0x2dc   :  { %v436_v11 = vadd.f32 1.0, %v435_v49  ;;  %v443_v62 = vadd.f32 1.0, %v442_v7  ;;  %v248_v41 = vshll.u32 %v247_v3, 30  ;;  %v271_v28 = vsub.s32 4, %v247_v3 }
 0x2de   :  { %v444_v5 = vmul.f32 %v443_v62, %v428_v17  ;;  %v453_v6 = vxor.u32 2147483648, %v436_v11  ;;  %v249_v38 = vsub.s32 %v245_v12, %v248_v41  ;;  %v272_v2 = vsel %vm149_vm9, %v271_v28, %v247_v3  ;;  %v143_v3 = vld [vmem:[%s9341_s3] sm:$0xff]  ;;  %v144_v41 = vld [vmem:[%s9341_s3 + $0x10] sm:$0xff] }
 0x2df   :  { %v274_v51 = vsel %vm148_vm7, 0, %v272_v2 }
 0x2e0   :  { %v450_v30 = vxor.u32 2147483648, %v444_v5  ;;  %v2936_v56 = vsel %vm2934_vm14, %v453_v6, %v444_v5  ;;  %v454_v16 = vsel %vm452_vm2, %v453_v6, %v444_v5  ;;  %vm250_vm3 = vcmp.lt.s32.totalorder %v249_v38, 0 }
 0x2e1   :  { %v251_v21 = vsub.s32 0, %v249_v38  ;;  %v291_v39 = vadd.s32 3, %v274_v51  ;;  %v2775_v27 = vand.u32 3, %v274_v51 }
 0x2e2   :  { %v2933_v43 = vsel %vm2931_vm8, %v436_v11, %v450_v30  ;;  %v451_v9 = vsel %vm449_vm4, %v436_v11, %v450_v30  ;;  %vm290_vm8 = vweird.f32 %v9556_v31  ;;  %v2629_v30 = vld [vmem:[%s9341_s3 + $0x28] sm:$0xff] }
 0x2e3   :  { %v2937_v8 = vsel %vm2930_vm5, %v2933_v43, %v2936_v56  ;;  %v455_v54 = vsel %vm448_vm10, %v451_v9, %v454_v16  ;;  %v252_v25 = vsel %vm250_vm3, %v251_v21, %v249_v38  ;;  %v292_v61 = vand.u32 3, %v291_v39  ;;  %v2630_v56 = vld [vmem:[%s9341_s3 + $0x38] sm:$0xff]  ;;  %v146_v16 = vld [vmem:[%s9341_s3 + $0x30] sm:$0xff]  ;;  %v5170_v43 = vpop.permute.xlu2 %5169  ;;  %v5175_v9 = vpop.permute.xlu1 %5174 }
 0x2e4   :  { %v2938_v1 = vsel %vm445_vm13, nan, %v2937_v8  ;;  %v456_v13 = vsel %vm445_vm13, nan, %v455_v54  ;;  %v253_v24 = vclz %v252_v25  ;;  %vm2776_vm0 = vcmp.lt.s32.totalorder %v2775_v27, 2 }
 0x2e5   :  { %5109 = vmatpush.msra.mxu0 %v2938_v1  ;;  %5138 = vmatpush.msra.mxu1 %v456_v13  ;;  %vm2777_vm15 = vcmp.eq.s32.totalorder %v2775_v27, 0  ;;  %vm2780_vm6 = vcmp.eq.s32.totalorder %v2775_v27, 2  ;;  %vm293_vm1 = vcmp.lt.s32.totalorder %v292_v61, 2  ;;  %vm294_vm12 = vcmp.eq.s32.totalorder %v292_v61, 0  ;;  %v6016_v1 = vld [vmem:[%s9338_s0] ss:$0 sm:$0xff] }
 0x2e6   :  { %v5863_v42 = vadd.s32 4294967294, %v253_v24  ;;  %vm297_vm5 = vcmp.eq.s32.totalorder %v292_v61, 2 }
 0x2e8   :  { %vm5864_vm11 = vcmp.lt.s32.totalorder %v5863_v42, 0 }
 0x2e9   :  { %v256_v0 = vsel %vm5864_vm11, 0, %v5863_v42 }
 0x2ea   :  { %v257_v60 = vsub.s32 32, %v256_v0  ;;  %v261_v19 = vsub.s32 4294967266, %v256_v0  ;;  %v258_v18 = vshll.u32 %v249_v38, %v256_v0  ;;  %v145_v38 = vld [vmem:[%s9341_s3 + $0x20] sm:$0xff] }
 0x2eb   :  { %v5160_v21 = vpop.permute.xlu2 %5159  ;;  %v5207_v24 = vpop.permute.xlu1 %5206 }
 0x2ec   :  { %v259_v57 = vshrl.u32 %v241_v63, %v257_v60  ;;  %v262_v40 = vadd.s32 127, %v261_v19  ;;  %v5177_v13 = vmul.f32 %v6016_v1, %v5160_v21  ;;  %v5165_v60 = vpop.permute.xlu0 %5164 }
 0x2ee   :  { %v260_v34 = vor.u32 %v259_v57, %v258_v18  ;;  %v263_v23 = vshll.u32 %v262_v40, 23  ;;  %v5178_v40 = vmul.f32 %v6016_v1, %v5165_v60 }
 0x2f0   :  { %v264_v35 = vor.u32 4788187, %v263_v23  ;;  %v267_v55 = vcvt.s32.f32 %v260_v34 }
 0x2f2   :  { %v265_v17 = vand.u32 2147483647, %v264_v35 }
 0x2f3   :  { %v5192_v0 = vpop.permute.xlu2 %5191 }
 0x2f4   :  { %v268_v10 = vmul.f32 %v267_v55, %v265_v17  ;;  %v5197_v55 = vpop.permute.xlu1 %5196 }
 0x2f6   :  { %v269_v59 = vxor.u32 2147483648, %v268_v10 }
 0x2f8   :  { %v270_v33 = vsel %vm149_vm9, %v269_v59, %v268_v10 }
 0x2f9   :  { %v273_v36 = vsel %vm148_vm7, %v9556_v31, %v270_v33  ;;  %v2628_v31 = vld [vmem:[%s9341_s3 + $0x18] sm:$0xff] }
 0x2fa   :  { %v275_v52 = vmul.f32 %v273_v36, %v273_v36 }
 0x2fc   :  { %v276_v47 = vmul.f32 -0.001358992, %v275_v52  ;;  %v283_v58 = vmul.f32 -0.00019511016, %v275_v52 }
 0x2fe   :  { %v277_v4 = vadd.f32 0.041655596, %v276_v47  ;;  %v284_v14 = vadd.f32 0.008332121, %v283_v58  ;;  %v5179_v47 = vmul.f32 %v6016_v1, %v5170_v43 }
 0x300   :  { %v278_v50 = vmul.f32 %v277_v4, %v275_v52  ;;  %v285_v26 = vmul.f32 %v284_v14, %v275_v52 }
 0x302   :  { %v279_v15 = vadd.f32 -0.4999988, %v278_v50  ;;  %v286_v37 = vadd.f32 -0.16666654, %v285_v26  ;;  %v5202_v50 = vpop.permute.xlu0 %5201 }
 0x304   :  { %v280_v45 = vmul.f32 %v279_v15, %v275_v52  ;;  %v287_v22 = vmul.f32 %v286_v37, %v275_v52 }
 0x306   :  { %v281_v20 = vadd.f32 1.0, %v280_v45  ;;  %v288_v53 = vadd.f32 1.0, %v287_v22 }
 0x308   :  { %v289_v44 = vmul.f32 %v288_v53, %v273_v36  ;;  %v298_v46 = vxor.u32 2147483648, %v281_v20 }
 0x30a   :  { %v295_v12 = vxor.u32 2147483648, %v289_v44  ;;  %v2782_v7 = vsel %vm2780_vm6, %v298_v46, %v289_v44  ;;  %v299_v48 = vsel %vm297_vm5, %v298_v46, %v289_v44  ;;  %v5180_v44 = vmul.f32 %v6016_v1, %v5175_v9 }
 0x30c   :  { %v2779_v49 = vsel %vm2777_vm15, %v281_v20, %v295_v12  ;;  %v296_v32 = vsel %vm294_vm12, %v281_v20, %v295_v12 }
 0x30d   :  { %v2783_v11 = vsel %vm2776_vm0, %v2779_v49, %v2782_v7  ;;  %v300_v62 = vsel %vm293_vm1, %v296_v32, %v299_v48 }
 0x30e   :  { %v2784_v5 = vsel %vm290_vm8, nan, %v2783_v11  ;;  %v301_v6 = vsel %vm290_vm8, nan, %v300_v62 }
 0x30f   :  { %5110 = vmatpush.msra.mxu0 %v2784_v5  ;;  %5139 = vmatpush.msra.mxu1 %v301_v6 }
 0x310   :  { %5111 = vmatmul.f32.vlgmr.msra.gmra.mxu0 %v2627_v29  ;;  %5140 = vmatmul.f32.vlgmr.msra.gmra.mxu1 %v143_v3 }
 0x318   :  { %5114 = vmatmul.f32.gmra.mxu0 %v2628_v31  ;;  %5143 = vmatmul.f32.gmra.mxu1 %v144_v41 }
 0x320   :  { %5117 = vmatmul.f32.gmra.mxu0 %v2629_v30  ;;  %5146 = vmatmul.f32.gmra.mxu1 %v145_v38 }
 0x328   :  { %5120 = vmatmul.f32.gmra.mxu0 %v2630_v56  ;;  %5149 = vmatmul.f32.gmra.mxu1 %v146_v16 }
 0x38d   :  { %v5112_v8 = vpop.f32.mrf.mxu0  ;;  %v5141_v54 = vpop.f32.mrf.mxu1 }
 0x38e   :  { %v5142_v25 = vadd.f32 %v5141_v54, %v5112_v8 }
 0x390   :  { %v5181_v42 = vadd.f32 %v5177_v13, %v5142_v25 }
 0x392   :  { %v8937_v63 = vadd.f32 %v5192_v0, %v5181_v42 }
 0x394   :  { %v8940_v19 = vmul.f32 0.70710677, %v8937_v63 }
 0x395   :  { %v5115_v18 = vpop.f32.mrf.mxu0  ;;  %v5144_v57 = vpop.f32.mrf.mxu1 }
 0x396   :  { %v5221_v34 = vmul.f32 %v8940_v19, %v8940_v19  ;;  %v5145_v23 = vadd.f32 %v5144_v57, %v5115_v18 }
 0x398   :  { %v8944_v35 = vmin.f32 %v5221_v34, 16.0  ;;  %v5182_v17 = vadd.f32 %v5178_v40, %v5145_v23 }
 0x39a   :  { %v8946_v10 = vadd.f32 %v5197_v55, %v5182_v17  ;;  %v5234_v59 = vmul.f32 3.8918573e-05, %v8944_v35  ;;  %v5223_v39 = vmul.f32 2.1237322e-06, %v8944_v35 }
 0x39c   :  { %v8950_v33 = vmul.f32 0.70710677, %v8946_v10  ;;  %v5235_v52 = vadd.f32 0.001143296, %v5234_v59  ;;  %v5224_v7 = vadd.f32 0.00028619796, %v5223_v39 }
 0x39d   :  { %v5118_v28 = vpop.f32.mrf.mxu0  ;;  %v5147_v36 = vpop.f32.mrf.mxu1 }
 0x39e   :  { %v5261_v58 = vmul.f32 %v8950_v33, %v8950_v33  ;;  %v5148_v2 = vadd.f32 %v5147_v36, %v5118_v28  ;;  %v5236_v4 = vmul.f32 %v5235_v52, %v8944_v35  ;;  %v5225_v30 = vmul.f32 %v5224_v7, %v8944_v35 }
 0x3a0   :  { %v8955_v14 = vmin.f32 %v5261_v58, 16.0  ;;  %v5183_v51 = vadd.f32 %v5179_v47, %v5148_v2  ;;  %v5237_v26 = vadd.f32 0.014752088, %v5236_v4  ;;  %v5226_v13 = vadd.f32 0.0036580483, %v5225_v30 }
 0x3a2   :  { %v8957_v15 = vadd.f32 %v5202_v50, %v5183_v51  ;;  %v5274_v37 = vmul.f32 3.8918573e-05, %v8955_v14  ;;  %v5238_v45 = vmul.f32 %v5237_v26, %v8944_v35  ;;  %v5263_v62 = vmul.f32 2.1237322e-06, %v8955_v14 }
 0x3a3   :  { %v5227_v17 = vmul.f32 %v5226_v13, %v8944_v35 }
 0x3a4   :  { %v8963_v22 = vmul.f32 0.70710677, %v8957_v15  ;;  %v5275_v27 = vadd.f32 0.001143296, %v5274_v37  ;;  %v5239_v61 = vadd.f32 0.112945676, %v5238_v45 }
 0x3a5   :  { %v5121_v20 = vpop.f32.mrf.mxu0  ;;  %v5150_v53 = vpop.f32.mrf.mxu1  ;;  %v5264_v43 = vadd.f32 0.00028619796, %v5263_v62  ;;  %v5228_v51 = vadd.f32 0.05243302, %v5227_v17 }
 0x3a6   :  { %v5301_v46 = vmul.f32 %v8963_v22, %v8963_v22  ;;  %v5151_v12 = vadd.f32 %v5150_v53, %v5121_v20  ;;  %v5276_v49 = vmul.f32 %v5275_v27, %v8955_v14  ;;  %v5240_v32 = vmul.f32 %v5239_v61, %v8944_v35 }
 0x3a7   :  { %v5265_v0 = vmul.f32 %v5264_v43, %v8955_v14  ;;  %v5229_v27 = vmul.f32 %v5228_v51, %v8944_v35 }
 0x3a8   :  { %v8969_v48 = vmin.f32 %v5301_v46, 16.0  ;;  %v5184_v11 = vadd.f32 %v5180_v44, %v5151_v12  ;;  %v5277_v29 = vadd.f32 0.014752088, %v5276_v49  ;;  %v5241_v31 = vadd.f32 0.4994258, %v5240_v32 }
 0x3a9   :  { %v5266_v52 = vadd.f32 0.0036580483, %v5265_v0 }
 0x3aa   :  { %v8972_v3 = vadd.f32 %v5207_v24, %v5184_v11  ;;  %v5303_v5 = vmul.f32 2.1237322e-06, %v8969_v48  ;;  %v5314_v6 = vmul.f32 3.8918573e-05, %v8969_v48  ;;  %v5278_v41 = vmul.f32 %v5277_v29, %v8955_v14 }
 0x3ab   :  { %v5242_v8 = vmul.f32 %v5241_v31, %v8944_v35  ;;  %v5267_v45 = vmul.f32 %v5266_v52, %v8955_v14  ;;  %v5230_v29 = vadd.f32 0.18741608, %v5229_v27 }
 0x3ac   :  { %v8979_v38 = vmul.f32 0.70710677, %v8972_v3  ;;  %v5304_v56 = vadd.f32 0.00028619796, %v5303_v5  ;;  %v5315_v16 = vadd.f32 0.001143296, %v5314_v6 }
 0x3ad   :  { %v5279_v9 = vadd.f32 0.112945676, %v5278_v41  ;;  %v8992_v40 = vadd.f32 1.0, %v5242_v8  ;;  %v5268_v32 = vadd.f32 0.05243302, %v5267_v45  ;;  %v5231_v43 = vmul.f32 %v5230_v29, %v8944_v35 }
 0x3ae   :  { %v5341_v21 = vmul.f32 %v8979_v38, %v8979_v38  ;;  %v5316_v54 = vmul.f32 %v5315_v16, %v8969_v48  ;;  %v5305_v24 = vmul.f32 %v5304_v56, %v8969_v48 }
 0x3af   :  { %v5280_v1 = vmul.f32 %v5279_v9, %v8955_v14  ;;  %5992 = vrcp.f32 %v8992_v40  ;;  %v5269_v30 = vmul.f32 %v5268_v32, %v8955_v14  ;;  %v5232_v0 = vadd.f32 1.1283791, %v5231_v43 }
 0x3b0   :  { %v8986_v25 = vmin.f32 %v5341_v21, 16.0  ;;  %v5317_v42 = vadd.f32 0.014752088, %v5316_v54  ;;  %v5306_v28 = vadd.f32 0.0036580483, %v5305_v24  ;;  %vm5249_vm14 = vweird.f32 %v8992_v40 }
 0x3b1   :  { %v5281_v60 = vadd.f32 0.4994258, %v5280_v1  ;;  %v5270_v13 = vadd.f32 0.18741608, %v5269_v30  ;;  %v5253_v35 = vand.u32 2147483647, %v8992_v40 }
 0x3b2   :  { %v5343_v18 = vmul.f32 2.1237322e-06, %v8986_v25  ;;  %v5354_v57 = vmul.f32 3.8918573e-05, %v8986_v25  ;;  %v5318_v34 = vmul.f32 %v5317_v42, %v8969_v48  ;;  %v5307_v26 = vmul.f32 %v5306_v28, %v8969_v48 }
 0x3b3   :  { %v5282_v23 = vmul.f32 %v5281_v60, %v8955_v14  ;;  %v5255_v17 = vand.u32 2147483648, %v8992_v40  ;;  %vm5254_vm1 = vcmp.eq.f32.partialorder %v5253_v35, 8.507059e+37  ;;  %v5213_v35 = vmul.f32 0.5, %v8937_v63  ;;  %v9091_v63 = vld [vmem:[%s9343_s5 + $0x10] sm:$0xff] }
 0x3b4   :  { %v5344_v55 = vadd.f32 0.00028619796, %v5343_v18  ;;  %v5355_v59 = vadd.f32 0.001143296, %v5354_v57  ;;  %v5319_v36 = vadd.f32 0.112945676, %v5318_v34 }
 0x3b5   :  { %v8997_v47 = vadd.f32 1.0, %v5282_v23  ;;  %v9009_v61 = vpop.eup %5992  ;;  %v5308_v46 = vadd.f32 0.05243302, %v5307_v26  ;;  %v5271_v23 = vmul.f32 %v5270_v13, %v8955_v14 }
 0x3b6   :  { %v5345_v58 = vmul.f32 %v5344_v55, %v8986_v25  ;;  %v5356_v2 = vmul.f32 %v5355_v59, %v8986_v25  ;;  %v5320_v4 = vmul.f32 %v5319_v36, %v8969_v48  ;;  %v5245_v31 = vmul.f32 %v9009_v61, %v8992_v40 }
 0x3b7   :  { %5994 = vrcp.f32 %v8997_v47  ;;  %v5309_v6 = vmul.f32 %v5308_v46, %v8969_v48  ;;  %v5293_v59 = vand.u32 2147483647, %v8997_v47  ;;  %v5295_v28 = vand.u32 2147483648, %v8997_v47 }
 0x3b8   :  { %v5357_v50 = vadd.f32 0.014752088, %v5356_v2  ;;  %v5346_v37 = vadd.f32 0.0036580483, %v5345_v58  ;;  %v5321_v39 = vadd.f32 0.4994258, %v5320_v4  ;;  %vm5289_vm4 = vweird.f32 %v8997_v47 }
 0x3b9   :  { %v5310_v21 = vadd.f32 0.18741608, %v5309_v6  ;;  %v5246_v8 = vsub.f32 1.0, %v5245_v31  ;;  %vm5250_vm3 = vweird.f32 %v9009_v61  ;;  %vm5294_vm7 = vcmp.eq.f32.partialorder %v5293_v59, 8.507059e+37 }
 0x3ba   :  { %v5358_v20 = vmul.f32 %v5357_v50, %v8986_v25  ;;  %v5322_v53 = vmul.f32 %v5321_v39, %v8969_v48  ;;  %v5347_v49 = vmul.f32 %v5346_v37, %v8986_v25  ;;  %v5272_v39 = vadd.f32 1.1283791, %v5271_v23  ;;  %vm9056_vm15 = vmor %vm5249_vm14, %vm5250_vm3 }
 0x3bb   :  { %v5311_v60 = vmul.f32 %v5310_v21, %v8969_v48  ;;  %v5247_v18 = vmul.f32 %v9009_v61, %v5246_v8  ;;  %v5256_v40 = vor.u32 1.1754944e-38, %v5255_v17  ;;  %v5233_v6 = vmul.f32 %v5232_v0, %v8940_v19 }
 0x3bc   :  { %v5359_v44 = vadd.f32 0.112945676, %v5358_v20  ;;  %v5323_v7 = vadd.f32 1.0, %v5322_v53  ;;  %v5348_v41 = vadd.f32 0.05243302, %v5347_v49  ;;  %v5215_v19 = vmul.f32 0.5, %v8957_v15 }
 0x3bd   :  { %v9011_v12 = vpop.eup %5994  ;;  %v5312_v2 = vadd.f32 1.1283791, %v5311_v60  ;;  %v5248_v14 = vadd.f32 %v9009_v61, %v5247_v18  ;;  %v5214_v0 = vmul.f32 0.5, %v8946_v10  ;;  %vm5417_vm14 = vcmask 261120   ;;  %v9084_v10 = vld [vmem:[%s9343_s5 + $0x8] sm:$0xff]  ;;  %v9098_v15 = vld [vmem:[%s9343_s5 + $0x18] sm:$0xff] }
 0x3be   :  { %v5360_v11 = vmul.f32 %v5359_v44, %v8986_v25  ;;  %5996 = vrcp.f32 %v5323_v7  ;;  %v5285_v62 = vmul.f32 %v9011_v12, %v8997_v47  ;;  %v5349_v1 = vmul.f32 %v5348_v41, %v8986_v25 }
 0x3bf   :  { %v5335_v55 = vand.u32 2147483648, %v5323_v7  ;;  %vm5290_vm2 = vweird.f32 %v9011_v12  ;;  %v5333_v36 = vand.u32 2147483647, %v5323_v7  ;;  %vm5329_vm13 = vweird.f32 %v5323_v7 }
 0x3c0   :  { %v5361_v5 = vadd.f32 0.4994258, %v5360_v11  ;;  %v5286_v16 = vsub.f32 1.0, %v5285_v62  ;;  %v5350_v57 = vadd.f32 0.18741608, %v5349_v1  ;;  %vm9045_vm11 = vmor %vm5289_vm4, %vm5290_vm2  ;;  %v5296_v47 = vor.u32 1.1754944e-38, %v5295_v28 }
 0x3c1   :  { %v5336_v37 = vor.u32 1.1754944e-38, %v5335_v55  ;;  %vm5334_vm0 = vcmp.eq.f32.partialorder %v5333_v36, 8.507059e+37  ;;  %v5313_v44 = vmul.f32 %v5312_v2, %v8963_v22  ;;  %v5252_v49 = vsel %vm9056_vm15, %v9009_v61, %v5248_v14  ;;  %v9116_v36 = vpop.permute.xlu2 %5404 }
 0x3c2   :  { %v5362_v56 = vmul.f32 %v5361_v5, %v8986_v25  ;;  %v5287_v42 = vmul.f32 %v9011_v12, %v5286_v16  ;;  %v5351_v4 = vmul.f32 %v5350_v57, %v8986_v25  ;;  %v5273_v5 = vmul.f32 %v5272_v39, %v8950_v33 }
 0x3c3   :  { %v5257_v31 = vsel %vm5254_vm1, %v5256_v40, %v5252_v49 }
 0x3c4   :  { %v9023_v9 = vadd.f32 1.0, %v5362_v56  ;;  %v5997_v54 = vpop.eup %5996  ;;  %v5288_v52 = vadd.f32 %v9011_v12, %v5287_v42  ;;  %v5258_v21 = vmul.f32 %v5257_v31, %v5233_v6 }
 0x3c5   :  { %v5325_v24 = vmul.f32 %v5997_v54, %v5323_v7  ;;  %vm5330_vm10 = vweird.f32 %v5997_v54  ;;  %v5352_v7 = vadd.f32 1.1283791, %v5351_v4 }
 0x3c6   :  { %5998 = vrcp.f32 %v9023_v9  ;;  %vm5331_vm9 = vmor %vm5329_vm13, %vm5330_vm10  ;;  %v5292_v25 = vsel %vm9045_vm11, %v9011_v12, %v5288_v52  ;;  %v5375_v27 = vand.u32 2147483648, %v9023_v9  ;;  %v5373_v12 = vand.u32 2147483647, %v9023_v9 }
 0x3c7   :  { %v5326_v34 = vsub.f32 1.0, %v5325_v24  ;;  %v5297_v11 = vsel %vm5294_vm7, %v5296_v47, %v5292_v25  ;;  %vm5369_vm12 = vweird.f32 %v9023_v9  ;;  %v5353_v61 = vmul.f32 %v5352_v7, %v8979_v38 }
 0x3c8   :  { %v5376_v22 = vor.u32 1.1754944e-38, %v5375_v27  ;;  %vm5374_vm8 = vcmp.eq.f32.partialorder %v5373_v12, 8.507059e+37  ;;  %v5298_v30 = vmul.f32 %v5297_v11, %v5273_v5  ;;  %v5958_v13 = vclamps-f32 %v5258_v21, 1.0 }
 0x3c9   :  { %v5327_v48 = vmul.f32 %v5997_v54, %v5326_v34  ;;  %v9102_v34 = vpop.permute.xlu0 %5414 }
 0x3ca   :  { %v5381_v60 = vadd.f32 1.0, %v5958_v13 }
 0x3cb   :  { %v5328_v50 = vadd.f32 %v5997_v54, %v5327_v48 }
 0x3cc   :  { %v5999_v58 = vpop.eup %5998  ;;  %v5385_v57 = vmul.f32 %v5381_v60, %v5213_v35 }
 0x3cd   :  { %v5365_v51 = vmul.f32 %v5999_v58, %v9023_v9  ;;  %v5332_v20 = vsel %vm5331_vm9, %v5997_v54, %v5328_v50  ;;  %vm5370_vm6 = vweird.f32 %v5999_v58  ;;  %v5959_v54 = vclamps-f32 %v5298_v30, 1.0 }
 0x3ce   :  { %v5337_v46 = vsel %vm5334_vm0, %v5336_v37, %v5332_v20  ;;  %vm5371_vm5 = vmor %vm5369_vm12, %vm5370_vm6  ;;  %v5216_v9 = vmul.f32 0.5, %v8972_v3  ;;  %v9077_v3 = vld [vmem:[%s9343_s5] sm:$0xff]  ;;  %v9130_v37 = vpop.permute.xlu1 %5409  ;;  %s6050_s5 = smov [#allocation2]  }
 0x3cf   :  { %v5366_v45 = vsub.f32 1.0, %v5365_v51  ;;  %v5338_v29 = vmul.f32 %v5337_v46, %v5313_v44  ;;  %v5382_v42 = vadd.f32 1.0, %v5959_v54  ;;  %s5848_s4 = sshll.u32 %s6050_s5, 4  ;;  %s5849_s4 = int_to_ptr.vmem [resolvable:$true] %s5848_s4 }
 0x3d1   :  { %v5367_v32 = vmul.f32 %v5999_v58, %v5366_v45  ;;  %v5960_v43 = vclamps-f32 %v5338_v29, 1.0  ;;  %v5386_v18 = vmul.f32 %v5382_v42, %v5214_v0  ;;  %v9104_v23 = vpop.permute.xlu0 %5399 }
 0x3d3   :  { %v5368_v62 = vadd.f32 %v5999_v58, %v5367_v32  ;;  %v5383_v33 = vadd.f32 1.0, %v5960_v43 }
 0x3d5   :  { %v5372_v41 = vsel %vm5371_vm5, %v5999_v58, %v5368_v62  ;;  %v5387_v38 = vmul.f32 %v5383_v33, %v5215_v19 }
 0x3d6   :  { %v5377_v56 = vsel %vm5374_vm8, %v5376_v22, %v5372_v41 }
 0x3d7   :  { %v5378_v16 = vmul.f32 %v5377_v56, %v5353_v61 }
 0x3d9   :  { %v5961_v8 = vclamps-f32 %v5378_v16, 1.0 }
 0x3db   :  { %v5384_v1 = vadd.f32 1.0, %v5961_v8 }
 0x3dd   :  { %v5388_v24 = vmul.f32 %v5384_v1, %v5216_v9 }
 0x3df   :  { %5442 = vmatpush.msra.mxu2 %v5388_v24 }
 0x3e1   :  { %5443 = vmatpush.msra.mxu2 %v5387_v38 }
 0x3e3   :  { %5444 = vmatpush.msra.mxu2 %v5386_v18 }
 0x3e5   :  { %5445 = vmatpush.msra.mxu2 %v5385_v57 }
 0x3e6   :  { %5962 = vmatmul.msk.f32.vlgmr.msra.gmra.mxu2 %vm5417_vm14, %v9077_v3 }
 0x3ee   :  { %5963 = vmatmul.msk.f32.gmra.mxu2 %vm5417_vm14, %v9084_v10 }
 0x3f6   :  { %5964 = vmatmul.msk.f32.gmra.mxu2 %vm5417_vm14, %v9091_v63 }
 0x3fe   :  { %5965 = vmatmul.msk.f32.gmra.mxu2 %vm5417_vm14, %v9098_v15 }
 0x469   :  { %v5447_v17 = vpop.f32.mrf.mxu2 }
 0x46a   :  { %v9107_v55 = vadd.f32 %v5447_v17, %v9104_v23 }
 0x46c   :  { %v9110_v59 = vmul.f32 0.70710677, %v9107_v55 }
 0x46e   :  { %v5467_v28 = vmul.f32 %v9110_v59, %v9110_v59 }
 0x470   :  { %v9114_v48 = vmin.f32 %v5467_v28, 16.0 }
 0x471   :  { %v5450_v52 = vpop.f32.mrf.mxu2 }
 0x472   :  { %v9119_v58 = vadd.f32 %v5450_v52, %v9116_v36  ;;  %v5480_v2 = vmul.f32 3.8918573e-05, %v9114_v48  ;;  %v5469_v45 = vmul.f32 2.1237322e-06, %v9114_v48 }
 0x474   :  { %v9123_v14 = vmul.f32 0.70710677, %v9119_v58  ;;  %v5481_v4 = vadd.f32 0.001143296, %v5480_v2  ;;  %v5470_v49 = vadd.f32 0.00028619796, %v5469_v45 }
 0x476   :  { %v5507_v51 = vmul.f32 %v9123_v14, %v9123_v14  ;;  %v5482_v50 = vmul.f32 %v5481_v4, %v9114_v48  ;;  %v5471_v5 = vmul.f32 %v5470_v49, %v9114_v48 }
 0x478   :  { %v9128_v26 = vmin.f32 %v5507_v51, 16.0  ;;  %v5483_v47 = vadd.f32 0.014752088, %v5482_v50  ;;  %v5472_v54 = vadd.f32 0.0036580483, %v5471_v5 }
 0x479   :  { %v5453_v39 = vpop.f32.mrf.mxu2 }
 0x47a   :  { %v9134_v20 = vadd.f32 %v5453_v39, %v9130_v37  ;;  %v5520_v25 = vmul.f32 3.8918573e-05, %v9128_v26  ;;  %v5484_v53 = vmul.f32 %v5483_v47, %v9114_v48  ;;  %v5509_v11 = vmul.f32 2.1237322e-06, %v9128_v26 }
 0x47b   :  { %v5473_v18 = vmul.f32 %v5472_v54, %v9114_v48 }
 0x47c   :  { %v9139_v27 = vmul.f32 0.70710677, %v9134_v20  ;;  %v5521_v44 = vadd.f32 0.001143296, %v5520_v25  ;;  %v5485_v46 = vadd.f32 0.112945676, %v5484_v53 }
 0x47d   :  { %v5510_v56 = vadd.f32 0.00028619796, %v5509_v11  ;;  %v5474_v45 = vadd.f32 0.05243302, %v5473_v18 }
 0x47e   :  { %v5547_v7 = vmul.f32 %v9139_v27, %v9139_v27  ;;  %v5522_v32 = vmul.f32 %v5521_v44, %v9128_v26  ;;  %v5486_v12 = vmul.f32 %v5485_v46, %v9114_v48 }
 0x47f   :  { %v5511_v19 = vmul.f32 %v5510_v56, %v9128_v26 }
 0x480   :  { %v9146_v40 = vmin.f32 %v5547_v7, 16.0  ;;  %v5523_v29 = vadd.f32 0.014752088, %v5522_v32  ;;  %v5487_v41 = vadd.f32 0.4994258, %v5486_v12  ;;  %v5475_v12 = vmul.f32 %v5474_v45, %v9114_v48 }
 0x481   :  { %v5456_v62 = vpop.f32.mrf.mxu2  ;;  %v5512_v4 = vadd.f32 0.0036580483, %v5511_v19 }
 0x482   :  { %v9150_v22 = vadd.f32 %v5456_v62, %v9102_v34  ;;  %v5549_v6 = vmul.f32 2.1237322e-06, %v9146_v40  ;;  %v5560_v31 = vmul.f32 3.8918573e-05, %v9146_v40  ;;  %v5524_v61 = vmul.f32 %v5523_v29, %v9128_v26 }
 0x483   :  { %v5488_v1 = vmul.f32 %v5487_v41, %v9114_v48  ;;  %v5513_v46 = vmul.f32 %v5512_v4, %v9128_v26 }
 0x484   :  { %v9156_v30 = vmul.f32 0.70710677, %v9150_v22  ;;  %v5550_v16 = vadd.f32 0.00028619796, %v5549_v6  ;;  %v5561_v43 = vadd.f32 0.001143296, %v5560_v31 }
 0x485   :  { %v5525_v8 = vadd.f32 0.112945676, %v5524_v61  ;;  %v9171_v57 = vadd.f32 1.0, %v5488_v1  ;;  %v5514_v6 = vadd.f32 0.05243302, %v5513_v46 }
 0x486   :  { %v5587_v21 = vmul.f32 %v9156_v30, %v9156_v30  ;;  %v5562_v9 = vmul.f32 %v5561_v43, %v9146_v40  ;;  %v5551_v33 = vmul.f32 %v5550_v16, %v9146_v40  ;;  %v5476_v16 = vadd.f32 0.18741608, %v5475_v12 }
 0x487   :  { %v5526_v24 = vmul.f32 %v5525_v8, %v9128_v26  ;;  %6000 = vrcp.f32 %v9171_v57  ;;  %vm5495_vm2 = vweird.f32 %v9171_v57  ;;  %v5501_v45 = vand.u32 2147483648, %v9171_v57 }
 0x488   :  { %v9163_v13 = vmin.f32 %v5587_v21, 16.0  ;;  %v5563_v42 = vadd.f32 0.014752088, %v5562_v9  ;;  %v5552_v17 = vadd.f32 0.0036580483, %v5551_v33  ;;  %v5515_v9 = vmul.f32 %v5514_v6, %v9128_v26 }
 0x489   :  { %v5527_v60 = vadd.f32 0.4994258, %v5526_v24  ;;  %v5477_v24 = vmul.f32 %v5476_v16, %v9114_v48  ;;  %v5499_v48 = vand.u32 2147483647, %v9171_v57 }
 0x48a   :  { %v5589_v38 = vmul.f32 2.1237322e-06, %v9163_v13  ;;  %v5600_v0 = vmul.f32 3.8918573e-05, %v9163_v13  ;;  %v5564_v35 = vmul.f32 %v5563_v42, %v9146_v40  ;;  %v5553_v53 = vmul.f32 %v5552_v17, %v9146_v40 }
 0x48b   :  { %v5528_v2 = vmul.f32 %v5527_v60, %v9128_v26  ;;  %v5516_v18 = vadd.f32 0.18741608, %v5515_v9  ;;  %v5478_v17 = vadd.f32 1.1283791, %v5477_v24  ;;  %vm5500_vm12 = vcmp.eq.f32.partialorder %v5499_v48, 8.507059e+37 }
 0x48c   :  { %v5590_v28 = vadd.f32 0.00028619796, %v5589_v38  ;;  %v5601_v52 = vadd.f32 0.001143296, %v5600_v0  ;;  %v5565_v51 = vadd.f32 0.112945676, %v5564_v35 }
 0x48d   :  { %v9176_v47 = vadd.f32 1.0, %v5528_v2  ;;  %v5554_v62 = vadd.f32 0.05243302, %v5553_v53  ;;  %v9186_v5 = vpop.eup %6000 }
 0x48e   :  { %v5591_v50 = vmul.f32 %v5590_v28, %v9163_v13  ;;  %v5602_v39 = vmul.f32 %v5601_v52, %v9163_v13  ;;  %v5566_v25 = vmul.f32 %v5565_v51, %v9146_v40  ;;  %v5491_v54 = vmul.f32 %v9186_v5, %v9171_v57 }
 0x48f   :  { %6002 = vrcp.f32 %v9176_v47  ;;  %v5555_v43 = vmul.f32 %v5554_v62, %v9146_v40  ;;  %v5517_v51 = vmul.f32 %v5516_v18, %v9128_v26  ;;  %v5539_v53 = vand.u32 2147483647, %v9176_v47 }
 0x490   :  { %v5603_v44 = vadd.f32 0.014752088, %v5602_v39  ;;  %v5592_v49 = vadd.f32 0.0036580483, %v5591_v50  ;;  %v5567_v7 = vadd.f32 0.4994258, %v5566_v25  ;;  %vm5535_vm3 = vweird.f32 %v9176_v47 }
 0x491   :  { %v5556_v42 = vadd.f32 0.18741608, %v5555_v43  ;;  %v5492_v0 = vsub.f32 1.0, %v5491_v54  ;;  %vm5496_vm13 = vweird.f32 %v9186_v5  ;;  %v5518_v6 = vadd.f32 1.1283791, %v5517_v51 }
 0x492   :  { %v5604_v32 = vmul.f32 %v5603_v44, %v9163_v13  ;;  %v5568_v11 = vmul.f32 %v5567_v7, %v9146_v40  ;;  %v5593_v31 = vmul.f32 %v5592_v49, %v9163_v13  ;;  %v5541_v44 = vand.u32 2147483648, %v9176_v47  ;;  %vm9233_vm6 = vmor %vm5495_vm2, %vm5496_vm13 }
 0x493   :  { %v5557_v2 = vmul.f32 %v5556_v42, %v9146_v40  ;;  %v5493_v4 = vmul.f32 %v9186_v5, %v5492_v0  ;;  %vm5540_vm0 = vcmp.eq.f32.partialorder %v5539_v53, 8.507059e+37  ;;  %v5502_v57 = vor.u32 1.1754944e-38, %v5501_v45 }
 0x494   :  { %v5605_v29 = vadd.f32 0.112945676, %v5604_v32  ;;  %v5569_v61 = vadd.f32 1.0, %v5568_v11  ;;  %v5594_v1 = vadd.f32 0.05243302, %v5593_v31  ;;  %v5519_v24 = vmul.f32 %v5518_v6, %v9123_v14 }
 0x495   :  { %v9189_v41 = vpop.eup %6002  ;;  %v5558_v32 = vadd.f32 1.1283791, %v5557_v2  ;;  %v5494_v26 = vadd.f32 %v9186_v5, %v5493_v4  ;;  %v5479_v42 = vmul.f32 %v5478_v17, %v9110_v59  ;;  %v5462_v51 = vmul.f32 0.5, %v9150_v22 }
 0x496   :  { %v5606_v56 = vmul.f32 %v5605_v29, %v9163_v13  ;;  %6004 = vrcp.f32 %v5569_v61  ;;  %v5531_v8 = vmul.f32 %v9189_v41, %v9176_v47  ;;  %v5595_v35 = vmul.f32 %v5594_v1, %v9163_v13 }
 0x497   :  { %v5581_v25 = vand.u32 2147483648, %v5569_v61  ;;  %vm5536_vm10 = vweird.f32 %v9189_v41  ;;  %v5579_v46 = vand.u32 2147483647, %v5569_v61  ;;  %vm5575_vm11 = vweird.f32 %v5569_v61 }
 0x498   :  { %v5607_v21 = vadd.f32 0.4994258, %v5606_v56  ;;  %v5532_v19 = vsub.f32 1.0, %v5531_v8  ;;  %v5596_v50 = vadd.f32 0.18741608, %v5595_v35  ;;  %vm9222_vm9 = vmor %vm5535_vm3, %vm5536_vm10  ;;  %v5542_v47 = vor.u32 1.1754944e-38, %v5541_v44 }
 0x499   :  { %v5582_v31 = vor.u32 1.1754944e-38, %v5581_v25  ;;  %vm5580_vm15 = vcmp.eq.f32.partialorder %v5579_v46, 8.507059e+37  ;;  %v5559_v43 = vmul.f32 %v5558_v32, %v9139_v27  ;;  %v5498_v54 = vsel %vm9233_vm6, %v9186_v5, %v5494_v26 }
 0x49a   :  { %v5608_v33 = vmul.f32 %v5607_v21, %v9163_v13  ;;  %v5533_v52 = vmul.f32 %v9189_v41, %v5532_v19  ;;  %v5597_v12 = vmul.f32 %v5596_v50, %v9163_v13  ;;  %v5461_v59 = vmul.f32 0.5, %v9134_v20 }
 0x49b   :  { %v5459_v44 = vmul.f32 0.5, %v9107_v55 }
 0x49c   :  { %v9200_v38 = vadd.f32 1.0, %v5608_v33  ;;  %v6005_v60 = vpop.eup %6004  ;;  %v5534_v49 = vadd.f32 %v9189_v41, %v5533_v52  ;;  %v5598_v9 = vadd.f32 1.1283791, %v5597_v12 }
 0x49d   :  { %v5571_v28 = vmul.f32 %v6005_v60, %v5569_v61  ;;  %vm5576_vm4 = vweird.f32 %v6005_v60 }
 0x49e   :  { %6006 = vrcp.f32 %v9200_v38  ;;  %vm5577_vm7 = vmor %vm5575_vm11, %vm5576_vm4  ;;  %v5538_v13 = vsel %vm9222_vm9, %v9189_v41, %v5534_v49  ;;  %v5621_v21 = vand.u32 2147483648, %v9200_v38  ;;  %v5619_v41 = vand.u32 2147483647, %v9200_v38 }
 0x49f   :  { %v5572_v39 = vsub.f32 1.0, %v5571_v28  ;;  %v5543_v33 = vsel %vm5540_vm0, %v5542_v47, %v5538_v13  ;;  %vm5615_vm5 = vweird.f32 %v9200_v38  ;;  %v5599_v5 = vmul.f32 %v5598_v9, %v9156_v30 }
 0x4a0   :  { %v5622_v0 = vor.u32 1.1754944e-38, %v5621_v21  ;;  %vm5620_vm2 = vcmp.eq.f32.partialorder %v5619_v41, 8.507059e+37  ;;  %v5544_v35 = vmul.f32 %v5543_v33, %v5519_v24  ;;  %v5460_v30 = vmul.f32 0.5, %v9119_v58 }
 0x4a1   :  { %v5573_v40 = vmul.f32 %v6005_v60, %v5572_v39 }
 0x4a2   :  { %v5967_v14 = vclamps-f32 %v5544_v35, 1.0 }
 0x4a3   :  { %v5574_v62 = vadd.f32 %v6005_v60, %v5573_v40 }
 0x4a4   :  { %v6007_v7 = vpop.eup %6006  ;;  %v5628_v45 = vadd.f32 1.0, %v5967_v14 }
 0x4a5   :  { %v5611_v11 = vmul.f32 %v6007_v7, %v9200_v38  ;;  %v5578_v16 = vsel %vm5577_vm7, %v6005_v60, %v5574_v62  ;;  %vm5616_vm1 = vweird.f32 %v6007_v7  ;;  %v5503_v60 = vsel %vm5500_vm12, %v5502_v57, %v5498_v54 }
 0x4a6   :  { %v5583_v8 = vsel %vm5580_vm15, %v5582_v31, %v5578_v16  ;;  %vm5617_vm8 = vmor %vm5615_vm5, %vm5616_vm1  ;;  %v5504_v4 = vmul.f32 %v5503_v60, %v5479_v42  ;;  %v5632_v40 = vmul.f32 %v5628_v45, %v5460_v30 }
 0x4a7   :  { %v5612_v56 = vsub.f32 1.0, %v5611_v11  ;;  %v5584_v27 = vmul.f32 %v5583_v8, %v5559_v43 }
 0x4a8   :  { %v5966_v39 = vclamps-f32 %v5504_v4, 1.0 }
 0x4a9   :  { %v5613_v1 = vmul.f32 %v6007_v7, %v5612_v56  ;;  %v5968_v2 = vclamps-f32 %v5584_v27, 1.0 }
 0x4aa   :  { %v5627_v53 = vadd.f32 1.0, %v5966_v39 }
 0x4ab   :  { %v5614_v19 = vadd.f32 %v6007_v7, %v5613_v1  ;;  %v5629_v50 = vadd.f32 1.0, %v5968_v2 }
 0x4ac   :  { %v5631_v46 = vmul.f32 %v5627_v53, %v5459_v44 }
 0x4ad   :  { %v5618_v18 = vsel %vm5617_vm8, %v6007_v7, %v5614_v19  ;;  %v5633_v25 = vmul.f32 %v5629_v50, %v5461_v59 }
 0x4ae   :  { %v5623_v28 = vsel %vm5620_vm2, %v5622_v0, %v5618_v18 }
 0x4af   :  { %v5624_v52 = vmul.f32 %v5623_v28, %v5599_v5 }
 0x4b1   :  { %v5969_v48 = vclamps-f32 %v5624_v52, 1.0 }
 0x4b3   :  { %v5630_v38 = vadd.f32 1.0, %v5969_v48 }
 0x4b5   :  { %v5634_v17 = vmul.f32 %v5630_v38, %v5462_v51 }
 0x4b7   :  { %5647 = vmatpush.msra.mxu3 %v5634_v17 }
 0x4b9   :  { %5648 = vmatpush.msra.mxu3 %v5633_v25 }
 0x4bb   :  { %5649 = vmatpush.msra.mxu3 %v5632_v40 }
 0x4bd   :  { %5650 = vmatpush.msra.mxu3 %v5631_v46 }
 0x4be   :  { %5970 = vmatmul.msk.f32.vlgmr.msra.gmra.mxu3 %vm5417_vm14, %v9077_v3 }
 0x4c6   :  { %5971 = vmatmul.msk.f32.gmra.mxu3 %vm5417_vm14, %v9084_v10 }
 0x4ce   :  { %5972 = vmatmul.msk.f32.gmra.mxu3 %vm5417_vm14, %v9091_v63 }
 0x4d6   :  { %5973 = vmatmul.msk.f32.gmra.mxu3 %vm5417_vm14, %v9098_v15 }
 0x541   :  { %v5652_v58 = vpop.f32.mrf.mxu3 }
 0x542   :  { %v9260_v55 = vadd.f32 %v5652_v58, %v9104_v23 }
 0x544   :  { %v9263_v20 = vmul.f32 0.70710677, %v9260_v55 }
 0x546   :  { %v5672_v22 = vmul.f32 %v9263_v20, %v9263_v20 }
 0x548   :  { %v5673_v3 = vmin.f32 %v5672_v22, 16.0 }
 0x549   :  { %v5655_v49 = vpop.f32.mrf.mxu3 }
 0x54a   :  { %v5674_v7 = vmul.f32 2.1237322e-06, %v5673_v3  ;;  %v5685_v10 = vmul.f32 3.8918573e-05, %v5673_v3  ;;  %v9268_v32 = vadd.f32 %v5655_v49, %v9116_v36 }
 0x54c   :  { %v5675_v63 = vadd.f32 0.00028619796, %v5674_v7  ;;  %v5686_v26 = vadd.f32 0.001143296, %v5685_v10  ;;  %v9271_v15 = vmul.f32 0.70710677, %v9268_v32 }
 0x54e   :  { %v5676_v23 = vmul.f32 %v5675_v63, %v5673_v3  ;;  %v5687_v12 = vmul.f32 %v5686_v26, %v5673_v3  ;;  %v5712_v11 = vmul.f32 %v9271_v15, %v9271_v15 }
 0x550   :  { %v5677_v62 = vadd.f32 0.0036580483, %v5676_v23  ;;  %v5688_v29 = vadd.f32 0.014752088, %v5687_v12  ;;  %v9275_v6 = vmin.f32 %v5712_v11, 16.0 }
 0x551   :  { %v5658_v31 = vpop.f32.mrf.mxu3 }
 0x552   :  { %v5689_v47 = vmul.f32 %v5688_v29, %v5673_v3  ;;  %v9278_v56 = vadd.f32 %v5658_v31, %v9130_v37  ;;  %v5678_v36 = vmul.f32 %v5677_v62, %v5673_v3  ;;  %v5714_v16 = vmul.f32 2.1237322e-06, %v9275_v6 }
 0x553   :  { %v5725_v13 = vmul.f32 3.8918573e-05, %v9275_v6 }
 0x554   :  { %v5690_v61 = vadd.f32 0.112945676, %v5689_v47  ;;  %v5715_v43 = vadd.f32 0.00028619796, %v5714_v16  ;;  %v9283_v8 = vmul.f32 0.70710677, %v9278_v56 }
 0x555   :  { %v5726_v21 = vadd.f32 0.001143296, %v5725_v13  ;;  %v5679_v9 = vadd.f32 0.05243302, %v5678_v36 }
 0x556   :  { %v5691_v54 = vmul.f32 %v5690_v61, %v5673_v3  ;;  %v5716_v1 = vmul.f32 %v5715_v43, %v9275_v6  ;;  %v5752_v37 = vmul.f32 %v9283_v8, %v9283_v8 }
 0x557   :  { %v5727_v41 = vmul.f32 %v5726_v21, %v9275_v6  ;;  %v5680_v60 = vmul.f32 %v5679_v9, %v5673_v3 }
 0x558   :  { %v5692_v33 = vadd.f32 0.4994258, %v5691_v54  ;;  %v9289_v24 = vmin.f32 %v5752_v37, 16.0  ;;  %v5717_v42 = vadd.f32 0.0036580483, %v5716_v1 }
 0x559   :  { %v5728_v57 = vadd.f32 0.014752088, %v5727_v41  ;;  %v5661_v19 = vpop.f32.mrf.mxu3  ;;  %v5681_v14 = vadd.f32 0.18741608, %v5680_v60 }
 0x55a   :  { %v5693_v27 = vmul.f32 %v5692_v33, %v5673_v3  ;;  %v9292_v0 = vadd.f32 %v5661_v19, %v9102_v34  ;;  %v5754_v18 = vmul.f32 2.1237322e-06, %v9289_v24  ;;  %v5765_v28 = vmul.f32 3.8918573e-05, %v9289_v24 }
 0x55b   :  { %v5729_v5 = vmul.f32 %v5728_v57, %v9275_v6  ;;  %v5718_v48 = vmul.f32 %v5717_v42, %v9275_v6  ;;  %v5682_v30 = vmul.f32 %v5681_v14, %v5673_v3 }
 0x55c   :  { %v5694_v35 = vadd.f32 1.0, %v5693_v27  ;;  %v9298_v52 = vmul.f32 0.70710677, %v9292_v0  ;;  %v5755_v4 = vadd.f32 0.00028619796, %v5754_v18 }
 0x55d   :  { %v5730_v2 = vadd.f32 0.112945676, %v5729_v5  ;;  %v5766_v38 = vadd.f32 0.001143296, %v5765_v28  ;;  %v5719_v59 = vadd.f32 0.05243302, %v5718_v48 }
 0x55e   :  { %6008 = vrcp.f32 %v5694_v35  ;;  %v5756_v51 = vmul.f32 %v5755_v4, %v9289_v24  ;;  %v5792_v50 = vmul.f32 %v9298_v52, %v9298_v52  ;;  %v5683_v23 = vadd.f32 1.1283791, %v5682_v30 }
 0x55f   :  { %v5731_v34 = vmul.f32 %v5730_v2, %v9275_v6  ;;  %v5767_v17 = vmul.f32 %v5766_v38, %v9289_v24  ;;  %v5720_v7 = vmul.f32 %v5719_v59, %v9275_v6  ;;  %v5704_v3 = vand.u32 2147483647, %v5694_v35 }
 0x560   :  { %v9306_v45 = vmin.f32 %v5792_v50, 16.0  ;;  %v5757_v53 = vadd.f32 0.0036580483, %v5756_v51  ;;  %v5706_v11 = vand.u32 2147483648, %v5694_v35  ;;  %vm5700_vm10 = vweird.f32 %v5694_v35 }
 0x561   :  { %v5732_v39 = vadd.f32 0.4994258, %v5731_v34  ;;  %v5768_v40 = vadd.f32 0.014752088, %v5767_v17  ;;  %v5721_v16 = vadd.f32 0.18741608, %v5720_v7  ;;  %v5684_v21 = vmul.f32 %v5683_v23, %v9263_v20 }
 0x562   :  { %v5794_v46 = vmul.f32 2.1237322e-06, %v9306_v45  ;;  %v5805_v58 = vmul.f32 3.8918573e-05, %v9306_v45  ;;  %v5758_v62 = vmul.f32 %v5757_v53, %v9289_v24  ;;  %v5707_v54 = vor.u32 1.1754944e-38, %v5706_v11 }
 0x563   :  { %v5733_v25 = vmul.f32 %v5732_v39, %v9275_v6  ;;  %v5769_v10 = vmul.f32 %v5768_v40, %v9289_v24  ;;  %vm5705_vm3 = vcmp.eq.f32.partialorder %v5704_v3, 8.507059e+37  ;;  %v5722_v27 = vmul.f32 %v5721_v16, %v9275_v6 }
 0x564   :  { %v6009_v44 = vpop.eup %6008  ;;  %v5795_v63 = vadd.f32 0.00028619796, %v5794_v46  ;;  %v5806_v26 = vadd.f32 0.001143296, %v5805_v58  ;;  %v5759_v9 = vadd.f32 0.05243302, %v5758_v62 }
 0x565   :  { %v5696_v22 = vmul.f32 %v6009_v44, %v5694_v35  ;;  %v5734_v49 = vadd.f32 1.0, %v5733_v25  ;;  %v5770_v29 = vadd.f32 0.112945676, %v5769_v10  ;;  %vm5701_vm14 = vweird.f32 %v6009_v44 }
 0x566   :  { %v5796_v47 = vmul.f32 %v5795_v63, %v9306_v45  ;;  %v5807_v36 = vmul.f32 %v5806_v26, %v9306_v45  ;;  %vm5702_vm4 = vmor %vm5700_vm10, %vm5701_vm14  ;;  %v5760_v28 = vmul.f32 %v5759_v9, %v9289_v24  ;;  %v5723_v34 = vadd.f32 1.1283791, %v5722_v27 }
 0x567   :  { %v5697_v12 = vsub.f32 1.0, %v5696_v22  ;;  %6010 = vrcp.f32 %v5734_v49  ;;  %v5771_v13 = vmul.f32 %v5770_v29, %v9289_v24  ;;  %v5746_v20 = vand.u32 2147483648, %v5734_v49 }
 0x568   :  { %v5808_v43 = vadd.f32 0.014752088, %v5807_v36  ;;  %v5797_v33 = vadd.f32 0.0036580483, %v5796_v47  ;;  %v5744_v38 = vand.u32 2147483647, %v5734_v49  ;;  %vm5740_vm11 = vweird.f32 %v5734_v49 }
 0x569   :  { %v5698_v31 = vmul.f32 %v6009_v44, %v5697_v12  ;;  %v5772_v1 = vadd.f32 0.4994258, %v5771_v13  ;;  %v5664_v6 = vmul.f32 0.5, %v9260_v55  ;;  %v5747_v30 = vor.u32 1.1754944e-38, %v5746_v20 }
 0x56a   :  { %v5809_v57 = vmul.f32 %v5808_v43, %v9306_v45  ;;  %v5798_v48 = vmul.f32 %v5797_v33, %v9306_v45  ;;  %v5761_v25 = vadd.f32 0.18741608, %v5760_v28  ;;  %vm5745_vm7 = vcmp.eq.f32.partialorder %v5744_v38, 8.507059e+37 }
 0x56b   :  { %v5699_v61 = vadd.f32 %v6009_v44, %v5698_v31  ;;  %v5773_v5 = vmul.f32 %v5772_v1, %v9289_v24  ;;  %v5665_v23 = vmul.f32 0.5, %v9268_v32 }
 0x56c   :  { %v5810_v18 = vadd.f32 0.112945676, %v5809_v57  ;;  %v5799_v53 = vadd.f32 0.05243302, %v5798_v48  ;;  %v5762_v10 = vmul.f32 %v5761_v25, %v9289_v24 }
 0x56d   :  { %v6011_v41 = vpop.eup %6010  ;;  %v5703_v37 = vsel %vm5702_vm4, %v6009_v44, %v5699_v61  ;;  %v5774_v4 = vadd.f32 1.0, %v5773_v5  ;;  %v5724_v44 = vmul.f32 %v5723_v34, %v9271_v15 }
 0x56e   :  { %v5708_v19 = vsel %vm5705_vm3, %v5707_v54, %v5703_v37  ;;  %v5736_v42 = vmul.f32 %v6011_v41, %v5734_v49  ;;  %v5811_v14 = vmul.f32 %v5810_v18, %v9306_v45  ;;  %vm5741_vm13 = vweird.f32 %v6011_v41 }
 0x56f   :  { %v5709_v60 = vmul.f32 %v5708_v19, %v5684_v21  ;;  %6012 = vrcp.f32 %v5774_v4  ;;  %vm5742_vm9 = vmor %vm5740_vm11, %vm5741_vm13  ;;  %v5800_v49 = vmul.f32 %v5799_v53, %v9306_v45  ;;  %v5763_v3 = vadd.f32 1.1283791, %v5762_v10 }
 0x570   :  { %v5737_v35 = vsub.f32 1.0, %v5736_v42  ;;  %v5812_v59 = vadd.f32 0.4994258, %v5811_v14  ;;  %v5786_v11 = vand.u32 2147483648, %v5774_v4  ;;  %v5784_v47 = vand.u32 2147483647, %v5774_v4 }
 0x571   :  { %v5974_v2 = vclamps-f32 %v5709_v60, 1.0  ;;  %v5801_v62 = vadd.f32 0.18741608, %v5800_v49  ;;  %vm5780_vm15 = vweird.f32 %v5774_v4  ;;  %v5764_v61 = vmul.f32 %v5763_v3, %v9283_v8 }
 0x572   :  { %v5738_v51 = vmul.f32 %v6011_v41, %v5737_v35  ;;  %v5813_v46 = vmul.f32 %v5812_v59, %v9306_v45  ;;  %v5787_v16 = vor.u32 1.1754944e-38, %v5786_v11  ;;  %vm5785_vm1 = vcmp.eq.f32.partialorder %v5784_v47, 8.507059e+37 }
 0x573   :  { %v5832_v50 = vadd.f32 1.0, %v5974_v2  ;;  %v5802_v13 = vmul.f32 %v5801_v62, %v9306_v45  ;;  %v5666_v19 = vmul.f32 0.5, %v9278_v56  ;;  %v5667_v56 = vmul.f32 0.5, %v9292_v0 }
 0x574   :  { %v5739_v39 = vadd.f32 %v6011_v41, %v5738_v51  ;;  %v5814_v55 = vadd.f32 1.0, %v5813_v46 }
 0x575   :  { %v5836_v17 = vmul.f32 %v5832_v50, %v5664_v6  ;;  %v6013_v7 = vpop.eup %6012  ;;  %v5803_v1 = vadd.f32 1.1283791, %v5802_v13 }
 0x576   :  { %v5743_v40 = vsel %vm5742_vm9, %v6011_v41, %v5739_v39  ;;  %v5776_v26 = vmul.f32 %v6013_v7, %v5774_v4  ;;  %6014 = vrcp.f32 %v5814_v55  ;;  %vm5781_vm0 = vweird.f32 %v6013_v7 }
 0x577   :  { %5840 = vst [vmem:[#allocation2] sm:$0xff] %v5836_v17  ;;  %v5748_v58 = vsel %vm5745_vm7, %v5747_v30, %v5743_v40  ;;  %vm5782_vm6 = vmor %vm5780_vm15, %vm5781_vm0  ;;  %v5826_v41 = vand.u32 2147483648, %v5814_v55  ;;  %v5824_v57 = vand.u32 2147483647, %v5814_v55  ;;  %vm5820_vm5 = vweird.f32 %v5814_v55 }
 0x578   :  { %v5749_v22 = vmul.f32 %v5748_v58, %v5724_v44  ;;  %v5777_v15 = vsub.f32 1.0, %v5776_v26  ;;  %v5804_v60 = vmul.f32 %v5803_v1, %v9298_v52 }
 0x579   :  { %v5827_v45 = vor.u32 1.1754944e-38, %v5826_v41  ;;  %vm5825_vm2 = vcmp.eq.f32.partialorder %v5824_v57, 8.507059e+37 }
 0x57a   :  { %v5975_v63 = vclamps-f32 %v5749_v22, 1.0  ;;  %v5778_v31 = vmul.f32 %v6013_v7, %v5777_v15 }
 0x57c   :  { %v5833_v12 = vadd.f32 1.0, %v5975_v63  ;;  %v5779_v36 = vadd.f32 %v6013_v7, %v5778_v31  ;;  %v6015_v24 = vpop.eup %6014 }
 0x57d   :  { %v5816_v43 = vmul.f32 %v6015_v24, %v5814_v55  ;;  %vm5821_vm12 = vweird.f32 %v6015_v24 }
 0x57e   :  { %v5837_v29 = vmul.f32 %v5833_v12, %v5665_v23  ;;  %v5783_v32 = vsel %vm5782_vm6, %v6013_v7, %v5779_v36  ;;  %vm5822_vm8 = vmor %vm5820_vm5, %vm5821_vm12 }
 0x57f   :  { %v5788_v21 = vsel %vm5785_vm1, %v5787_v16, %v5783_v32  ;;  %v5817_v9 = vsub.f32 1.0, %v5816_v43 }
 0x580   :  { %5841 = vst [vmem:[#allocation2 + $0x8] sm:$0xff] %v5837_v29  ;;  %v5789_v54 = vmul.f32 %v5788_v21, %v5764_v61 }
 0x581   :  { %v5818_v33 = vmul.f32 %v6015_v24, %v5817_v9 }
 0x582   :  { %v5976_v37 = vclamps-f32 %v5789_v54, 1.0 }
 0x583   :  { %v5819_v42 = vadd.f32 %v6015_v24, %v5818_v33 }
 0x584   :  { %v5834_v27 = vadd.f32 1.0, %v5976_v37 }
 0x585   :  { %v5823_v5 = vsel %vm5822_vm8, %v6015_v24, %v5819_v42 }
 0x586   :  { %v5838_v8 = vmul.f32 %v5834_v27, %v5666_v19  ;;  %v5828_v18 = vsel %vm5825_vm2, %v5827_v45, %v5823_v5 }
 0x587   :  { %v5829_v35 = vmul.f32 %v5828_v18, %v5804_v60 }
 0x588   :  { %5842 = vst [vmem:[#allocation2 + $0x10] sm:$0xff] %v5838_v8 }
 0x589   :  { %v5977_v20 = vclamps-f32 %v5829_v35, 1.0 }
 0x58b   :  { %v5835_v28 = vadd.f32 1.0, %v5977_v20 }
 0x58d   :  { %v5839_v2 = vmul.f32 %v5835_v28, %v5667_v56 }
 0x58f   :  { %5843 = vst [vmem:[#allocation2 + $0x18] sm:$0xff] %v5839_v2 }
 0x590   :  { %5856 = dma.vmem_to_hbm [thread:$0]  %s5849_s4, 512, %s5851_s6, [#allocation3], %s6051_s10, %s6051_s10, %s6052_s11  }
 0x591   :  { %6041 = dma.done.wait [#allocation3], 512  }
 0x592   :  { %6042 = vsyncadd [#allocation3], 4294966784 }
 0x593   :  { %5861 = vsyncpa [#allocation3], 1 }

</bundles_post_ra>
